<compile_context>
chip_gen: v7x
topology: tpu7x:2x2x1
jax: 0.10.0
libtpu: 0.0.40
codegen_flags: <defaults>
</compile_context>

<pallas_src>
import jax
import jax.numpy as jnp
from jax.experimental import pallas as pl
from jax.experimental.pallas import tpu as pltpu

VOCAB = 64
EMBED = 16
HIDDEN = 32
NUM_LAYERS = 2
VPAD = 128          # lane-dense logits width (>= VOCAB, multiple of 128)
DROPOUT = 0.0       # TODO(synk): nn.LSTM inter-layer dropout not implemented (identity at eval / dropout=0.0).


def _full_spec(shape):
    """Full-array block, resident in VMEM (constant index map, grid=(1,))."""
    n = len(shape)
    return pl.BlockSpec(shape, lambda i, _n=n: (0,) * _n)


def _gates_to_hc(g, c):
    """g: [B,4H] raw gate pre-activations, c: [B,H].  PyTorch gate order (i,f,g,o).

    One sigmoid + one tanh over the full [B,4H] vreg, lane-sliced afterwards.
    """
    H = c.shape[-1]
    sg = jax.nn.sigmoid(g)
    tg = jnp.tanh(g)
    i = sg[:, 0:H]
    f = sg[:, H:2 * H]
    gg = tg[:, 2 * H:3 * H]
    o = sg[:, 3 * H:4 * H]
    c_new = f * c + i * gg
    h_new = o * jnp.tanh(c_new)
    return h_new, c_new


def _seg_reduce(x, S, B, op):
    """x: [S*B, K] time-major interleaved rows (s*B + b). Reduce over s -> [B, K]."""
    acc = x[0:B]
    for s in range(1, S):
        acc = op(acc, x[s * B:(s + 1) * B])
    return acc


# ----------------------------- fused Seq2Seq kernel -----------------------------

def _make_seq2seq_kernel(S, T, B):
    H = HIDDEN

    def kernel(enc_x_ref, dec_x_ref,
               e_wih0_ref, e_whh0_ref, e_b0_ref, e_wcat1_ref, e_b1_ref,
               d_wih0_ref, d_whh0_ref, d_b0_ref, d_wcat1_ref, d_b1_ref,
               wq_ref, bq_ref, wk_ref, bk_ref, wv_ref, bv_ref,
               fcw_ref, fcb_ref,
               out_ref):
        f32 = jnp.float32

        # ------------------------------ encoder ------------------------------
        # Hoisted layer-0 input projection for ALL source timesteps (one matmul).
        xg0_e = (jnp.dot(enc_x_ref[...], e_wih0_ref[...], preferred_element_type=f32)
                 + e_b0_ref[...])                                   # [S*B, 4H]

        h0 = jnp.zeros((B, H), f32)
        c0 = jnp.zeros((B, H), f32)
        h1 = jnp.zeros((B, H), f32)
        c1 = jnp.zeros((B, H), f32)
        enc_rows = []
        for s in range(S):
            g0 = (xg0_e[s * B:(s + 1) * B]
                  + jnp.dot(h0, e_whh0_ref[...], preferred_element_type=f32))
            h0, c0 = _gates_to_hc(g0, c0)
            g1 = (jnp.dot(jnp.concatenate([h0, h1], axis=1), e_wcat1_ref[...],
                          preferred_element_type=f32) + e_b1_ref[...])
            h1, c1 = _gates_to_hc(g1, c1)
            enc_rows.append(h1)
        enc_flat = jnp.concatenate(enc_rows, axis=0)                # [S*B, H]

        # ------------------------- decoder (teacher forced) -------------------------
        # Hoisted attention keys + layer-0 input projection for all target steps.
        k_all = (jnp.dot(enc_flat, wk_ref[...], preferred_element_type=f32)
                 + bk_ref[...])                                     # [S*B, H]
        xg0_d = (jnp.dot(dec_x_ref[...], d_wih0_ref[...], preferred_element_type=f32)
                 + d_b0_ref[...])                                   # [T*B, 4H]

        wv_row = wv_ref[...]                                        # [1, H]
        bv = bv_ref[...]                                            # [1, 1]

        preds = [jnp.zeros((B, VPAD), f32)]                         # outputs[:, 0, :] stays zero
        for t in range(1, T):
            # 2-layer LSTM step on embed(target[:, t-1]); state carried from encoder.
            g0 = (xg0_d[(t - 1) * B:t * B]
                  + jnp.dot(h0, d_whh0_ref[...], preferred_element_type=f32))
            h0, c0 = _gates_to_hc(g0, c0)
            g1 = (jnp.dot(jnp.concatenate([h0, h1], axis=1), d_wcat1_ref[...],
                          preferred_element_type=f32) + d_b1_ref[...])
            h1, c1 = _gates_to_hc(g1, c1)

            # Bahdanau attention over encoder outputs, flat [S*B, H] layout.
            q = (jnp.dot(h1, wq_ref[...], preferred_element_type=f32)
                 + bq_ref[...])                                     # [B, H]
            e = jnp.tanh(jnp.concatenate([q] * S, axis=0) + k_all)  # [S*B, H]
            scores = jnp.sum(e * wv_row, axis=-1, keepdims=True) + bv   # [S*B, 1]
            m = _seg_reduce(scores, S, B, jnp.maximum)              # [B, 1]
            p = jnp.exp(scores - jnp.concatenate([m] * S, axis=0))  # [S*B, 1]
            denom = _seg_reduce(p, S, B, jnp.add)                   # [B, 1]
            ctx = _seg_reduce(p * enc_flat, S, B, jnp.add) / denom  # [B, H]  (exact softmax)

            # Output projection on [lstm_out | ctx] (lane-dense, padded to VPAD).
            pred = (jnp.dot(jnp.concatenate([h1, ctx], axis=1), fcw_ref[...],
                            preferred_element_type=f32) + fcb_ref[...])   # [B, VPAD]
            preds.append(pred)

        # One dense [T*B, VPAD] slab store.
        out_ref[...] = jnp.concatenate(preds, axis=0)

    return kernel


def _seq2seq_pallas(S, T, B, *arrays):
    in_specs = [_full_spec(a.shape) for a in arrays]
    return pl.pallas_call(
        _make_seq2seq_kernel(S, T, B),
        out_shape=jax.ShapeDtypeStruct((T * B, VPAD), jnp.float32),
        grid=(1,),
        in_specs=in_specs,
        out_specs=_full_spec((T * B, VPAD)),
        compiler_params=pltpu.CompilerParams(dimension_semantics=("arbitrary",)),
    )(*arrays)


# ----------------------------- parameters -----------------------------

def init_params(key):
    keys = iter(jax.random.split(key, 64))

    def u(shape, fan_in):
        scale = 1.0 / float(fan_in) ** 0.5
        return jax.random.uniform(next(keys), shape, jnp.float32, -scale, scale)

    def lstm_params(in_dim):
        w_ih = u((in_dim, 4 * HIDDEN), HIDDEN)
        w_hh = u((HIDDEN, 4 * HIDDEN), HIDDEN)
        b = u((1, 4 * HIDDEN), HIDDEN) + u((1, 4 * HIDDEN), HIDDEN)   # b_ih + b_hh
        return (w_ih, w_hh, b)

    return {
        'enc_embedding': jax.random.normal(next(keys), (VOCAB, EMBED), jnp.float32),
        'dec_embedding': jax.random.normal(next(keys), (VOCAB, EMBED), jnp.float32),
        'enc_lstm': [lstm_params(EMBED if l == 0 else HIDDEN) for l in range(NUM_LAYERS)],
        'dec_lstm': [lstm_params(EMBED if l == 0 else HIDDEN) for l in range(NUM_LAYERS)],
        'att_wq': u((HIDDEN, HIDDEN), HIDDEN), 'att_bq': u((1, HIDDEN), HIDDEN),
        'att_wk': u((HIDDEN, HIDDEN), HIDDEN), 'att_bk': u((1, HIDDEN), HIDDEN),
        'att_wv': u((1, HIDDEN), HIDDEN), 'att_bv': u((1, 1), HIDDEN),
        'fc_w': u((2 * HIDDEN, VOCAB), 2 * HIDDEN), 'fc_b': u((1, VOCAB), 2 * HIDDEN),
    }


# ----------------------------- Seq2Seq forward -----------------------------

@jax.jit
def seq2seq_forward(params, input_seq, target_seq):
    B, S = input_seq.shape
    _, T = target_seq.shape

    # Embedding lookups (gather) done in the wrapper; time-major flattened rows s*B + b.
    enc_x = params['enc_embedding'][input_seq.T].reshape(S * B, EMBED)
    dec_x = params['dec_embedding'][target_seq.T].reshape(T * B, EMBED)   # step t consumes rows (t-1)*B

    (e_wih0, e_whh0, e_b0), (e_wih1, e_whh1, e_b1) = params['enc_lstm']
    (d_wih0, d_whh0, d_b0), (d_wih1, d_whh1, d_b1) = params['dec_lstm']
    # Fuse layer-1 input/recurrent weights so each step is one [x|h] @ W matmul.
    e_wcat1 = jnp.concatenate([e_wih1, e_whh1], axis=0)                   # [2H, 4H]
    d_wcat1 = jnp.concatenate([d_wih1, d_whh1], axis=0)
    # Lane-dense padded output projection (single [h1|ctx] @ W matmul per step).
    fcw = jnp.pad(params['fc_w'], ((0, 0), (0, VPAD - VOCAB)))            # [2H, VPAD]
    fcb = jnp.pad(params['fc_b'], ((0, 0), (0, VPAD - VOCAB)))            # [1, VPAD]

    out_flat = _seq2seq_pallas(
        S, T, B,
        enc_x, dec_x,
        e_wih0, e_whh0, e_b0, e_wcat1, e_b1,
        d_wih0, d_whh0, d_b0, d_wcat1, d_b1,
        params['att_wq'], params['att_bq'],
        params['att_wk'], params['att_bk'],
        params['att_wv'], params['att_bv'],
        fcw, fcb)                                                         # [T*B, VPAD]

    return out_flat.reshape(T, B, VPAD).transpose(1, 0, 2)[:, :, :VOCAB]  # [B, T, VOCAB]


if __name__ == "__main__":
    key = jax.random.PRNGKey(0)
    kp, ki, kt = jax.random.split(key, 3)
    params = init_params(kp)

    B, SRC_LEN, TGT_LEN = 2, 8, 8
    input_seq = jax.random.randint(ki, (B, SRC_LEN), 0, VOCAB, dtype=jnp.int32)
    target_seq = jax.random.randint(kt, (B, TGT_LEN), 0, VOCAB, dtype=jnp.int32)

    out = seq2seq_forward(params, input_seq, target_seq)
    out = jax.block_until_ready(out)

    assert out.shape == (B, TGT_LEN, VOCAB), out.shape
    assert bool(jnp.all(jnp.isfinite(out)))
    assert bool(jnp.all(out[:, 0, :] == 0.0))   # reference leaves t=0 logits zero
    print("KERNEL_OK")
</pallas_src>

<mosaic_0001>
module attributes {stable_mosaic.version = 11 : i64} {
  func.func @kernel(%arg0: i32, %arg1: memref<16x16xf32, #tpu.memory_space<vmem>>, %arg2: memref<16x16xf32, #tpu.memory_space<vmem>>, %arg3: memref<16x128xf32, #tpu.memory_space<vmem>>, %arg4: memref<32x128xf32, #tpu.memory_space<vmem>>, %arg5: memref<1x128xf32, #tpu.memory_space<vmem>>, %arg6: memref<64x128xf32, #tpu.memory_space<vmem>>, %arg7: memref<1x128xf32, #tpu.memory_space<vmem>>, %arg8: memref<16x128xf32, #tpu.memory_space<vmem>>, %arg9: memref<32x128xf32, #tpu.memory_space<vmem>>, %arg10: memref<1x128xf32, #tpu.memory_space<vmem>>, %arg11: memref<64x128xf32, #tpu.memory_space<vmem>>, %arg12: memref<1x128xf32, #tpu.memory_space<vmem>>, %arg13: memref<32x32xf32, #tpu.memory_space<vmem>>, %arg14: memref<1x32xf32, #tpu.memory_space<vmem>>, %arg15: memref<32x32xf32, #tpu.memory_space<vmem>>, %arg16: memref<1x32xf32, #tpu.memory_space<vmem>>, %arg17: memref<1x32xf32, #tpu.memory_space<vmem>>, %arg18: memref<1x1xf32, #tpu.memory_space<vmem>>, %arg19: memref<64x128xf32, #tpu.memory_space<vmem>>, %arg20: memref<1x128xf32, #tpu.memory_space<vmem>>, %arg21: memref<16x128xf32, #tpu.memory_space<vmem>>) attributes {dimension_semantics = [#tpu.dimension_semantics<arbitrary>], iteration_bounds = array<i64: 1>, scalar_prefetch = 0 : i64, scratch_operands = 0 : i64, tpu.core_type = #tpu.core_type<tc>, window_params = [{pipeline_mode = #tpu.pipeline_mode<synchronous>, transform_indices = @transform_0, window_bounds = array<i64: 16, 16>}, {pipeline_mode = #tpu.pipeline_mode<synchronous>, transform_indices = @transform_1, window_bounds = array<i64: 16, 16>}, {pipeline_mode = #tpu.pipeline_mode<synchronous>, transform_indices = @transform_2, window_bounds = array<i64: 16, 128>}, {pipeline_mode = #tpu.pipeline_mode<synchronous>, transform_indices = @transform_3, window_bounds = array<i64: 32, 128>}, {pipeline_mode = #tpu.pipeline_mode<synchronous>, transform_indices = @transform_4, window_bounds = array<i64: 1, 128>}, {pipeline_mode = #tpu.pipeline_mode<synchronous>, transform_indices = @transform_5, window_bounds = array<i64: 64, 128>}, {pipeline_mode = #tpu.pipeline_mode<synchronous>, transform_indices = @transform_6, window_bounds = array<i64: 1, 128>}, {pipeline_mode = #tpu.pipeline_mode<synchronous>, transform_indices = @transform_7, window_bounds = array<i64: 16, 128>}, {pipeline_mode = #tpu.pipeline_mode<synchronous>, transform_indices = @transform_8, window_bounds = array<i64: 32, 128>}, {pipeline_mode = #tpu.pipeline_mode<synchronous>, transform_indices = @transform_9, window_bounds = array<i64: 1, 128>}, {pipeline_mode = #tpu.pipeline_mode<synchronous>, transform_indices = @transform_10, window_bounds = array<i64: 64, 128>}, {pipeline_mode = #tpu.pipeline_mode<synchronous>, transform_indices = @transform_11, window_bounds = array<i64: 1, 128>}, {pipeline_mode = #tpu.pipeline_mode<synchronous>, transform_indices = @transform_12, window_bounds = array<i64: 32, 32>}, {pipeline_mode = #tpu.pipeline_mode<synchronous>, transform_indices = @transform_13, window_bounds = array<i64: 1, 32>}, {pipeline_mode = #tpu.pipeline_mode<synchronous>, transform_indices = @transform_14, window_bounds = array<i64: 32, 32>}, {pipeline_mode = #tpu.pipeline_mode<synchronous>, transform_indices = @transform_15, window_bounds = array<i64: 1, 32>}, {pipeline_mode = #tpu.pipeline_mode<synchronous>, transform_indices = @transform_16, window_bounds = array<i64: 1, 32>}, {pipeline_mode = #tpu.pipeline_mode<synchronous>, transform_indices = @transform_17, window_bounds = array<i64: 1, 1>}, {pipeline_mode = #tpu.pipeline_mode<synchronous>, transform_indices = @transform_18, window_bounds = array<i64: 64, 128>}, {pipeline_mode = #tpu.pipeline_mode<synchronous>, transform_indices = @transform_19, window_bounds = array<i64: 1, 128>}, {pipeline_mode = #tpu.pipeline_mode<synchronous>, transform_indices = @transform_20, window_bounds = array<i64: 16, 128>}]} {
    %c0 = arith.constant 0 : index
    %c0_0 = arith.constant 0 : index
    %0 = vector.load %arg1[%c0, %c0_0] : memref<16x16xf32, #tpu.memory_space<vmem>>, vector<16x16xf32>
    %c0_1 = arith.constant 0 : index
    %c0_2 = arith.constant 0 : index
    %1 = vector.load %arg3[%c0_1, %c0_2] : memref<16x128xf32, #tpu.memory_space<vmem>>, vector<16x128xf32>
    %cst = arith.constant dense<0.000000e+00> : vector<16x128xf32>
    %2 = tpu.matmul %0, %1, %cst {dimension_numbers = #tpu.dot_dimension_numbers<[1], [0], [0], [1], [0, 0, 1, 1], [], []>} : vector<16x16xf32>, vector<16x128xf32>, vector<16x128xf32> -> vector<16x128xf32>
    %c0_3 = arith.constant 0 : index
    %c0_4 = arith.constant 0 : index
    %3 = vector.load %arg5[%c0_3, %c0_4] : memref<1x128xf32, #tpu.memory_space<vmem>>, vector<1x128xf32>
    %4 = vector.broadcast %3 : vector<1x128xf32> to vector<16x128xf32>
    %5 = arith.addf %2, %4 : vector<16x128xf32>
    %cst_5 = arith.constant 0.000000e+00 : f32
    %6 = vector.broadcast %cst_5 : f32 to vector<2x32xf32>
    %cst_6 = arith.constant 0.000000e+00 : f32
    %7 = vector.broadcast %cst_6 : f32 to vector<2x32xf32>
    %cst_7 = arith.constant 0.000000e+00 : f32
    %8 = vector.broadcast %cst_7 : f32 to vector<2x32xf32>
    %cst_8 = arith.constant 0.000000e+00 : f32
    %9 = vector.broadcast %cst_8 : f32 to vector<2x32xf32>
    %10 = vector.extract_strided_slice %5 {offsets = [0, 0], sizes = [2, 128], strides = [1, 1]} : vector<16x128xf32> to vector<2x128xf32>
    %c0_9 = arith.constant 0 : index
    %c0_10 = arith.constant 0 : index
    %11 = vector.load %arg4[%c0_9, %c0_10] : memref<32x128xf32, #tpu.memory_space<vmem>>, vector<32x128xf32>
    %cst_11 = arith.constant dense<0.000000e+00> : vector<2x128xf32>
    %12 = tpu.matmul %6, %11, %cst_11 {dimension_numbers = #tpu.dot_dimension_numbers<[1], [0], [0], [1], [0, 0, 1, 1], [], []>} : vector<2x32xf32>, vector<32x128xf32>, vector<2x128xf32> -> vector<2x128xf32>
    %13 = arith.addf %10, %12 : vector<2x128xf32>
    %14 = arith.negf %13 : vector<2x128xf32>
    %15 = math.exp %14 : vector<2x128xf32>
    %cst_12 = arith.constant 1.000000e+00 : f32
    %16 = vector.broadcast %cst_12 : f32 to vector<2x128xf32>
    %17 = arith.addf %16, %15 : vector<2x128xf32>
    %18 = arith.divf %16, %17 : vector<2x128xf32>
    %19 = math.tanh %13 : vector<2x128xf32>
    %20 = vector.extract_strided_slice %18 {offsets = [0, 0], sizes = [2, 32], strides = [1, 1]} : vector<2x128xf32> to vector<2x32xf32>
    %21 = vector.extract_strided_slice %18 {offsets = [0, 32], sizes = [2, 32], strides = [1, 1]} : vector<2x128xf32> to vector<2x32xf32>
    %22 = vector.extract_strided_slice %19 {offsets = [0, 64], sizes = [2, 32], strides = [1, 1]} : vector<2x128xf32> to vector<2x32xf32>
    %23 = vector.extract_strided_slice %18 {offsets = [0, 96], sizes = [2, 32], strides = [1, 1]} : vector<2x128xf32> to vector<2x32xf32>
    %24 = arith.mulf %21, %7 : vector<2x32xf32>
    %25 = arith.mulf %20, %22 : vector<2x32xf32>
    %26 = arith.addf %24, %25 : vector<2x32xf32>
    %27 = math.tanh %26 : vector<2x32xf32>
    %28 = arith.mulf %23, %27 : vector<2x32xf32>
    %29 = tpu.concatenate %28, %8 in 1 : vector<2x32xf32>, vector<2x32xf32> -> vector<2x64xf32>
    %c0_13 = arith.constant 0 : index
    %c0_14 = arith.constant 0 : index
    %30 = vector.load %arg6[%c0_13, %c0_14] : memref<64x128xf32, #tpu.memory_space<vmem>>, vector<64x128xf32>
    %cst_15 = arith.constant dense<0.000000e+00> : vector<2x128xf32>
    %31 = tpu.matmul %29, %30, %cst_15 {dimension_numbers = #tpu.dot_dimension_numbers<[1], [0], [0], [1], [0, 0, 1, 1], [], []>} : vector<2x64xf32>, vector<64x128xf32>, vector<2x128xf32> -> vector<2x128xf32>
    %c0_16 = arith.constant 0 : index
    %c0_17 = arith.constant 0 : index
    %32 = vector.load %arg7[%c0_16, %c0_17] : memref<1x128xf32, #tpu.memory_space<vmem>>, vector<1x128xf32>
    %33 = vector.broadcast %32 : vector<1x128xf32> to vector<2x128xf32>
    %34 = arith.addf %31, %33 : vector<2x128xf32>
    %35 = arith.negf %34 : vector<2x128xf32>
    %36 = math.exp %35 : vector<2x128xf32>
    %cst_18 = arith.constant 1.000000e+00 : f32
    %37 = vector.broadcast %cst_18 : f32 to vector<2x128xf32>
    %38 = arith.addf %37, %36 : vector<2x128xf32>
    %39 = arith.divf %37, %38 : vector<2x128xf32>
    %40 = math.tanh %34 : vector<2x128xf32>
    %41 = vector.extract_strided_slice %39 {offsets = [0, 0], sizes = [2, 32], strides = [1, 1]} : vector<2x128xf32> to vector<2x32xf32>
    %42 = vector.extract_strided_slice %39 {offsets = [0, 32], sizes = [2, 32], strides = [1, 1]} : vector<2x128xf32> to vector<2x32xf32>
    %43 = vector.extract_strided_slice %40 {offsets = [0, 64], sizes = [2, 32], strides = [1, 1]} : vector<2x128xf32> to vector<2x32xf32>
    %44 = vector.extract_strided_slice %39 {offsets = [0, 96], sizes = [2, 32], strides = [1, 1]} : vector<2x128xf32> to vector<2x32xf32>
    %45 = arith.mulf %42, %9 : vector<2x32xf32>
    %46 = arith.mulf %41, %43 : vector<2x32xf32>
    %47 = arith.addf %45, %46 : vector<2x32xf32>
    %48 = math.tanh %47 : vector<2x32xf32>
    %49 = arith.mulf %44, %48 : vector<2x32xf32>
    %50 = vector.extract_strided_slice %5 {offsets = [2, 0], sizes = [2, 128], strides = [1, 1]} : vector<16x128xf32> to vector<2x128xf32>
    %c0_19 = arith.constant 0 : index
    %c0_20 = arith.constant 0 : index
    %51 = vector.load %arg4[%c0_19, %c0_20] : memref<32x128xf32, #tpu.memory_space<vmem>>, vector<32x128xf32>
    %cst_21 = arith.constant dense<0.000000e+00> : vector<2x128xf32>
    %52 = tpu.matmul %28, %51, %cst_21 {dimension_numbers = #tpu.dot_dimension_numbers<[1], [0], [0], [1], [0, 0, 1, 1], [], []>} : vector<2x32xf32>, vector<32x128xf32>, vector<2x128xf32> -> vector<2x128xf32>
    %53 = arith.addf %50, %52 : vector<2x128xf32>
    %54 = arith.negf %53 : vector<2x128xf32>
    %55 = math.exp %54 : vector<2x128xf32>
    %cst_22 = arith.constant 1.000000e+00 : f32
    %56 = vector.broadcast %cst_22 : f32 to vector<2x128xf32>
    %57 = arith.addf %56, %55 : vector<2x128xf32>
    %58 = arith.divf %56, %57 : vector<2x128xf32>
    %59 = math.tanh %53 : vector<2x128xf32>
    %60 = vector.extract_strided_slice %58 {offsets = [0, 0], sizes = [2, 32], strides = [1, 1]} : vector<2x128xf32> to vector<2x32xf32>
    %61 = vector.extract_strided_slice %58 {offsets = [0, 32], sizes = [2, 32], strides = [1, 1]} : vector<2x128xf32> to vector<2x32xf32>
    %62 = vector.extract_strided_slice %59 {offsets = [0, 64], sizes = [2, 32], strides = [1, 1]} : vector<2x128xf32> to vector<2x32xf32>
    %63 = vector.extract_strided_slice %58 {offsets = [0, 96], sizes = [2, 32], strides = [1, 1]} : vector<2x128xf32> to vector<2x32xf32>
    %64 = arith.mulf %61, %26 : vector<2x32xf32>
    %65 = arith.mulf %60, %62 : vector<2x32xf32>
    %66 = arith.addf %64, %65 : vector<2x32xf32>
    %67 = math.tanh %66 : vector<2x32xf32>
    %68 = arith.mulf %63, %67 : vector<2x32xf32>
    %69 = tpu.concatenate %68, %49 in 1 : vector<2x32xf32>, vector<2x32xf32> -> vector<2x64xf32>
    %c0_23 = arith.constant 0 : index
    %c0_24 = arith.constant 0 : index
    %70 = vector.load %arg6[%c0_23, %c0_24] : memref<64x128xf32, #tpu.memory_space<vmem>>, vector<64x128xf32>
    %cst_25 = arith.constant dense<0.000000e+00> : vector<2x128xf32>
    %71 = tpu.matmul %69, %70, %cst_25 {dimension_numbers = #tpu.dot_dimension_numbers<[1], [0], [0], [1], [0, 0, 1, 1], [], []>} : vector<2x64xf32>, vector<64x128xf32>, vector<2x128xf32> -> vector<2x128xf32>
    %c0_26 = arith.constant 0 : index
    %c0_27 = arith.constant 0 : index
    %72 = vector.load %arg7[%c0_26, %c0_27] : memref<1x128xf32, #tpu.memory_space<vmem>>, vector<1x128xf32>
    %73 = vector.broadcast %72 : vector<1x128xf32> to vector<2x128xf32>
    %74 = arith.addf %71, %73 : vector<2x128xf32>
    %75 = arith.negf %74 : vector<2x128xf32>
    %76 = math.exp %75 : vector<2x128xf32>
    %cst_28 = arith.constant 1.000000e+00 : f32
    %77 = vector.broadcast %cst_28 : f32 to vector<2x128xf32>
    %78 = arith.addf %77, %76 : vector<2x128xf32>
    %79 = arith.divf %77, %78 : vector<2x128xf32>
    %80 = math.tanh %74 : vector<2x128xf32>
    %81 = vector.extract_strided_slice %79 {offsets = [0, 0], sizes = [2, 32], strides = [1, 1]} : vector<2x128xf32> to vector<2x32xf32>
    %82 = vector.extract_strided_slice %79 {offsets = [0, 32], sizes = [2, 32], strides = [1, 1]} : vector<2x128xf32> to vector<2x32xf32>
    %83 = vector.extract_strided_slice %80 {offsets = [0, 64], sizes = [2, 32], strides = [1, 1]} : vector<2x128xf32> to vector<2x32xf32>
    %84 = vector.extract_strided_slice %79 {offsets = [0, 96], sizes = [2, 32], strides = [1, 1]} : vector<2x128xf32> to vector<2x32xf32>
    %85 = arith.mulf %82, %47 : vector<2x32xf32>
    %86 = arith.mulf %81, %83 : vector<2x32xf32>
    %87 = arith.addf %85, %86 : vector<2x32xf32>
    %88 = math.tanh %87 : vector<2x32xf32>
    %89 = arith.mulf %84, %88 : vector<2x32xf32>
    %90 = vector.extract_strided_slice %5 {offsets = [4, 0], sizes = [2, 128], strides = [1, 1]} : vector<16x128xf32> to vector<2x128xf32>
    %c0_29 = arith.constant 0 : index
    %c0_30 = arith.constant 0 : index
    %91 = vector.load %arg4[%c0_29, %c0_30] : memref<32x128xf32, #tpu.memory_space<vmem>>, vector<32x128xf32>
    %cst_31 = arith.constant dense<0.000000e+00> : vector<2x128xf32>
    %92 = tpu.matmul %68, %91, %cst_31 {dimension_numbers = #tpu.dot_dimension_numbers<[1], [0], [0], [1], [0, 0, 1, 1], [], []>} : vector<2x32xf32>, vector<32x128xf32>, vector<2x128xf32> -> vector<2x128xf32>
    %93 = arith.addf %90, %92 : vector<2x128xf32>
    %94 = arith.negf %93 : vector<2x128xf32>
    %95 = math.exp %94 : vector<2x128xf32>
    %cst_32 = arith.constant 1.000000e+00 : f32
    %96 = vector.broadcast %cst_32 : f32 to vector<2x128xf32>
    %97 = arith.addf %96, %95 : vector<2x128xf32>
    %98 = arith.divf %96, %97 : vector<2x128xf32>
    %99 = math.tanh %93 : vector<2x128xf32>
    %100 = vector.extract_strided_slice %98 {offsets = [0, 0], sizes = [2, 32], strides = [1, 1]} : vector<2x128xf32> to vector<2x32xf32>
    %101 = vector.extract_strided_slice %98 {offsets = [0, 32], sizes = [2, 32], strides = [1, 1]} : vector<2x128xf32> to vector<2x32xf32>
    %102 = vector.extract_strided_slice %99 {offsets = [0, 64], sizes = [2, 32], strides = [1, 1]} : vector<2x128xf32> to vector<2x32xf32>
    %103 = vector.extract_strided_slice %98 {offsets = [0, 96], sizes = [2, 32], strides = [1, 1]} : vector<2x128xf32> to vector<2x32xf32>
    %104 = arith.mulf %101, %66 : vector<2x32xf32>
    %105 = arith.mulf %100, %102 : vector<2x32xf32>
    %106 = arith.addf %104, %105 : vector<2x32xf32>
    %107 = math.tanh %106 : vector<2x32xf32>
    %108 = arith.mulf %103, %107 : vector<2x32xf32>
    %109 = tpu.concatenate %108, %89 in 1 : vector<2x32xf32>, vector<2x32xf32> -> vector<2x64xf32>
    %c0_33 = arith.constant 0 : index
    %c0_34 = arith.constant 0 : index
    %110 = vector.load %arg6[%c0_33, %c0_34] : memref<64x128xf32, #tpu.memory_space<vmem>>, vector<64x128xf32>
    %cst_35 = arith.constant dense<0.000000e+00> : vector<2x128xf32>
    %111 = tpu.matmul %109, %110, %cst_35 {dimension_numbers = #tpu.dot_dimension_numbers<[1], [0], [0], [1], [0, 0, 1, 1], [], []>} : vector<2x64xf32>, vector<64x128xf32>, vector<2x128xf32> -> vector<2x128xf32>
    %c0_36 = arith.constant 0 : index
    %c0_37 = arith.constant 0 : index
    %112 = vector.load %arg7[%c0_36, %c0_37] : memref<1x128xf32, #tpu.memory_space<vmem>>, vector<1x128xf32>
    %113 = vector.broadcast %112 : vector<1x128xf32> to vector<2x128xf32>
    %114 = arith.addf %111, %113 : vector<2x128xf32>
    %115 = arith.negf %114 : vector<2x128xf32>
    %116 = math.exp %115 : vector<2x128xf32>
    %cst_38 = arith.constant 1.000000e+00 : f32
    %117 = vector.broadcast %cst_38 : f32 to vector<2x128xf32>
    %118 = arith.addf %117, %116 : vector<2x128xf32>
    %119 = arith.divf %117, %118 : vector<2x128xf32>
    %120 = math.tanh %114 : vector<2x128xf32>
    %121 = vector.extract_strided_slice %119 {offsets = [0, 0], sizes = [2, 32], strides = [1, 1]} : vector<2x128xf32> to vector<2x32xf32>
    %122 = vector.extract_strided_slice %119 {offsets = [0, 32], sizes = [2, 32], strides = [1, 1]} : vector<2x128xf32> to vector<2x32xf32>
    %123 = vector.extract_strided_slice %120 {offsets = [0, 64], sizes = [2, 32], strides = [1, 1]} : vector<2x128xf32> to vector<2x32xf32>
    %124 = vector.extract_strided_slice %119 {offsets = [0, 96], sizes = [2, 32], strides = [1, 1]} : vector<2x128xf32> to vector<2x32xf32>
    %125 = arith.mulf %122, %87 : vector<2x32xf32>
    %126 = arith.mulf %121, %123 : vector<2x32xf32>
    %127 = arith.addf %125, %126 : vector<2x32xf32>
    %128 = math.tanh %127 : vector<2x32xf32>
    %129 = arith.mulf %124, %128 : vector<2x32xf32>
    %130 = vector.extract_strided_slice %5 {offsets = [6, 0], sizes = [2, 128], strides = [1, 1]} : vector<16x128xf32> to vector<2x128xf32>
    %c0_39 = arith.constant 0 : index
    %c0_40 = arith.constant 0 : index
    %131 = vector.load %arg4[%c0_39, %c0_40] : memref<32x128xf32, #tpu.memory_space<vmem>>, vector<32x128xf32>
    %cst_41 = arith.constant dense<0.000000e+00> : vector<2x128xf32>
    %132 = tpu.matmul %108, %131, %cst_41 {dimension_numbers = #tpu.dot_dimension_numbers<[1], [0], [0], [1], [0, 0, 1, 1], [], []>} : vector<2x32xf32>, vector<32x128xf32>, vector<2x128xf32> -> vector<2x128xf32>
    %133 = arith.addf %130, %132 : vector<2x128xf32>
    %134 = arith.negf %133 : vector<2x128xf32>
    %135 = math.exp %134 : vector<2x128xf32>
    %cst_42 = arith.constant 1.000000e+00 : f32
    %136 = vector.broadcast %cst_42 : f32 to vector<2x128xf32>
    %137 = arith.addf %136, %135 : vector<2x128xf32>
    %138 = arith.divf %136, %137 : vector<2x128xf32>
    %139 = math.tanh %133 : vector<2x128xf32>
    %140 = vector.extract_strided_slice %138 {offsets = [0, 0], sizes = [2, 32], strides = [1, 1]} : vector<2x128xf32> to vector<2x32xf32>
    %141 = vector.extract_strided_slice %138 {offsets = [0, 32], sizes = [2, 32], strides = [1, 1]} : vector<2x128xf32> to vector<2x32xf32>
    %142 = vector.extract_strided_slice %139 {offsets = [0, 64], sizes = [2, 32], strides = [1, 1]} : vector<2x128xf32> to vector<2x32xf32>
    %143 = vector.extract_strided_slice %138 {offsets = [0, 96], sizes = [2, 32], strides = [1, 1]} : vector<2x128xf32> to vector<2x32xf32>
    %144 = arith.mulf %141, %106 : vector<2x32xf32>
    %145 = arith.mulf %140, %142 : vector<2x32xf32>
    %146 = arith.addf %144, %145 : vector<2x32xf32>
    %147 = math.tanh %146 : vector<2x32xf32>
    %148 = arith.mulf %143, %147 : vector<2x32xf32>
    %149 = tpu.concatenate %148, %129 in 1 : vector<2x32xf32>, vector<2x32xf32> -> vector<2x64xf32>
    %c0_43 = arith.constant 0 : index
    %c0_44 = arith.constant 0 : index
    %150 = vector.load %arg6[%c0_43, %c0_44] : memref<64x128xf32, #tpu.memory_space<vmem>>, vector<64x128xf32>
    %cst_45 = arith.constant dense<0.000000e+00> : vector<2x128xf32>
    %151 = tpu.matmul %149, %150, %cst_45 {dimension_numbers = #tpu.dot_dimension_numbers<[1], [0], [0], [1], [0, 0, 1, 1], [], []>} : vector<2x64xf32>, vector<64x128xf32>, vector<2x128xf32> -> vector<2x128xf32>
    %c0_46 = arith.constant 0 : index
    %c0_47 = arith.constant 0 : index
    %152 = vector.load %arg7[%c0_46, %c0_47] : memref<1x128xf32, #tpu.memory_space<vmem>>, vector<1x128xf32>
    %153 = vector.broadcast %152 : vector<1x128xf32> to vector<2x128xf32>
    %154 = arith.addf %151, %153 : vector<2x128xf32>
    %155 = arith.negf %154 : vector<2x128xf32>
    %156 = math.exp %155 : vector<2x128xf32>
    %cst_48 = arith.constant 1.000000e+00 : f32
    %157 = vector.broadcast %cst_48 : f32 to vector<2x128xf32>
    %158 = arith.addf %157, %156 : vector<2x128xf32>
    %159 = arith.divf %157, %158 : vector<2x128xf32>
    %160 = math.tanh %154 : vector<2x128xf32>
    %161 = vector.extract_strided_slice %159 {offsets = [0, 0], sizes = [2, 32], strides = [1, 1]} : vector<2x128xf32> to vector<2x32xf32>
    %162 = vector.extract_strided_slice %159 {offsets = [0, 32], sizes = [2, 32], strides = [1, 1]} : vector<2x128xf32> to vector<2x32xf32>
    %163 = vector.extract_strided_slice %160 {offsets = [0, 64], sizes = [2, 32], strides = [1, 1]} : vector<2x128xf32> to vector<2x32xf32>
    %164 = vector.extract_strided_slice %159 {offsets = [0, 96], sizes = [2, 32], strides = [1, 1]} : vector<2x128xf32> to vector<2x32xf32>
    %165 = arith.mulf %162, %127 : vector<2x32xf32>
    %166 = arith.mulf %161, %163 : vector<2x32xf32>
    %167 = arith.addf %165, %166 : vector<2x32xf32>
    %168 = math.tanh %167 : vector<2x32xf32>
    %169 = arith.mulf %164, %168 : vector<2x32xf32>
    %170 = vector.extract_strided_slice %5 {offsets = [8, 0], sizes = [2, 128], strides = [1, 1]} : vector<16x128xf32> to vector<2x128xf32>
    %c0_49 = arith.constant 0 : index
    %c0_50 = arith.constant 0 : index
    %171 = vector.load %arg4[%c0_49, %c0_50] : memref<32x128xf32, #tpu.memory_space<vmem>>, vector<32x128xf32>
    %cst_51 = arith.constant dense<0.000000e+00> : vector<2x128xf32>
    %172 = tpu.matmul %148, %171, %cst_51 {dimension_numbers = #tpu.dot_dimension_numbers<[1], [0], [0], [1], [0, 0, 1, 1], [], []>} : vector<2x32xf32>, vector<32x128xf32>, vector<2x128xf32> -> vector<2x128xf32>
    %173 = arith.addf %170, %172 : vector<2x128xf32>
    %174 = arith.negf %173 : vector<2x128xf32>
    %175 = math.exp %174 : vector<2x128xf32>
    %cst_52 = arith.constant 1.000000e+00 : f32
    %176 = vector.broadcast %cst_52 : f32 to vector<2x128xf32>
    %177 = arith.addf %176, %175 : vector<2x128xf32>
    %178 = arith.divf %176, %177 : vector<2x128xf32>
    %179 = math.tanh %173 : vector<2x128xf32>
    %180 = vector.extract_strided_slice %178 {offsets = [0, 0], sizes = [2, 32], strides = [1, 1]} : vector<2x128xf32> to vector<2x32xf32>
    %181 = vector.extract_strided_slice %178 {offsets = [0, 32], sizes = [2, 32], strides = [1, 1]} : vector<2x128xf32> to vector<2x32xf32>
    %182 = vector.extract_strided_slice %179 {offsets = [0, 64], sizes = [2, 32], strides = [1, 1]} : vector<2x128xf32> to vector<2x32xf32>
    %183 = vector.extract_strided_slice %178 {offsets = [0, 96], sizes = [2, 32], strides = [1, 1]} : vector<2x128xf32> to vector<2x32xf32>
    %184 = arith.mulf %181, %146 : vector<2x32xf32>
    %185 = arith.mulf %180, %182 : vector<2x32xf32>
    %186 = arith.addf %184, %185 : vector<2x32xf32>
    %187 = math.tanh %186 : vector<2x32xf32>
    %188 = arith.mulf %183, %187 : vector<2x32xf32>
    %189 = tpu.concatenate %188, %169 in 1 : vector<2x32xf32>, vector<2x32xf32> -> vector<2x64xf32>
    %c0_53 = arith.constant 0 : index
    %c0_54 = arith.constant 0 : index
    %190 = vector.load %arg6[%c0_53, %c0_54] : memref<64x128xf32, #tpu.memory_space<vmem>>, vector<64x128xf32>
    %cst_55 = arith.constant dense<0.000000e+00> : vector<2x128xf32>
    %191 = tpu.matmul %189, %190, %cst_55 {dimension_numbers = #tpu.dot_dimension_numbers<[1], [0], [0], [1], [0, 0, 1, 1], [], []>} : vector<2x64xf32>, vector<64x128xf32>, vector<2x128xf32> -> vector<2x128xf32>
    %c0_56 = arith.constant 0 : index
    %c0_57 = arith.constant 0 : index
    %192 = vector.load %arg7[%c0_56, %c0_57] : memref<1x128xf32, #tpu.memory_space<vmem>>, vector<1x128xf32>
    %193 = vector.broadcast %192 : vector<1x128xf32> to vector<2x128xf32>
    %194 = arith.addf %191, %193 : vector<2x128xf32>
    %195 = arith.negf %194 : vector<2x128xf32>
    %196 = math.exp %195 : vector<2x128xf32>
    %cst_58 = arith.constant 1.000000e+00 : f32
    %197 = vector.broadcast %cst_58 : f32 to vector<2x128xf32>
    %198 = arith.addf %197, %196 : vector<2x128xf32>
    %199 = arith.divf %197, %198 : vector<2x128xf32>
    %200 = math.tanh %194 : vector<2x128xf32>
    %201 = vector.extract_strided_slice %199 {offsets = [0, 0], sizes = [2, 32], strides = [1, 1]} : vector<2x128xf32> to vector<2x32xf32>
    %202 = vector.extract_strided_slice %199 {offsets = [0, 32], sizes = [2, 32], strides = [1, 1]} : vector<2x128xf32> to vector<2x32xf32>
    %203 = vector.extract_strided_slice %200 {offsets = [0, 64], sizes = [2, 32], strides = [1, 1]} : vector<2x128xf32> to vector<2x32xf32>
    %204 = vector.extract_strided_slice %199 {offsets = [0, 96], sizes = [2, 32], strides = [1, 1]} : vector<2x128xf32> to vector<2x32xf32>
    %205 = arith.mulf %202, %167 : vector<2x32xf32>
    %206 = arith.mulf %201, %203 : vector<2x32xf32>
    %207 = arith.addf %205, %206 : vector<2x32xf32>
    %208 = math.tanh %207 : vector<2x32xf32>
    %209 = arith.mulf %204, %208 : vector<2x32xf32>
    %210 = vector.extract_strided_slice %5 {offsets = [10, 0], sizes = [2, 128], strides = [1, 1]} : vector<16x128xf32> to vector<2x128xf32>
    %c0_59 = arith.constant 0 : index
    %c0_60 = arith.constant 0 : index
    %211 = vector.load %arg4[%c0_59, %c0_60] : memref<32x128xf32, #tpu.memory_space<vmem>>, vector<32x128xf32>
    %cst_61 = arith.constant dense<0.000000e+00> : vector<2x128xf32>
    %212 = tpu.matmul %188, %211, %cst_61 {dimension_numbers = #tpu.dot_dimension_numbers<[1], [0], [0], [1], [0, 0, 1, 1], [], []>} : vector<2x32xf32>, vector<32x128xf32>, vector<2x128xf32> -> vector<2x128xf32>
    %213 = arith.addf %210, %212 : vector<2x128xf32>
    %214 = arith.negf %213 : vector<2x128xf32>
    %215 = math.exp %214 : vector<2x128xf32>
    %cst_62 = arith.constant 1.000000e+00 : f32
    %216 = vector.broadcast %cst_62 : f32 to vector<2x128xf32>
    %217 = arith.addf %216, %215 : vector<2x128xf32>
    %218 = arith.divf %216, %217 : vector<2x128xf32>
    %219 = math.tanh %213 : vector<2x128xf32>
    %220 = vector.extract_strided_slice %218 {offsets = [0, 0], sizes = [2, 32], strides = [1, 1]} : vector<2x128xf32> to vector<2x32xf32>
    %221 = vector.extract_strided_slice %218 {offsets = [0, 32], sizes = [2, 32], strides = [1, 1]} : vector<2x128xf32> to vector<2x32xf32>
    %222 = vector.extract_strided_slice %219 {offsets = [0, 64], sizes = [2, 32], strides = [1, 1]} : vector<2x128xf32> to vector<2x32xf32>
    %223 = vector.extract_strided_slice %218 {offsets = [0, 96], sizes = [2, 32], strides = [1, 1]} : vector<2x128xf32> to vector<2x32xf32>
    %224 = arith.mulf %221, %186 : vector<2x32xf32>
    %225 = arith.mulf %220, %222 : vector<2x32xf32>
    %226 = arith.addf %224, %225 : vector<2x32xf32>
    %227 = math.tanh %226 : vector<2x32xf32>
    %228 = arith.mulf %223, %227 : vector<2x32xf32>
    %229 = tpu.concatenate %228, %209 in 1 : vector<2x32xf32>, vector<2x32xf32> -> vector<2x64xf32>
    %c0_63 = arith.constant 0 : index
    %c0_64 = arith.constant 0 : index
    %230 = vector.load %arg6[%c0_63, %c0_64] : memref<64x128xf32, #tpu.memory_space<vmem>>, vector<64x128xf32>
    %cst_65 = arith.constant dense<0.000000e+00> : vector<2x128xf32>
    %231 = tpu.matmul %229, %230, %cst_65 {dimension_numbers = #tpu.dot_dimension_numbers<[1], [0], [0], [1], [0, 0, 1, 1], [], []>} : vector<2x64xf32>, vector<64x128xf32>, vector<2x128xf32> -> vector<2x128xf32>
    %c0_66 = arith.constant 0 : index
    %c0_67 = arith.constant 0 : index
    %232 = vector.load %arg7[%c0_66, %c0_67] : memref<1x128xf32, #tpu.memory_space<vmem>>, vector<1x128xf32>
    %233 = vector.broadcast %232 : vector<1x128xf32> to vector<2x128xf32>
    %234 = arith.addf %231, %233 : vector<2x128xf32>
    %235 = arith.negf %234 : vector<2x128xf32>
    %236 = math.exp %235 : vector<2x128xf32>
    %cst_68 = arith.constant 1.000000e+00 : f32
    %237 = vector.broadcast %cst_68 : f32 to vector<2x128xf32>
    %238 = arith.addf %237, %236 : vector<2x128xf32>
    %239 = arith.divf %237, %238 : vector<2x128xf32>
    %240 = math.tanh %234 : vector<2x128xf32>
    %241 = vector.extract_strided_slice %239 {offsets = [0, 0], sizes = [2, 32], strides = [1, 1]} : vector<2x128xf32> to vector<2x32xf32>
    %242 = vector.extract_strided_slice %239 {offsets = [0, 32], sizes = [2, 32], strides = [1, 1]} : vector<2x128xf32> to vector<2x32xf32>
    %243 = vector.extract_strided_slice %240 {offsets = [0, 64], sizes = [2, 32], strides = [1, 1]} : vector<2x128xf32> to vector<2x32xf32>
    %244 = vector.extract_strided_slice %239 {offsets = [0, 96], sizes = [2, 32], strides = [1, 1]} : vector<2x128xf32> to vector<2x32xf32>
    %245 = arith.mulf %242, %207 : vector<2x32xf32>
    %246 = arith.mulf %241, %243 : vector<2x32xf32>
    %247 = arith.addf %245, %246 : vector<2x32xf32>
    %248 = math.tanh %247 : vector<2x32xf32>
    %249 = arith.mulf %244, %248 : vector<2x32xf32>
    %250 = vector.extract_strided_slice %5 {offsets = [12, 0], sizes = [2, 128], strides = [1, 1]} : vector<16x128xf32> to vector<2x128xf32>
    %c0_69 = arith.constant 0 : index
    %c0_70 = arith.constant 0 : index
    %251 = vector.load %arg4[%c0_69, %c0_70] : memref<32x128xf32, #tpu.memory_space<vmem>>, vector<32x128xf32>
    %cst_71 = arith.constant dense<0.000000e+00> : vector<2x128xf32>
    %252 = tpu.matmul %228, %251, %cst_71 {dimension_numbers = #tpu.dot_dimension_numbers<[1], [0], [0], [1], [0, 0, 1, 1], [], []>} : vector<2x32xf32>, vector<32x128xf32>, vector<2x128xf32> -> vector<2x128xf32>
    %253 = arith.addf %250, %252 : vector<2x128xf32>
    %254 = arith.negf %253 : vector<2x128xf32>
    %255 = math.exp %254 : vector<2x128xf32>
    %cst_72 = arith.constant 1.000000e+00 : f32
    %256 = vector.broadcast %cst_72 : f32 to vector<2x128xf32>
    %257 = arith.addf %256, %255 : vector<2x128xf32>
    %258 = arith.divf %256, %257 : vector<2x128xf32>
    %259 = math.tanh %253 : vector<2x128xf32>
    %260 = vector.extract_strided_slice %258 {offsets = [0, 0], sizes = [2, 32], strides = [1, 1]} : vector<2x128xf32> to vector<2x32xf32>
    %261 = vector.extract_strided_slice %258 {offsets = [0, 32], sizes = [2, 32], strides = [1, 1]} : vector<2x128xf32> to vector<2x32xf32>
    %262 = vector.extract_strided_slice %259 {offsets = [0, 64], sizes = [2, 32], strides = [1, 1]} : vector<2x128xf32> to vector<2x32xf32>
    %263 = vector.extract_strided_slice %258 {offsets = [0, 96], sizes = [2, 32], strides = [1, 1]} : vector<2x128xf32> to vector<2x32xf32>
    %264 = arith.mulf %261, %226 : vector<2x32xf32>
    %265 = arith.mulf %260, %262 : vector<2x32xf32>
    %266 = arith.addf %264, %265 : vector<2x32xf32>
    %267 = math.tanh %266 : vector<2x32xf32>
    %268 = arith.mulf %263, %267 : vector<2x32xf32>
    %269 = tpu.concatenate %268, %249 in 1 : vector<2x32xf32>, vector<2x32xf32> -> vector<2x64xf32>
    %c0_73 = arith.constant 0 : index
    %c0_74 = arith.constant 0 : index
    %270 = vector.load %arg6[%c0_73, %c0_74] : memref<64x128xf32, #tpu.memory_space<vmem>>, vector<64x128xf32>
    %cst_75 = arith.constant dense<0.000000e+00> : vector<2x128xf32>
    %271 = tpu.matmul %269, %270, %cst_75 {dimension_numbers = #tpu.dot_dimension_numbers<[1], [0], [0], [1], [0, 0, 1, 1], [], []>} : vector<2x64xf32>, vector<64x128xf32>, vector<2x128xf32> -> vector<2x128xf32>
    %c0_76 = arith.constant 0 : index
    %c0_77 = arith.constant 0 : index
    %272 = vector.load %arg7[%c0_76, %c0_77] : memref<1x128xf32, #tpu.memory_space<vmem>>, vector<1x128xf32>
    %273 = vector.broadcast %272 : vector<1x128xf32> to vector<2x128xf32>
    %274 = arith.addf %271, %273 : vector<2x128xf32>
    %275 = arith.negf %274 : vector<2x128xf32>
    %276 = math.exp %275 : vector<2x128xf32>
    %cst_78 = arith.constant 1.000000e+00 : f32
    %277 = vector.broadcast %cst_78 : f32 to vector<2x128xf32>
    %278 = arith.addf %277, %276 : vector<2x128xf32>
    %279 = arith.divf %277, %278 : vector<2x128xf32>
    %280 = math.tanh %274 : vector<2x128xf32>
    %281 = vector.extract_strided_slice %279 {offsets = [0, 0], sizes = [2, 32], strides = [1, 1]} : vector<2x128xf32> to vector<2x32xf32>
    %282 = vector.extract_strided_slice %279 {offsets = [0, 32], sizes = [2, 32], strides = [1, 1]} : vector<2x128xf32> to vector<2x32xf32>
    %283 = vector.extract_strided_slice %280 {offsets = [0, 64], sizes = [2, 32], strides = [1, 1]} : vector<2x128xf32> to vector<2x32xf32>
    %284 = vector.extract_strided_slice %279 {offsets = [0, 96], sizes = [2, 32], strides = [1, 1]} : vector<2x128xf32> to vector<2x32xf32>
    %285 = arith.mulf %282, %247 : vector<2x32xf32>
    %286 = arith.mulf %281, %283 : vector<2x32xf32>
    %287 = arith.addf %285, %286 : vector<2x32xf32>
    %288 = math.tanh %287 : vector<2x32xf32>
    %289 = arith.mulf %284, %288 : vector<2x32xf32>
    %290 = vector.extract_strided_slice %5 {offsets = [14, 0], sizes = [2, 128], strides = [1, 1]} : vector<16x128xf32> to vector<2x128xf32>
    %c0_79 = arith.constant 0 : index
    %c0_80 = arith.constant 0 : index
    %291 = vector.load %arg4[%c0_79, %c0_80] : memref<32x128xf32, #tpu.memory_space<vmem>>, vector<32x128xf32>
    %cst_81 = arith.constant dense<0.000000e+00> : vector<2x128xf32>
    %292 = tpu.matmul %268, %291, %cst_81 {dimension_numbers = #tpu.dot_dimension_numbers<[1], [0], [0], [1], [0, 0, 1, 1], [], []>} : vector<2x32xf32>, vector<32x128xf32>, vector<2x128xf32> -> vector<2x128xf32>
    %293 = arith.addf %290, %292 : vector<2x128xf32>
    %294 = arith.negf %293 : vector<2x128xf32>
    %295 = math.exp %294 : vector<2x128xf32>
    %cst_82 = arith.constant 1.000000e+00 : f32
    %296 = vector.broadcast %cst_82 : f32 to vector<2x128xf32>
    %297 = arith.addf %296, %295 : vector<2x128xf32>
    %298 = arith.divf %296, %297 : vector<2x128xf32>
    %299 = math.tanh %293 : vector<2x128xf32>
    %300 = vector.extract_strided_slice %298 {offsets = [0, 0], sizes = [2, 32], strides = [1, 1]} : vector<2x128xf32> to vector<2x32xf32>
    %301 = vector.extract_strided_slice %298 {offsets = [0, 32], sizes = [2, 32], strides = [1, 1]} : vector<2x128xf32> to vector<2x32xf32>
    %302 = vector.extract_strided_slice %299 {offsets = [0, 64], sizes = [2, 32], strides = [1, 1]} : vector<2x128xf32> to vector<2x32xf32>
    %303 = vector.extract_strided_slice %298 {offsets = [0, 96], sizes = [2, 32], strides = [1, 1]} : vector<2x128xf32> to vector<2x32xf32>
    %304 = arith.mulf %301, %266 : vector<2x32xf32>
    %305 = arith.mulf %300, %302 : vector<2x32xf32>
    %306 = arith.addf %304, %305 : vector<2x32xf32>
    %307 = math.tanh %306 : vector<2x32xf32>
    %308 = arith.mulf %303, %307 : vector<2x32xf32>
    %309 = tpu.concatenate %308, %289 in 1 : vector<2x32xf32>, vector<2x32xf32> -> vector<2x64xf32>
    %c0_83 = arith.constant 0 : index
    %c0_84 = arith.constant 0 : index
    %310 = vector.load %arg6[%c0_83, %c0_84] : memref<64x128xf32, #tpu.memory_space<vmem>>, vector<64x128xf32>
    %cst_85 = arith.constant dense<0.000000e+00> : vector<2x128xf32>
    %311 = tpu.matmul %309, %310, %cst_85 {dimension_numbers = #tpu.dot_dimension_numbers<[1], [0], [0], [1], [0, 0, 1, 1], [], []>} : vector<2x64xf32>, vector<64x128xf32>, vector<2x128xf32> -> vector<2x128xf32>
    %c0_86 = arith.constant 0 : index
    %c0_87 = arith.constant 0 : index
    %312 = vector.load %arg7[%c0_86, %c0_87] : memref<1x128xf32, #tpu.memory_space<vmem>>, vector<1x128xf32>
    %313 = vector.broadcast %312 : vector<1x128xf32> to vector<2x128xf32>
    %314 = arith.addf %311, %313 : vector<2x128xf32>
    %315 = arith.negf %314 : vector<2x128xf32>
    %316 = math.exp %315 : vector<2x128xf32>
    %cst_88 = arith.constant 1.000000e+00 : f32
    %317 = vector.broadcast %cst_88 : f32 to vector<2x128xf32>
    %318 = arith.addf %317, %316 : vector<2x128xf32>
    %319 = arith.divf %317, %318 : vector<2x128xf32>
    %320 = math.tanh %314 : vector<2x128xf32>
    %321 = vector.extract_strided_slice %319 {offsets = [0, 0], sizes = [2, 32], strides = [1, 1]} : vector<2x128xf32> to vector<2x32xf32>
    %322 = vector.extract_strided_slice %319 {offsets = [0, 32], sizes = [2, 32], strides = [1, 1]} : vector<2x128xf32> to vector<2x32xf32>
    %323 = vector.extract_strided_slice %320 {offsets = [0, 64], sizes = [2, 32], strides = [1, 1]} : vector<2x128xf32> to vector<2x32xf32>
    %324 = vector.extract_strided_slice %319 {offsets = [0, 96], sizes = [2, 32], strides = [1, 1]} : vector<2x128xf32> to vector<2x32xf32>
    %325 = arith.mulf %322, %287 : vector<2x32xf32>
    %326 = arith.mulf %321, %323 : vector<2x32xf32>
    %327 = arith.addf %325, %326 : vector<2x32xf32>
    %328 = math.tanh %327 : vector<2x32xf32>
    %329 = arith.mulf %324, %328 : vector<2x32xf32>
    %330 = tpu.concatenate %49, %89, %129, %169, %209, %249, %289, %329 in 0 : vector<2x32xf32>, vector<2x32xf32>, vector<2x32xf32>, vector<2x32xf32>, vector<2x32xf32>, vector<2x32xf32>, vector<2x32xf32>, vector<2x32xf32> -> vector<16x32xf32>
    %c0_89 = arith.constant 0 : index
    %c0_90 = arith.constant 0 : index
    %331 = vector.load %arg15[%c0_89, %c0_90] : memref<32x32xf32, #tpu.memory_space<vmem>>, vector<32x32xf32>
    %cst_91 = arith.constant dense<0.000000e+00> : vector<16x32xf32>
    %332 = tpu.matmul %330, %331, %cst_91 {dimension_numbers = #tpu.dot_dimension_numbers<[1], [0], [0], [1], [0, 0, 1, 1], [], []>} : vector<16x32xf32>, vector<32x32xf32>, vector<16x32xf32> -> vector<16x32xf32>
    %c0_92 = arith.constant 0 : index
    %c0_93 = arith.constant 0 : index
    %333 = vector.load %arg16[%c0_92, %c0_93] : memref<1x32xf32, #tpu.memory_space<vmem>>, vector<1x32xf32>
    %334 = vector.broadcast %333 : vector<1x32xf32> to vector<16x32xf32>
    %335 = arith.addf %332, %334 : vector<16x32xf32>
    %c0_94 = arith.constant 0 : index
    %c0_95 = arith.constant 0 : index
    %336 = vector.load %arg2[%c0_94, %c0_95] : memref<16x16xf32, #tpu.memory_space<vmem>>, vector<16x16xf32>
    %c0_96 = arith.constant 0 : index
    %c0_97 = arith.constant 0 : index
    %337 = vector.load %arg8[%c0_96, %c0_97] : memref<16x128xf32, #tpu.memory_space<vmem>>, vector<16x128xf32>
    %cst_98 = arith.constant dense<0.000000e+00> : vector<16x128xf32>
    %338 = tpu.matmul %336, %337, %cst_98 {dimension_numbers = #tpu.dot_dimension_numbers<[1], [0], [0], [1], [0, 0, 1, 1], [], []>} : vector<16x16xf32>, vector<16x128xf32>, vector<16x128xf32> -> vector<16x128xf32>
    %c0_99 = arith.constant 0 : index
    %c0_100 = arith.constant 0 : index
    %339 = vector.load %arg10[%c0_99, %c0_100] : memref<1x128xf32, #tpu.memory_space<vmem>>, vector<1x128xf32>
    %340 = vector.broadcast %339 : vector<1x128xf32> to vector<16x128xf32>
    %341 = arith.addf %338, %340 : vector<16x128xf32>
    %c0_101 = arith.constant 0 : index
    %c0_102 = arith.constant 0 : index
    %342 = vector.load %arg17[%c0_101, %c0_102] : memref<1x32xf32, #tpu.memory_space<vmem>>, vector<1x32xf32>
    %c0_103 = arith.constant 0 : index
    %c0_104 = arith.constant 0 : index
    %343 = vector.load %arg18[%c0_103, %c0_104] : memref<1x1xf32, #tpu.memory_space<vmem>>, vector<1x1xf32>
    %cst_105 = arith.constant 0.000000e+00 : f32
    %344 = vector.broadcast %cst_105 : f32 to vector<2x128xf32>
    %345 = vector.extract_strided_slice %341 {offsets = [0, 0], sizes = [2, 128], strides = [1, 1]} : vector<16x128xf32> to vector<2x128xf32>
    %c0_106 = arith.constant 0 : index
    %c0_107 = arith.constant 0 : index
    %346 = vector.load %arg9[%c0_106, %c0_107] : memref<32x128xf32, #tpu.memory_space<vmem>>, vector<32x128xf32>
    %cst_108 = arith.constant dense<0.000000e+00> : vector<2x128xf32>
    %347 = tpu.matmul %308, %346, %cst_108 {dimension_numbers = #tpu.dot_dimension_numbers<[1], [0], [0], [1], [0, 0, 1, 1], [], []>} : vector<2x32xf32>, vector<32x128xf32>, vector<2x128xf32> -> vector<2x128xf32>
    %348 = arith.addf %345, %347 : vector<2x128xf32>
    %349 = arith.negf %348 : vector<2x128xf32>
    %350 = math.exp %349 : vector<2x128xf32>
    %cst_109 = arith.constant 1.000000e+00 : f32
    %351 = vector.broadcast %cst_109 : f32 to vector<2x128xf32>
    %352 = arith.addf %351, %350 : vector<2x128xf32>
    %353 = arith.divf %351, %352 : vector<2x128xf32>
    %354 = math.tanh %348 : vector<2x128xf32>
    %355 = vector.extract_strided_slice %353 {offsets = [0, 0], sizes = [2, 32], strides = [1, 1]} : vector<2x128xf32> to vector<2x32xf32>
    %356 = vector.extract_strided_slice %353 {offsets = [0, 32], sizes = [2, 32], strides = [1, 1]} : vector<2x128xf32> to vector<2x32xf32>
    %357 = vector.extract_strided_slice %354 {offsets = [0, 64], sizes = [2, 32], strides = [1, 1]} : vector<2x128xf32> to vector<2x32xf32>
    %358 = vector.extract_strided_slice %353 {offsets = [0, 96], sizes = [2, 32], strides = [1, 1]} : vector<2x128xf32> to vector<2x32xf32>
    %359 = arith.mulf %356, %306 : vector<2x32xf32>
    %360 = arith.mulf %355, %357 : vector<2x32xf32>
    %361 = arith.addf %359, %360 : vector<2x32xf32>
    %362 = math.tanh %361 : vector<2x32xf32>
    %363 = arith.mulf %358, %362 : vector<2x32xf32>
    %364 = tpu.concatenate %363, %329 in 1 : vector<2x32xf32>, vector<2x32xf32> -> vector<2x64xf32>
    %c0_110 = arith.constant 0 : index
    %c0_111 = arith.constant 0 : index
    %365 = vector.load %arg11[%c0_110, %c0_111] : memref<64x128xf32, #tpu.memory_space<vmem>>, vector<64x128xf32>
    %cst_112 = arith.constant dense<0.000000e+00> : vector<2x128xf32>
    %366 = tpu.matmul %364, %365, %cst_112 {dimension_numbers = #tpu.dot_dimension_numbers<[1], [0], [0], [1], [0, 0, 1, 1], [], []>} : vector<2x64xf32>, vector<64x128xf32>, vector<2x128xf32> -> vector<2x128xf32>
    %c0_113 = arith.constant 0 : index
    %c0_114 = arith.constant 0 : index
    %367 = vector.load %arg12[%c0_113, %c0_114] : memref<1x128xf32, #tpu.memory_space<vmem>>, vector<1x128xf32>
    %368 = vector.broadcast %367 : vector<1x128xf32> to vector<2x128xf32>
    %369 = arith.addf %366, %368 : vector<2x128xf32>
    %370 = arith.negf %369 : vector<2x128xf32>
    %371 = math.exp %370 : vector<2x128xf32>
    %cst_115 = arith.constant 1.000000e+00 : f32
    %372 = vector.broadcast %cst_115 : f32 to vector<2x128xf32>
    %373 = arith.addf %372, %371 : vector<2x128xf32>
    %374 = arith.divf %372, %373 : vector<2x128xf32>
    %375 = math.tanh %369 : vector<2x128xf32>
    %376 = vector.extract_strided_slice %374 {offsets = [0, 0], sizes = [2, 32], strides = [1, 1]} : vector<2x128xf32> to vector<2x32xf32>
    %377 = vector.extract_strided_slice %374 {offsets = [0, 32], sizes = [2, 32], strides = [1, 1]} : vector<2x128xf32> to vector<2x32xf32>
    %378 = vector.extract_strided_slice %375 {offsets = [0, 64], sizes = [2, 32], strides = [1, 1]} : vector<2x128xf32> to vector<2x32xf32>
    %379 = vector.extract_strided_slice %374 {offsets = [0, 96], sizes = [2, 32], strides = [1, 1]} : vector<2x128xf32> to vector<2x32xf32>
    %380 = arith.mulf %377, %327 : vector<2x32xf32>
    %381 = arith.mulf %376, %378 : vector<2x32xf32>
    %382 = arith.addf %380, %381 : vector<2x32xf32>
    %383 = math.tanh %382 : vector<2x32xf32>
    %384 = arith.mulf %379, %383 : vector<2x32xf32>
    %c0_116 = arith.constant 0 : index
    %c0_117 = arith.constant 0 : index
    %385 = vector.load %arg13[%c0_116, %c0_117] : memref<32x32xf32, #tpu.memory_space<vmem>>, vector<32x32xf32>
    %cst_118 = arith.constant dense<0.000000e+00> : vector<2x32xf32>
    %386 = tpu.matmul %384, %385, %cst_118 {dimension_numbers = #tpu.dot_dimension_numbers<[1], [0], [0], [1], [0, 0, 1, 1], [], []>} : vector<2x32xf32>, vector<32x32xf32>, vector<2x32xf32> -> vector<2x32xf32>
    %c0_119 = arith.constant 0 : index
    %c0_120 = arith.constant 0 : index
    %387 = vector.load %arg14[%c0_119, %c0_120] : memref<1x32xf32, #tpu.memory_space<vmem>>, vector<1x32xf32>
    %388 = vector.broadcast %387 : vector<1x32xf32> to vector<2x32xf32>
    %389 = arith.addf %386, %388 : vector<2x32xf32>
    %390 = tpu.concatenate %389, %389, %389, %389, %389, %389, %389, %389 in 0 : vector<2x32xf32>, vector<2x32xf32>, vector<2x32xf32>, vector<2x32xf32>, vector<2x32xf32>, vector<2x32xf32>, vector<2x32xf32>, vector<2x32xf32> -> vector<16x32xf32>
    %391 = arith.addf %390, %335 : vector<16x32xf32>
    %392 = math.tanh %391 : vector<16x32xf32>
    %393 = vector.broadcast %342 : vector<1x32xf32> to vector<16x32xf32>
    %394 = arith.mulf %392, %393 : vector<16x32xf32>
    %cst_121 = arith.constant dense<0.000000e+00> : vector<16xf32>
    %395 = vector.multi_reduction <add>, %394, %cst_121 [1] : vector<16x32xf32> to vector<16xf32>
    %396 = vector.shape_cast %395 : vector<16xf32> to vector<16x1xf32>
    %397 = vector.broadcast %343 : vector<1x1xf32> to vector<16x1xf32>
    %398 = arith.addf %396, %397 : vector<16x1xf32>
    %399 = vector.extract_strided_slice %398 {offsets = [0, 0], sizes = [2, 1], strides = [1, 1]} : vector<16x1xf32> to vector<2x1xf32>
    %400 = vector.extract_strided_slice %398 {offsets = [2, 0], sizes = [2, 1], strides = [1, 1]} : vector<16x1xf32> to vector<2x1xf32>
    %401 = arith.maximumf %399, %400 : vector<2x1xf32>
    %402 = vector.extract_strided_slice %398 {offsets = [4, 0], sizes = [2, 1], strides = [1, 1]} : vector<16x1xf32> to vector<2x1xf32>
    %403 = arith.maximumf %401, %402 : vector<2x1xf32>
    %404 = vector.extract_strided_slice %398 {offsets = [6, 0], sizes = [2, 1], strides = [1, 1]} : vector<16x1xf32> to vector<2x1xf32>
    %405 = arith.maximumf %403, %404 : vector<2x1xf32>
    %406 = vector.extract_strided_slice %398 {offsets = [8, 0], sizes = [2, 1], strides = [1, 1]} : vector<16x1xf32> to vector<2x1xf32>
    %407 = arith.maximumf %405, %406 : vector<2x1xf32>
    %408 = vector.extract_strided_slice %398 {offsets = [10, 0], sizes = [2, 1], strides = [1, 1]} : vector<16x1xf32> to vector<2x1xf32>
    %409 = arith.maximumf %407, %408 : vector<2x1xf32>
    %410 = vector.extract_strided_slice %398 {offsets = [12, 0], sizes = [2, 1], strides = [1, 1]} : vector<16x1xf32> to vector<2x1xf32>
    %411 = arith.maximumf %409, %410 : vector<2x1xf32>
    %412 = vector.extract_strided_slice %398 {offsets = [14, 0], sizes = [2, 1], strides = [1, 1]} : vector<16x1xf32> to vector<2x1xf32>
    %413 = arith.maximumf %411, %412 : vector<2x1xf32>
    %414 = tpu.concatenate %413, %413, %413, %413, %413, %413, %413, %413 in 0 : vector<2x1xf32>, vector<2x1xf32>, vector<2x1xf32>, vector<2x1xf32>, vector<2x1xf32>, vector<2x1xf32>, vector<2x1xf32>, vector<2x1xf32> -> vector<16x1xf32>
    %415 = arith.subf %398, %414 : vector<16x1xf32>
    %416 = math.exp %415 : vector<16x1xf32>
    %417 = vector.extract_strided_slice %416 {offsets = [0, 0], sizes = [2, 1], strides = [1, 1]} : vector<16x1xf32> to vector<2x1xf32>
    %418 = vector.extract_strided_slice %416 {offsets = [2, 0], sizes = [2, 1], strides = [1, 1]} : vector<16x1xf32> to vector<2x1xf32>
    %419 = arith.addf %417, %418 : vector<2x1xf32>
    %420 = vector.extract_strided_slice %416 {offsets = [4, 0], sizes = [2, 1], strides = [1, 1]} : vector<16x1xf32> to vector<2x1xf32>
    %421 = arith.addf %419, %420 : vector<2x1xf32>
    %422 = vector.extract_strided_slice %416 {offsets = [6, 0], sizes = [2, 1], strides = [1, 1]} : vector<16x1xf32> to vector<2x1xf32>
    %423 = arith.addf %421, %422 : vector<2x1xf32>
    %424 = vector.extract_strided_slice %416 {offsets = [8, 0], sizes = [2, 1], strides = [1, 1]} : vector<16x1xf32> to vector<2x1xf32>
    %425 = arith.addf %423, %424 : vector<2x1xf32>
    %426 = vector.extract_strided_slice %416 {offsets = [10, 0], sizes = [2, 1], strides = [1, 1]} : vector<16x1xf32> to vector<2x1xf32>
    %427 = arith.addf %425, %426 : vector<2x1xf32>
    %428 = vector.extract_strided_slice %416 {offsets = [12, 0], sizes = [2, 1], strides = [1, 1]} : vector<16x1xf32> to vector<2x1xf32>
    %429 = arith.addf %427, %428 : vector<2x1xf32>
    %430 = vector.extract_strided_slice %416 {offsets = [14, 0], sizes = [2, 1], strides = [1, 1]} : vector<16x1xf32> to vector<2x1xf32>
    %431 = arith.addf %429, %430 : vector<2x1xf32>
    %432 = vector.broadcast %416 : vector<16x1xf32> to vector<16x32xf32>
    %433 = arith.mulf %432, %330 : vector<16x32xf32>
    %434 = vector.extract_strided_slice %433 {offsets = [0, 0], sizes = [2, 32], strides = [1, 1]} : vector<16x32xf32> to vector<2x32xf32>
    %435 = vector.extract_strided_slice %433 {offsets = [2, 0], sizes = [2, 32], strides = [1, 1]} : vector<16x32xf32> to vector<2x32xf32>
    %436 = arith.addf %434, %435 : vector<2x32xf32>
    %437 = vector.extract_strided_slice %433 {offsets = [4, 0], sizes = [2, 32], strides = [1, 1]} : vector<16x32xf32> to vector<2x32xf32>
    %438 = arith.addf %436, %437 : vector<2x32xf32>
    %439 = vector.extract_strided_slice %433 {offsets = [6, 0], sizes = [2, 32], strides = [1, 1]} : vector<16x32xf32> to vector<2x32xf32>
    %440 = arith.addf %438, %439 : vector<2x32xf32>
    %441 = vector.extract_strided_slice %433 {offsets = [8, 0], sizes = [2, 32], strides = [1, 1]} : vector<16x32xf32> to vector<2x32xf32>
    %442 = arith.addf %440, %441 : vector<2x32xf32>
    %443 = vector.extract_strided_slice %433 {offsets = [10, 0], sizes = [2, 32], strides = [1, 1]} : vector<16x32xf32> to vector<2x32xf32>
    %444 = arith.addf %442, %443 : vector<2x32xf32>
    %445 = vector.extract_strided_slice %433 {offsets = [12, 0], sizes = [2, 32], strides = [1, 1]} : vector<16x32xf32> to vector<2x32xf32>
    %446 = arith.addf %444, %445 : vector<2x32xf32>
    %447 = vector.extract_strided_slice %433 {offsets = [14, 0], sizes = [2, 32], strides = [1, 1]} : vector<16x32xf32> to vector<2x32xf32>
    %448 = arith.addf %446, %447 : vector<2x32xf32>
    %449 = vector.broadcast %431 : vector<2x1xf32> to vector<2x32xf32>
    %450 = arith.divf %448, %449 : vector<2x32xf32>
    %451 = tpu.concatenate %384, %450 in 1 : vector<2x32xf32>, vector<2x32xf32> -> vector<2x64xf32>
    %c0_122 = arith.constant 0 : index
    %c0_123 = arith.constant 0 : index
    %452 = vector.load %arg19[%c0_122, %c0_123] : memref<64x128xf32, #tpu.memory_space<vmem>>, vector<64x128xf32>
    %cst_124 = arith.constant dense<0.000000e+00> : vector<2x128xf32>
    %453 = tpu.matmul %451, %452, %cst_124 {dimension_numbers = #tpu.dot_dimension_numbers<[1], [0], [0], [1], [0, 0, 1, 1], [], []>} : vector<2x64xf32>, vector<64x128xf32>, vector<2x128xf32> -> vector<2x128xf32>
    %c0_125 = arith.constant 0 : index
    %c0_126 = arith.constant 0 : index
    %454 = vector.load %arg20[%c0_125, %c0_126] : memref<1x128xf32, #tpu.memory_space<vmem>>, vector<1x128xf32>
    %455 = vector.broadcast %454 : vector<1x128xf32> to vector<2x128xf32>
    %456 = arith.addf %453, %455 : vector<2x128xf32>
    %457 = vector.extract_strided_slice %341 {offsets = [2, 0], sizes = [2, 128], strides = [1, 1]} : vector<16x128xf32> to vector<2x128xf32>
    %c0_127 = arith.constant 0 : index
    %c0_128 = arith.constant 0 : index
    %458 = vector.load %arg9[%c0_127, %c0_128] : memref<32x128xf32, #tpu.memory_space<vmem>>, vector<32x128xf32>
    %cst_129 = arith.constant dense<0.000000e+00> : vector<2x128xf32>
    %459 = tpu.matmul %363, %458, %cst_129 {dimension_numbers = #tpu.dot_dimension_numbers<[1], [0], [0], [1], [0, 0, 1, 1], [], []>} : vector<2x32xf32>, vector<32x128xf32>, vector<2x128xf32> -> vector<2x128xf32>
    %460 = arith.addf %457, %459 : vector<2x128xf32>
    %461 = arith.negf %460 : vector<2x128xf32>
    %462 = math.exp %461 : vector<2x128xf32>
    %cst_130 = arith.constant 1.000000e+00 : f32
    %463 = vector.broadcast %cst_130 : f32 to vector<2x128xf32>
    %464 = arith.addf %463, %462 : vector<2x128xf32>
    %465 = arith.divf %463, %464 : vector<2x128xf32>
    %466 = math.tanh %460 : vector<2x128xf32>
    %467 = vector.extract_strided_slice %465 {offsets = [0, 0], sizes = [2, 32], strides = [1, 1]} : vector<2x128xf32> to vector<2x32xf32>
    %468 = vector.extract_strided_slice %465 {offsets = [0, 32], sizes = [2, 32], strides = [1, 1]} : vector<2x128xf32> to vector<2x32xf32>
    %469 = vector.extract_strided_slice %466 {offsets = [0, 64], sizes = [2, 32], strides = [1, 1]} : vector<2x128xf32> to vector<2x32xf32>
    %470 = vector.extract_strided_slice %465 {offsets = [0, 96], sizes = [2, 32], strides = [1, 1]} : vector<2x128xf32> to vector<2x32xf32>
    %471 = arith.mulf %468, %361 : vector<2x32xf32>
    %472 = arith.mulf %467, %469 : vector<2x32xf32>
    %473 = arith.addf %471, %472 : vector<2x32xf32>
    %474 = math.tanh %473 : vector<2x32xf32>
    %475 = arith.mulf %470, %474 : vector<2x32xf32>
    %476 = tpu.concatenate %475, %384 in 1 : vector<2x32xf32>, vector<2x32xf32> -> vector<2x64xf32>
    %c0_131 = arith.constant 0 : index
    %c0_132 = arith.constant 0 : index
    %477 = vector.load %arg11[%c0_131, %c0_132] : memref<64x128xf32, #tpu.memory_space<vmem>>, vector<64x128xf32>
    %cst_133 = arith.constant dense<0.000000e+00> : vector<2x128xf32>
    %478 = tpu.matmul %476, %477, %cst_133 {dimension_numbers = #tpu.dot_dimension_numbers<[1], [0], [0], [1], [0, 0, 1, 1], [], []>} : vector<2x64xf32>, vector<64x128xf32>, vector<2x128xf32> -> vector<2x128xf32>
    %c0_134 = arith.constant 0 : index
    %c0_135 = arith.constant 0 : index
    %479 = vector.load %arg12[%c0_134, %c0_135] : memref<1x128xf32, #tpu.memory_space<vmem>>, vector<1x128xf32>
    %480 = vector.broadcast %479 : vector<1x128xf32> to vector<2x128xf32>
    %481 = arith.addf %478, %480 : vector<2x128xf32>
    %482 = arith.negf %481 : vector<2x128xf32>
    %483 = math.exp %482 : vector<2x128xf32>
    %cst_136 = arith.constant 1.000000e+00 : f32
    %484 = vector.broadcast %cst_136 : f32 to vector<2x128xf32>
    %485 = arith.addf %484, %483 : vector<2x128xf32>
    %486 = arith.divf %484, %485 : vector<2x128xf32>
    %487 = math.tanh %481 : vector<2x128xf32>
    %488 = vector.extract_strided_slice %486 {offsets = [0, 0], sizes = [2, 32], strides = [1, 1]} : vector<2x128xf32> to vector<2x32xf32>
    %489 = vector.extract_strided_slice %486 {offsets = [0, 32], sizes = [2, 32], strides = [1, 1]} : vector<2x128xf32> to vector<2x32xf32>
    %490 = vector.extract_strided_slice %487 {offsets = [0, 64], sizes = [2, 32], strides = [1, 1]} : vector<2x128xf32> to vector<2x32xf32>
    %491 = vector.extract_strided_slice %486 {offsets = [0, 96], sizes = [2, 32], strides = [1, 1]} : vector<2x128xf32> to vector<2x32xf32>
    %492 = arith.mulf %489, %382 : vector<2x32xf32>
    %493 = arith.mulf %488, %490 : vector<2x32xf32>
    %494 = arith.addf %492, %493 : vector<2x32xf32>
    %495 = math.tanh %494 : vector<2x32xf32>
    %496 = arith.mulf %491, %495 : vector<2x32xf32>
    %c0_137 = arith.constant 0 : index
    %c0_138 = arith.constant 0 : index
    %497 = vector.load %arg13[%c0_137, %c0_138] : memref<32x32xf32, #tpu.memory_space<vmem>>, vector<32x32xf32>
    %cst_139 = arith.constant dense<0.000000e+00> : vector<2x32xf32>
    %498 = tpu.matmul %496, %497, %cst_139 {dimension_numbers = #tpu.dot_dimension_numbers<[1], [0], [0], [1], [0, 0, 1, 1], [], []>} : vector<2x32xf32>, vector<32x32xf32>, vector<2x32xf32> -> vector<2x32xf32>
    %c0_140 = arith.constant 0 : index
    %c0_141 = arith.constant 0 : index
    %499 = vector.load %arg14[%c0_140, %c0_141] : memref<1x32xf32, #tpu.memory_space<vmem>>, vector<1x32xf32>
    %500 = vector.broadcast %499 : vector<1x32xf32> to vector<2x32xf32>
    %501 = arith.addf %498, %500 : vector<2x32xf32>
    %502 = tpu.concatenate %501, %501, %501, %501, %501, %501, %501, %501 in 0 : vector<2x32xf32>, vector<2x32xf32>, vector<2x32xf32>, vector<2x32xf32>, vector<2x32xf32>, vector<2x32xf32>, vector<2x32xf32>, vector<2x32xf32> -> vector<16x32xf32>
    %503 = arith.addf %502, %335 : vector<16x32xf32>
    %504 = math.tanh %503 : vector<16x32xf32>
    %505 = vector.broadcast %342 : vector<1x32xf32> to vector<16x32xf32>
    %506 = arith.mulf %504, %505 : vector<16x32xf32>
    %cst_142 = arith.constant dense<0.000000e+00> : vector<16xf32>
    %507 = vector.multi_reduction <add>, %506, %cst_142 [1] : vector<16x32xf32> to vector<16xf32>
    %508 = vector.shape_cast %507 : vector<16xf32> to vector<16x1xf32>
    %509 = vector.broadcast %343 : vector<1x1xf32> to vector<16x1xf32>
    %510 = arith.addf %508, %509 : vector<16x1xf32>
    %511 = vector.extract_strided_slice %510 {offsets = [0, 0], sizes = [2, 1], strides = [1, 1]} : vector<16x1xf32> to vector<2x1xf32>
    %512 = vector.extract_strided_slice %510 {offsets = [2, 0], sizes = [2, 1], strides = [1, 1]} : vector<16x1xf32> to vector<2x1xf32>
    %513 = arith.maximumf %511, %512 : vector<2x1xf32>
    %514 = vector.extract_strided_slice %510 {offsets = [4, 0], sizes = [2, 1], strides = [1, 1]} : vector<16x1xf32> to vector<2x1xf32>
    %515 = arith.maximumf %513, %514 : vector<2x1xf32>
    %516 = vector.extract_strided_slice %510 {offsets = [6, 0], sizes = [2, 1], strides = [1, 1]} : vector<16x1xf32> to vector<2x1xf32>
    %517 = arith.maximumf %515, %516 : vector<2x1xf32>
    %518 = vector.extract_strided_slice %510 {offsets = [8, 0], sizes = [2, 1], strides = [1, 1]} : vector<16x1xf32> to vector<2x1xf32>
    %519 = arith.maximumf %517, %518 : vector<2x1xf32>
    %520 = vector.extract_strided_slice %510 {offsets = [10, 0], sizes = [2, 1], strides = [1, 1]} : vector<16x1xf32> to vector<2x1xf32>
    %521 = arith.maximumf %519, %520 : vector<2x1xf32>
    %522 = vector.extract_strided_slice %510 {offsets = [12, 0], sizes = [2, 1], strides = [1, 1]} : vector<16x1xf32> to vector<2x1xf32>
    %523 = arith.maximumf %521, %522 : vector<2x1xf32>
    %524 = vector.extract_strided_slice %510 {offsets = [14, 0], sizes = [2, 1], strides = [1, 1]} : vector<16x1xf32> to vector<2x1xf32>
    %525 = arith.maximumf %523, %524 : vector<2x1xf32>
    %526 = tpu.concatenate %525, %525, %525, %525, %525, %525, %525, %525 in 0 : vector<2x1xf32>, vector<2x1xf32>, vector<2x1xf32>, vector<2x1xf32>, vector<2x1xf32>, vector<2x1xf32>, vector<2x1xf32>, vector<2x1xf32> -> vector<16x1xf32>
    %527 = arith.subf %510, %526 : vector<16x1xf32>
    %528 = math.exp %527 : vector<16x1xf32>
    %529 = vector.extract_strided_slice %528 {offsets = [0, 0], sizes = [2, 1], strides = [1, 1]} : vector<16x1xf32> to vector<2x1xf32>
    %530 = vector.extract_strided_slice %528 {offsets = [2, 0], sizes = [2, 1], strides = [1, 1]} : vector<16x1xf32> to vector<2x1xf32>
    %531 = arith.addf %529, %530 : vector<2x1xf32>
    %532 = vector.extract_strided_slice %528 {offsets = [4, 0], sizes = [2, 1], strides = [1, 1]} : vector<16x1xf32> to vector<2x1xf32>
    %533 = arith.addf %531, %532 : vector<2x1xf32>
    %534 = vector.extract_strided_slice %528 {offsets = [6, 0], sizes = [2, 1], strides = [1, 1]} : vector<16x1xf32> to vector<2x1xf32>
    %535 = arith.addf %533, %534 : vector<2x1xf32>
    %536 = vector.extract_strided_slice %528 {offsets = [8, 0], sizes = [2, 1], strides = [1, 1]} : vector<16x1xf32> to vector<2x1xf32>
    %537 = arith.addf %535, %536 : vector<2x1xf32>
    %538 = vector.extract_strided_slice %528 {offsets = [10, 0], sizes = [2, 1], strides = [1, 1]} : vector<16x1xf32> to vector<2x1xf32>
    %539 = arith.addf %537, %538 : vector<2x1xf32>
    %540 = vector.extract_strided_slice %528 {offsets = [12, 0], sizes = [2, 1], strides = [1, 1]} : vector<16x1xf32> to vector<2x1xf32>
    %541 = arith.addf %539, %540 : vector<2x1xf32>
    %542 = vector.extract_strided_slice %528 {offsets = [14, 0], sizes = [2, 1], strides = [1, 1]} : vector<16x1xf32> to vector<2x1xf32>
    %543 = arith.addf %541, %542 : vector<2x1xf32>
    %544 = vector.broadcast %528 : vector<16x1xf32> to vector<16x32xf32>
    %545 = arith.mulf %544, %330 : vector<16x32xf32>
    %546 = vector.extract_strided_slice %545 {offsets = [0, 0], sizes = [2, 32], strides = [1, 1]} : vector<16x32xf32> to vector<2x32xf32>
    %547 = vector.extract_strided_slice %545 {offsets = [2, 0], sizes = [2, 32], strides = [1, 1]} : vector<16x32xf32> to vector<2x32xf32>
    %548 = arith.addf %546, %547 : vector<2x32xf32>
    %549 = vector.extract_strided_slice %545 {offsets = [4, 0], sizes = [2, 32], strides = [1, 1]} : vector<16x32xf32> to vector<2x32xf32>
    %550 = arith.addf %548, %549 : vector<2x32xf32>
    %551 = vector.extract_strided_slice %545 {offsets = [6, 0], sizes = [2, 32], strides = [1, 1]} : vector<16x32xf32> to vector<2x32xf32>
    %552 = arith.addf %550, %551 : vector<2x32xf32>
    %553 = vector.extract_strided_slice %545 {offsets = [8, 0], sizes = [2, 32], strides = [1, 1]} : vector<16x32xf32> to vector<2x32xf32>
    %554 = arith.addf %552, %553 : vector<2x32xf32>
    %555 = vector.extract_strided_slice %545 {offsets = [10, 0], sizes = [2, 32], strides = [1, 1]} : vector<16x32xf32> to vector<2x32xf32>
    %556 = arith.addf %554, %555 : vector<2x32xf32>
    %557 = vector.extract_strided_slice %545 {offsets = [12, 0], sizes = [2, 32], strides = [1, 1]} : vector<16x32xf32> to vector<2x32xf32>
    %558 = arith.addf %556, %557 : vector<2x32xf32>
    %559 = vector.extract_strided_slice %545 {offsets = [14, 0], sizes = [2, 32], strides = [1, 1]} : vector<16x32xf32> to vector<2x32xf32>
    %560 = arith.addf %558, %559 : vector<2x32xf32>
    %561 = vector.broadcast %543 : vector<2x1xf32> to vector<2x32xf32>
    %562 = arith.divf %560, %561 : vector<2x32xf32>
    %563 = tpu.concatenate %496, %562 in 1 : vector<2x32xf32>, vector<2x32xf32> -> vector<2x64xf32>
    %c0_143 = arith.constant 0 : index
    %c0_144 = arith.constant 0 : index
    %564 = vector.load %arg19[%c0_143, %c0_144] : memref<64x128xf32, #tpu.memory_space<vmem>>, vector<64x128xf32>
    %cst_145 = arith.constant dense<0.000000e+00> : vector<2x128xf32>
    %565 = tpu.matmul %563, %564, %cst_145 {dimension_numbers = #tpu.dot_dimension_numbers<[1], [0], [0], [1], [0, 0, 1, 1], [], []>} : vector<2x64xf32>, vector<64x128xf32>, vector<2x128xf32> -> vector<2x128xf32>
    %c0_146 = arith.constant 0 : index
    %c0_147 = arith.constant 0 : index
    %566 = vector.load %arg20[%c0_146, %c0_147] : memref<1x128xf32, #tpu.memory_space<vmem>>, vector<1x128xf32>
    %567 = vector.broadcast %566 : vector<1x128xf32> to vector<2x128xf32>
    %568 = arith.addf %565, %567 : vector<2x128xf32>
    %569 = vector.extract_strided_slice %341 {offsets = [4, 0], sizes = [2, 128], strides = [1, 1]} : vector<16x128xf32> to vector<2x128xf32>
    %c0_148 = arith.constant 0 : index
    %c0_149 = arith.constant 0 : index
    %570 = vector.load %arg9[%c0_148, %c0_149] : memref<32x128xf32, #tpu.memory_space<vmem>>, vector<32x128xf32>
    %cst_150 = arith.constant dense<0.000000e+00> : vector<2x128xf32>
    %571 = tpu.matmul %475, %570, %cst_150 {dimension_numbers = #tpu.dot_dimension_numbers<[1], [0], [0], [1], [0, 0, 1, 1], [], []>} : vector<2x32xf32>, vector<32x128xf32>, vector<2x128xf32> -> vector<2x128xf32>
    %572 = arith.addf %569, %571 : vector<2x128xf32>
    %573 = arith.negf %572 : vector<2x128xf32>
    %574 = math.exp %573 : vector<2x128xf32>
    %cst_151 = arith.constant 1.000000e+00 : f32
    %575 = vector.broadcast %cst_151 : f32 to vector<2x128xf32>
    %576 = arith.addf %575, %574 : vector<2x128xf32>
    %577 = arith.divf %575, %576 : vector<2x128xf32>
    %578 = math.tanh %572 : vector<2x128xf32>
    %579 = vector.extract_strided_slice %577 {offsets = [0, 0], sizes = [2, 32], strides = [1, 1]} : vector<2x128xf32> to vector<2x32xf32>
    %580 = vector.extract_strided_slice %577 {offsets = [0, 32], sizes = [2, 32], strides = [1, 1]} : vector<2x128xf32> to vector<2x32xf32>
    %581 = vector.extract_strided_slice %578 {offsets = [0, 64], sizes = [2, 32], strides = [1, 1]} : vector<2x128xf32> to vector<2x32xf32>
    %582 = vector.extract_strided_slice %577 {offsets = [0, 96], sizes = [2, 32], strides = [1, 1]} : vector<2x128xf32> to vector<2x32xf32>
    %583 = arith.mulf %580, %473 : vector<2x32xf32>
    %584 = arith.mulf %579, %581 : vector<2x32xf32>
    %585 = arith.addf %583, %584 : vector<2x32xf32>
    %586 = math.tanh %585 : vector<2x32xf32>
    %587 = arith.mulf %582, %586 : vector<2x32xf32>
    %588 = tpu.concatenate %587, %496 in 1 : vector<2x32xf32>, vector<2x32xf32> -> vector<2x64xf32>
    %c0_152 = arith.constant 0 : index
    %c0_153 = arith.constant 0 : index
    %589 = vector.load %arg11[%c0_152, %c0_153] : memref<64x128xf32, #tpu.memory_space<vmem>>, vector<64x128xf32>
    %cst_154 = arith.constant dense<0.000000e+00> : vector<2x128xf32>
    %590 = tpu.matmul %588, %589, %cst_154 {dimension_numbers = #tpu.dot_dimension_numbers<[1], [0], [0], [1], [0, 0, 1, 1], [], []>} : vector<2x64xf32>, vector<64x128xf32>, vector<2x128xf32> -> vector<2x128xf32>
    %c0_155 = arith.constant 0 : index
    %c0_156 = arith.constant 0 : index
    %591 = vector.load %arg12[%c0_155, %c0_156] : memref<1x128xf32, #tpu.memory_space<vmem>>, vector<1x128xf32>
    %592 = vector.broadcast %591 : vector<1x128xf32> to vector<2x128xf32>
    %593 = arith.addf %590, %592 : vector<2x128xf32>
    %594 = arith.negf %593 : vector<2x128xf32>
    %595 = math.exp %594 : vector<2x128xf32>
    %cst_157 = arith.constant 1.000000e+00 : f32
    %596 = vector.broadcast %cst_157 : f32 to vector<2x128xf32>
    %597 = arith.addf %596, %595 : vector<2x128xf32>
    %598 = arith.divf %596, %597 : vector<2x128xf32>
    %599 = math.tanh %593 : vector<2x128xf32>
    %600 = vector.extract_strided_slice %598 {offsets = [0, 0], sizes = [2, 32], strides = [1, 1]} : vector<2x128xf32> to vector<2x32xf32>
    %601 = vector.extract_strided_slice %598 {offsets = [0, 32], sizes = [2, 32], strides = [1, 1]} : vector<2x128xf32> to vector<2x32xf32>
    %602 = vector.extract_strided_slice %599 {offsets = [0, 64], sizes = [2, 32], strides = [1, 1]} : vector<2x128xf32> to vector<2x32xf32>
    %603 = vector.extract_strided_slice %598 {offsets = [0, 96], sizes = [2, 32], strides = [1, 1]} : vector<2x128xf32> to vector<2x32xf32>
    %604 = arith.mulf %601, %494 : vector<2x32xf32>
    %605 = arith.mulf %600, %602 : vector<2x32xf32>
    %606 = arith.addf %604, %605 : vector<2x32xf32>
    %607 = math.tanh %606 : vector<2x32xf32>
    %608 = arith.mulf %603, %607 : vector<2x32xf32>
    %c0_158 = arith.constant 0 : index
    %c0_159 = arith.constant 0 : index
    %609 = vector.load %arg13[%c0_158, %c0_159] : memref<32x32xf32, #tpu.memory_space<vmem>>, vector<32x32xf32>
    %cst_160 = arith.constant dense<0.000000e+00> : vector<2x32xf32>
    %610 = tpu.matmul %608, %609, %cst_160 {dimension_numbers = #tpu.dot_dimension_numbers<[1], [0], [0], [1], [0, 0, 1, 1], [], []>} : vector<2x32xf32>, vector<32x32xf32>, vector<2x32xf32> -> vector<2x32xf32>
    %c0_161 = arith.constant 0 : index
    %c0_162 = arith.constant 0 : index
    %611 = vector.load %arg14[%c0_161, %c0_162] : memref<1x32xf32, #tpu.memory_space<vmem>>, vector<1x32xf32>
    %612 = vector.broadcast %611 : vector<1x32xf32> to vector<2x32xf32>
    %613 = arith.addf %610, %612 : vector<2x32xf32>
    %614 = tpu.concatenate %613, %613, %613, %613, %613, %613, %613, %613 in 0 : vector<2x32xf32>, vector<2x32xf32>, vector<2x32xf32>, vector<2x32xf32>, vector<2x32xf32>, vector<2x32xf32>, vector<2x32xf32>, vector<2x32xf32> -> vector<16x32xf32>
    %615 = arith.addf %614, %335 : vector<16x32xf32>
    %616 = math.tanh %615 : vector<16x32xf32>
    %617 = vector.broadcast %342 : vector<1x32xf32> to vector<16x32xf32>
    %618 = arith.mulf %616, %617 : vector<16x32xf32>
    %cst_163 = arith.constant dense<0.000000e+00> : vector<16xf32>
    %619 = vector.multi_reduction <add>, %618, %cst_163 [1] : vector<16x32xf32> to vector<16xf32>
    %620 = vector.shape_cast %619 : vector<16xf32> to vector<16x1xf32>
    %621 = vector.broadcast %343 : vector<1x1xf32> to vector<16x1xf32>
    %622 = arith.addf %620, %621 : vector<16x1xf32>
    %623 = vector.extract_strided_slice %622 {offsets = [0, 0], sizes = [2, 1], strides = [1, 1]} : vector<16x1xf32> to vector<2x1xf32>
    %624 = vector.extract_strided_slice %622 {offsets = [2, 0], sizes = [2, 1], strides = [1, 1]} : vector<16x1xf32> to vector<2x1xf32>
    %625 = arith.maximumf %623, %624 : vector<2x1xf32>
    %626 = vector.extract_strided_slice %622 {offsets = [4, 0], sizes = [2, 1], strides = [1, 1]} : vector<16x1xf32> to vector<2x1xf32>
    %627 = arith.maximumf %625, %626 : vector<2x1xf32>
    %628 = vector.extract_strided_slice %622 {offsets = [6, 0], sizes = [2, 1], strides = [1, 1]} : vector<16x1xf32> to vector<2x1xf32>
    %629 = arith.maximumf %627, %628 : vector<2x1xf32>
    %630 = vector.extract_strided_slice %622 {offsets = [8, 0], sizes = [2, 1], strides = [1, 1]} : vector<16x1xf32> to vector<2x1xf32>
    %631 = arith.maximumf %629, %630 : vector<2x1xf32>
    %632 = vector.extract_strided_slice %622 {offsets = [10, 0], sizes = [2, 1], strides = [1, 1]} : vector<16x1xf32> to vector<2x1xf32>
    %633 = arith.maximumf %631, %632 : vector<2x1xf32>
    %634 = vector.extract_strided_slice %622 {offsets = [12, 0], sizes = [2, 1], strides = [1, 1]} : vector<16x1xf32> to vector<2x1xf32>
    %635 = arith.maximumf %633, %634 : vector<2x1xf32>
    %636 = vector.extract_strided_slice %622 {offsets = [14, 0], sizes = [2, 1], strides = [1, 1]} : vector<16x1xf32> to vector<2x1xf32>
    %637 = arith.maximumf %635, %636 : vector<2x1xf32>
    %638 = tpu.concatenate %637, %637, %637, %637, %637, %637, %637, %637 in 0 : vector<2x1xf32>, vector<2x1xf32>, vector<2x1xf32>, vector<2x1xf32>, vector<2x1xf32>, vector<2x1xf32>, vector<2x1xf32>, vector<2x1xf32> -> vector<16x1xf32>
    %639 = arith.subf %622, %638 : vector<16x1xf32>
    %640 = math.exp %639 : vector<16x1xf32>
    %641 = vector.extract_strided_slice %640 {offsets = [0, 0], sizes = [2, 1], strides = [1, 1]} : vector<16x1xf32> to vector<2x1xf32>
    %642 = vector.extract_strided_slice %640 {offsets = [2, 0], sizes = [2, 1], strides = [1, 1]} : vector<16x1xf32> to vector<2x1xf32>
    %643 = arith.addf %641, %642 : vector<2x1xf32>
    %644 = vector.extract_strided_slice %640 {offsets = [4, 0], sizes = [2, 1], strides = [1, 1]} : vector<16x1xf32> to vector<2x1xf32>
    %645 = arith.addf %643, %644 : vector<2x1xf32>
    %646 = vector.extract_strided_slice %640 {offsets = [6, 0], sizes = [2, 1], strides = [1, 1]} : vector<16x1xf32> to vector<2x1xf32>
    %647 = arith.addf %645, %646 : vector<2x1xf32>
    %648 = vector.extract_strided_slice %640 {offsets = [8, 0], sizes = [2, 1], strides = [1, 1]} : vector<16x1xf32> to vector<2x1xf32>
    %649 = arith.addf %647, %648 : vector<2x1xf32>
    %650 = vector.extract_strided_slice %640 {offsets = [10, 0], sizes = [2, 1], strides = [1, 1]} : vector<16x1xf32> to vector<2x1xf32>
    %651 = arith.addf %649, %650 : vector<2x1xf32>
    %652 = vector.extract_strided_slice %640 {offsets = [12, 0], sizes = [2, 1], strides = [1, 1]} : vector<16x1xf32> to vector<2x1xf32>
    %653 = arith.addf %651, %652 : vector<2x1xf32>
    %654 = vector.extract_strided_slice %640 {offsets = [14, 0], sizes = [2, 1], strides = [1, 1]} : vector<16x1xf32> to vector<2x1xf32>
    %655 = arith.addf %653, %654 : vector<2x1xf32>
    %656 = vector.broadcast %640 : vector<16x1xf32> to vector<16x32xf32>
    %657 = arith.mulf %656, %330 : vector<16x32xf32>
    %658 = vector.extract_strided_slice %657 {offsets = [0, 0], sizes = [2, 32], strides = [1, 1]} : vector<16x32xf32> to vector<2x32xf32>
    %659 = vector.extract_strided_slice %657 {offsets = [2, 0], sizes = [2, 32], strides = [1, 1]} : vector<16x32xf32> to vector<2x32xf32>
    %660 = arith.addf %658, %659 : vector<2x32xf32>
    %661 = vector.extract_strided_slice %657 {offsets = [4, 0], sizes = [2, 32], strides = [1, 1]} : vector<16x32xf32> to vector<2x32xf32>
    %662 = arith.addf %660, %661 : vector<2x32xf32>
    %663 = vector.extract_strided_slice %657 {offsets = [6, 0], sizes = [2, 32], strides = [1, 1]} : vector<16x32xf32> to vector<2x32xf32>
    %664 = arith.addf %662, %663 : vector<2x32xf32>
    %665 = vector.extract_strided_slice %657 {offsets = [8, 0], sizes = [2, 32], strides = [1, 1]} : vector<16x32xf32> to vector<2x32xf32>
    %666 = arith.addf %664, %665 : vector<2x32xf32>
    %667 = vector.extract_strided_slice %657 {offsets = [10, 0], sizes = [2, 32], strides = [1, 1]} : vector<16x32xf32> to vector<2x32xf32>
    %668 = arith.addf %666, %667 : vector<2x32xf32>
    %669 = vector.extract_strided_slice %657 {offsets = [12, 0], sizes = [2, 32], strides = [1, 1]} : vector<16x32xf32> to vector<2x32xf32>
    %670 = arith.addf %668, %669 : vector<2x32xf32>
    %671 = vector.extract_strided_slice %657 {offsets = [14, 0], sizes = [2, 32], strides = [1, 1]} : vector<16x32xf32> to vector<2x32xf32>
    %672 = arith.addf %670, %671 : vector<2x32xf32>
    %673 = vector.broadcast %655 : vector<2x1xf32> to vector<2x32xf32>
    %674 = arith.divf %672, %673 : vector<2x32xf32>
    %675 = tpu.concatenate %608, %674 in 1 : vector<2x32xf32>, vector<2x32xf32> -> vector<2x64xf32>
    %c0_164 = arith.constant 0 : index
    %c0_165 = arith.constant 0 : index
    %676 = vector.load %arg19[%c0_164, %c0_165] : memref<64x128xf32, #tpu.memory_space<vmem>>, vector<64x128xf32>
    %cst_166 = arith.constant dense<0.000000e+00> : vector<2x128xf32>
    %677 = tpu.matmul %675, %676, %cst_166 {dimension_numbers = #tpu.dot_dimension_numbers<[1], [0], [0], [1], [0, 0, 1, 1], [], []>} : vector<2x64xf32>, vector<64x128xf32>, vector<2x128xf32> -> vector<2x128xf32>
    %c0_167 = arith.constant 0 : index
    %c0_168 = arith.constant 0 : index
    %678 = vector.load %arg20[%c0_167, %c0_168] : memref<1x128xf32, #tpu.memory_space<vmem>>, vector<1x128xf32>
    %679 = vector.broadcast %678 : vector<1x128xf32> to vector<2x128xf32>
    %680 = arith.addf %677, %679 : vector<2x128xf32>
    %681 = vector.extract_strided_slice %341 {offsets = [6, 0], sizes = [2, 128], strides = [1, 1]} : vector<16x128xf32> to vector<2x128xf32>
    %c0_169 = arith.constant 0 : index
    %c0_170 = arith.constant 0 : index
    %682 = vector.load %arg9[%c0_169, %c0_170] : memref<32x128xf32, #tpu.memory_space<vmem>>, vector<32x128xf32>
    %cst_171 = arith.constant dense<0.000000e+00> : vector<2x128xf32>
    %683 = tpu.matmul %587, %682, %cst_171 {dimension_numbers = #tpu.dot_dimension_numbers<[1], [0], [0], [1], [0, 0, 1, 1], [], []>} : vector<2x32xf32>, vector<32x128xf32>, vector<2x128xf32> -> vector<2x128xf32>
    %684 = arith.addf %681, %683 : vector<2x128xf32>
    %685 = arith.negf %684 : vector<2x128xf32>
    %686 = math.exp %685 : vector<2x128xf32>
    %cst_172 = arith.constant 1.000000e+00 : f32
    %687 = vector.broadcast %cst_172 : f32 to vector<2x128xf32>
    %688 = arith.addf %687, %686 : vector<2x128xf32>
    %689 = arith.divf %687, %688 : vector<2x128xf32>
    %690 = math.tanh %684 : vector<2x128xf32>
    %691 = vector.extract_strided_slice %689 {offsets = [0, 0], sizes = [2, 32], strides = [1, 1]} : vector<2x128xf32> to vector<2x32xf32>
    %692 = vector.extract_strided_slice %689 {offsets = [0, 32], sizes = [2, 32], strides = [1, 1]} : vector<2x128xf32> to vector<2x32xf32>
    %693 = vector.extract_strided_slice %690 {offsets = [0, 64], sizes = [2, 32], strides = [1, 1]} : vector<2x128xf32> to vector<2x32xf32>
    %694 = vector.extract_strided_slice %689 {offsets = [0, 96], sizes = [2, 32], strides = [1, 1]} : vector<2x128xf32> to vector<2x32xf32>
    %695 = arith.mulf %692, %585 : vector<2x32xf32>
    %696 = arith.mulf %691, %693 : vector<2x32xf32>
    %697 = arith.addf %695, %696 : vector<2x32xf32>
    %698 = math.tanh %697 : vector<2x32xf32>
    %699 = arith.mulf %694, %698 : vector<2x32xf32>
    %700 = tpu.concatenate %699, %608 in 1 : vector<2x32xf32>, vector<2x32xf32> -> vector<2x64xf32>
    %c0_173 = arith.constant 0 : index
    %c0_174 = arith.constant 0 : index
    %701 = vector.load %arg11[%c0_173, %c0_174] : memref<64x128xf32, #tpu.memory_space<vmem>>, vector<64x128xf32>
    %cst_175 = arith.constant dense<0.000000e+00> : vector<2x128xf32>
    %702 = tpu.matmul %700, %701, %cst_175 {dimension_numbers = #tpu.dot_dimension_numbers<[1], [0], [0], [1], [0, 0, 1, 1], [], []>} : vector<2x64xf32>, vector<64x128xf32>, vector<2x128xf32> -> vector<2x128xf32>
    %c0_176 = arith.constant 0 : index
    %c0_177 = arith.constant 0 : index
    %703 = vector.load %arg12[%c0_176, %c0_177] : memref<1x128xf32, #tpu.memory_space<vmem>>, vector<1x128xf32>
    %704 = vector.broadcast %703 : vector<1x128xf32> to vector<2x128xf32>
    %705 = arith.addf %702, %704 : vector<2x128xf32>
    %706 = arith.negf %705 : vector<2x128xf32>
    %707 = math.exp %706 : vector<2x128xf32>
    %cst_178 = arith.constant 1.000000e+00 : f32
    %708 = vector.broadcast %cst_178 : f32 to vector<2x128xf32>
    %709 = arith.addf %708, %707 : vector<2x128xf32>
    %710 = arith.divf %708, %709 : vector<2x128xf32>
    %711 = math.tanh %705 : vector<2x128xf32>
    %712 = vector.extract_strided_slice %710 {offsets = [0, 0], sizes = [2, 32], strides = [1, 1]} : vector<2x128xf32> to vector<2x32xf32>
    %713 = vector.extract_strided_slice %710 {offsets = [0, 32], sizes = [2, 32], strides = [1, 1]} : vector<2x128xf32> to vector<2x32xf32>
    %714 = vector.extract_strided_slice %711 {offsets = [0, 64], sizes = [2, 32], strides = [1, 1]} : vector<2x128xf32> to vector<2x32xf32>
    %715 = vector.extract_strided_slice %710 {offsets = [0, 96], sizes = [2, 32], strides = [1, 1]} : vector<2x128xf32> to vector<2x32xf32>
    %716 = arith.mulf %713, %606 : vector<2x32xf32>
    %717 = arith.mulf %712, %714 : vector<2x32xf32>
    %718 = arith.addf %716, %717 : vector<2x32xf32>
    %719 = math.tanh %718 : vector<2x32xf32>
    %720 = arith.mulf %715, %719 : vector<2x32xf32>
    %c0_179 = arith.constant 0 : index
    %c0_180 = arith.constant 0 : index
    %721 = vector.load %arg13[%c0_179, %c0_180] : memref<32x32xf32, #tpu.memory_space<vmem>>, vector<32x32xf32>
    %cst_181 = arith.constant dense<0.000000e+00> : vector<2x32xf32>
    %722 = tpu.matmul %720, %721, %cst_181 {dimension_numbers = #tpu.dot_dimension_numbers<[1], [0], [0], [1], [0, 0, 1, 1], [], []>} : vector<2x32xf32>, vector<32x32xf32>, vector<2x32xf32> -> vector<2x32xf32>
    %c0_182 = arith.constant 0 : index
    %c0_183 = arith.constant 0 : index
    %723 = vector.load %arg14[%c0_182, %c0_183] : memref<1x32xf32, #tpu.memory_space<vmem>>, vector<1x32xf32>
    %724 = vector.broadcast %723 : vector<1x32xf32> to vector<2x32xf32>
    %725 = arith.addf %722, %724 : vector<2x32xf32>
    %726 = tpu.concatenate %725, %725, %725, %725, %725, %725, %725, %725 in 0 : vector<2x32xf32>, vector<2x32xf32>, vector<2x32xf32>, vector<2x32xf32>, vector<2x32xf32>, vector<2x32xf32>, vector<2x32xf32>, vector<2x32xf32> -> vector<16x32xf32>
    %727 = arith.addf %726, %335 : vector<16x32xf32>
    %728 = math.tanh %727 : vector<16x32xf32>
    %729 = vector.broadcast %342 : vector<1x32xf32> to vector<16x32xf32>
    %730 = arith.mulf %728, %729 : vector<16x32xf32>
    %cst_184 = arith.constant dense<0.000000e+00> : vector<16xf32>
    %731 = vector.multi_reduction <add>, %730, %cst_184 [1] : vector<16x32xf32> to vector<16xf32>
    %732 = vector.shape_cast %731 : vector<16xf32> to vector<16x1xf32>
    %733 = vector.broadcast %343 : vector<1x1xf32> to vector<16x1xf32>
    %734 = arith.addf %732, %733 : vector<16x1xf32>
    %735 = vector.extract_strided_slice %734 {offsets = [0, 0], sizes = [2, 1], strides = [1, 1]} : vector<16x1xf32> to vector<2x1xf32>
    %736 = vector.extract_strided_slice %734 {offsets = [2, 0], sizes = [2, 1], strides = [1, 1]} : vector<16x1xf32> to vector<2x1xf32>
    %737 = arith.maximumf %735, %736 : vector<2x1xf32>
    %738 = vector.extract_strided_slice %734 {offsets = [4, 0], sizes = [2, 1], strides = [1, 1]} : vector<16x1xf32> to vector<2x1xf32>
    %739 = arith.maximumf %737, %738 : vector<2x1xf32>
    %740 = vector.extract_strided_slice %734 {offsets = [6, 0], sizes = [2, 1], strides = [1, 1]} : vector<16x1xf32> to vector<2x1xf32>
    %741 = arith.maximumf %739, %740 : vector<2x1xf32>
    %742 = vector.extract_strided_slice %734 {offsets = [8, 0], sizes = [2, 1], strides = [1, 1]} : vector<16x1xf32> to vector<2x1xf32>
    %743 = arith.maximumf %741, %742 : vector<2x1xf32>
    %744 = vector.extract_strided_slice %734 {offsets = [10, 0], sizes = [2, 1], strides = [1, 1]} : vector<16x1xf32> to vector<2x1xf32>
    %745 = arith.maximumf %743, %744 : vector<2x1xf32>
    %746 = vector.extract_strided_slice %734 {offsets = [12, 0], sizes = [2, 1], strides = [1, 1]} : vector<16x1xf32> to vector<2x1xf32>
    %747 = arith.maximumf %745, %746 : vector<2x1xf32>
    %748 = vector.extract_strided_slice %734 {offsets = [14, 0], sizes = [2, 1], strides = [1, 1]} : vector<16x1xf32> to vector<2x1xf32>
    %749 = arith.maximumf %747, %748 : vector<2x1xf32>
    %750 = tpu.concatenate %749, %749, %749, %749, %749, %749, %749, %749 in 0 : vector<2x1xf32>, vector<2x1xf32>, vector<2x1xf32>, vector<2x1xf32>, vector<2x1xf32>, vector<2x1xf32>, vector<2x1xf32>, vector<2x1xf32> -> vector<16x1xf32>
    %751 = arith.subf %734, %750 : vector<16x1xf32>
    %752 = math.exp %751 : vector<16x1xf32>
    %753 = vector.extract_strided_slice %752 {offsets = [0, 0], sizes = [2, 1], strides = [1, 1]} : vector<16x1xf32> to vector<2x1xf32>
    %754 = vector.extract_strided_slice %752 {offsets = [2, 0], sizes = [2, 1], strides = [1, 1]} : vector<16x1xf32> to vector<2x1xf32>
    %755 = arith.addf %753, %754 : vector<2x1xf32>
    %756 = vector.extract_strided_slice %752 {offsets = [4, 0], sizes = [2, 1], strides = [1, 1]} : vector<16x1xf32> to vector<2x1xf32>
    %757 = arith.addf %755, %756 : vector<2x1xf32>
    %758 = vector.extract_strided_slice %752 {offsets = [6, 0], sizes = [2, 1], strides = [1, 1]} : vector<16x1xf32> to vector<2x1xf32>
    %759 = arith.addf %757, %758 : vector<2x1xf32>
    %760 = vector.extract_strided_slice %752 {offsets = [8, 0], sizes = [2, 1], strides = [1, 1]} : vector<16x1xf32> to vector<2x1xf32>
    %761 = arith.addf %759, %760 : vector<2x1xf32>
    %762 = vector.extract_strided_slice %752 {offsets = [10, 0], sizes = [2, 1], strides = [1, 1]} : vector<16x1xf32> to vector<2x1xf32>
    %763 = arith.addf %761, %762 : vector<2x1xf32>
    %764 = vector.extract_strided_slice %752 {offsets = [12, 0], sizes = [2, 1], strides = [1, 1]} : vector<16x1xf32> to vector<2x1xf32>
    %765 = arith.addf %763, %764 : vector<2x1xf32>
    %766 = vector.extract_strided_slice %752 {offsets = [14, 0], sizes = [2, 1], strides = [1, 1]} : vector<16x1xf32> to vector<2x1xf32>
    %767 = arith.addf %765, %766 : vector<2x1xf32>
    %768 = vector.broadcast %752 : vector<16x1xf32> to vector<16x32xf32>
    %769 = arith.mulf %768, %330 : vector<16x32xf32>
    %770 = vector.extract_strided_slice %769 {offsets = [0, 0], sizes = [2, 32], strides = [1, 1]} : vector<16x32xf32> to vector<2x32xf32>
    %771 = vector.extract_strided_slice %769 {offsets = [2, 0], sizes = [2, 32], strides = [1, 1]} : vector<16x32xf32> to vector<2x32xf32>
    %772 = arith.addf %770, %771 : vector<2x32xf32>
    %773 = vector.extract_strided_slice %769 {offsets = [4, 0], sizes = [2, 32], strides = [1, 1]} : vector<16x32xf32> to vector<2x32xf32>
    %774 = arith.addf %772, %773 : vector<2x32xf32>
    %775 = vector.extract_strided_slice %769 {offsets = [6, 0], sizes = [2, 32], strides = [1, 1]} : vector<16x32xf32> to vector<2x32xf32>
    %776 = arith.addf %774, %775 : vector<2x32xf32>
    %777 = vector.extract_strided_slice %769 {offsets = [8, 0], sizes = [2, 32], strides = [1, 1]} : vector<16x32xf32> to vector<2x32xf32>
    %778 = arith.addf %776, %777 : vector<2x32xf32>
    %779 = vector.extract_strided_slice %769 {offsets = [10, 0], sizes = [2, 32], strides = [1, 1]} : vector<16x32xf32> to vector<2x32xf32>
    %780 = arith.addf %778, %779 : vector<2x32xf32>
    %781 = vector.extract_strided_slice %769 {offsets = [12, 0], sizes = [2, 32], strides = [1, 1]} : vector<16x32xf32> to vector<2x32xf32>
    %782 = arith.addf %780, %781 : vector<2x32xf32>
    %783 = vector.extract_strided_slice %769 {offsets = [14, 0], sizes = [2, 32], strides = [1, 1]} : vector<16x32xf32> to vector<2x32xf32>
    %784 = arith.addf %782, %783 : vector<2x32xf32>
    %785 = vector.broadcast %767 : vector<2x1xf32> to vector<2x32xf32>
    %786 = arith.divf %784, %785 : vector<2x32xf32>
    %787 = tpu.concatenate %720, %786 in 1 : vector<2x32xf32>, vector<2x32xf32> -> vector<2x64xf32>
    %c0_185 = arith.constant 0 : index
    %c0_186 = arith.constant 0 : index
    %788 = vector.load %arg19[%c0_185, %c0_186] : memref<64x128xf32, #tpu.memory_space<vmem>>, vector<64x128xf32>
    %cst_187 = arith.constant dense<0.000000e+00> : vector<2x128xf32>
    %789 = tpu.matmul %787, %788, %cst_187 {dimension_numbers = #tpu.dot_dimension_numbers<[1], [0], [0], [1], [0, 0, 1, 1], [], []>} : vector<2x64xf32>, vector<64x128xf32>, vector<2x128xf32> -> vector<2x128xf32>
    %c0_188 = arith.constant 0 : index
    %c0_189 = arith.constant 0 : index
    %790 = vector.load %arg20[%c0_188, %c0_189] : memref<1x128xf32, #tpu.memory_space<vmem>>, vector<1x128xf32>
    %791 = vector.broadcast %790 : vector<1x128xf32> to vector<2x128xf32>
    %792 = arith.addf %789, %791 : vector<2x128xf32>
    %793 = vector.extract_strided_slice %341 {offsets = [8, 0], sizes = [2, 128], strides = [1, 1]} : vector<16x128xf32> to vector<2x128xf32>
    %c0_190 = arith.constant 0 : index
    %c0_191 = arith.constant 0 : index
    %794 = vector.load %arg9[%c0_190, %c0_191] : memref<32x128xf32, #tpu.memory_space<vmem>>, vector<32x128xf32>
    %cst_192 = arith.constant dense<0.000000e+00> : vector<2x128xf32>
    %795 = tpu.matmul %699, %794, %cst_192 {dimension_numbers = #tpu.dot_dimension_numbers<[1], [0], [0], [1], [0, 0, 1, 1], [], []>} : vector<2x32xf32>, vector<32x128xf32>, vector<2x128xf32> -> vector<2x128xf32>
    %796 = arith.addf %793, %795 : vector<2x128xf32>
    %797 = arith.negf %796 : vector<2x128xf32>
    %798 = math.exp %797 : vector<2x128xf32>
    %cst_193 = arith.constant 1.000000e+00 : f32
    %799 = vector.broadcast %cst_193 : f32 to vector<2x128xf32>
    %800 = arith.addf %799, %798 : vector<2x128xf32>
    %801 = arith.divf %799, %800 : vector<2x128xf32>
    %802 = math.tanh %796 : vector<2x128xf32>
    %803 = vector.extract_strided_slice %801 {offsets = [0, 0], sizes = [2, 32], strides = [1, 1]} : vector<2x128xf32> to vector<2x32xf32>
    %804 = vector.extract_strided_slice %801 {offsets = [0, 32], sizes = [2, 32], strides = [1, 1]} : vector<2x128xf32> to vector<2x32xf32>
    %805 = vector.extract_strided_slice %802 {offsets = [0, 64], sizes = [2, 32], strides = [1, 1]} : vector<2x128xf32> to vector<2x32xf32>
    %806 = vector.extract_strided_slice %801 {offsets = [0, 96], sizes = [2, 32], strides = [1, 1]} : vector<2x128xf32> to vector<2x32xf32>
    %807 = arith.mulf %804, %697 : vector<2x32xf32>
    %808 = arith.mulf %803, %805 : vector<2x32xf32>
    %809 = arith.addf %807, %808 : vector<2x32xf32>
    %810 = math.tanh %809 : vector<2x32xf32>
    %811 = arith.mulf %806, %810 : vector<2x32xf32>
    %812 = tpu.concatenate %811, %720 in 1 : vector<2x32xf32>, vector<2x32xf32> -> vector<2x64xf32>
    %c0_194 = arith.constant 0 : index
    %c0_195 = arith.constant 0 : index
    %813 = vector.load %arg11[%c0_194, %c0_195] : memref<64x128xf32, #tpu.memory_space<vmem>>, vector<64x128xf32>
    %cst_196 = arith.constant dense<0.000000e+00> : vector<2x128xf32>
    %814 = tpu.matmul %812, %813, %cst_196 {dimension_numbers = #tpu.dot_dimension_numbers<[1], [0], [0], [1], [0, 0, 1, 1], [], []>} : vector<2x64xf32>, vector<64x128xf32>, vector<2x128xf32> -> vector<2x128xf32>
    %c0_197 = arith.constant 0 : index
    %c0_198 = arith.constant 0 : index
    %815 = vector.load %arg12[%c0_197, %c0_198] : memref<1x128xf32, #tpu.memory_space<vmem>>, vector<1x128xf32>
    %816 = vector.broadcast %815 : vector<1x128xf32> to vector<2x128xf32>
    %817 = arith.addf %814, %816 : vector<2x128xf32>
    %818 = arith.negf %817 : vector<2x128xf32>
    %819 = math.exp %818 : vector<2x128xf32>
    %cst_199 = arith.constant 1.000000e+00 : f32
    %820 = vector.broadcast %cst_199 : f32 to vector<2x128xf32>
    %821 = arith.addf %820, %819 : vector<2x128xf32>
    %822 = arith.divf %820, %821 : vector<2x128xf32>
    %823 = math.tanh %817 : vector<2x128xf32>
    %824 = vector.extract_strided_slice %822 {offsets = [0, 0], sizes = [2, 32], strides = [1, 1]} : vector<2x128xf32> to vector<2x32xf32>
    %825 = vector.extract_strided_slice %822 {offsets = [0, 32], sizes = [2, 32], strides = [1, 1]} : vector<2x128xf32> to vector<2x32xf32>
    %826 = vector.extract_strided_slice %823 {offsets = [0, 64], sizes = [2, 32], strides = [1, 1]} : vector<2x128xf32> to vector<2x32xf32>
    %827 = vector.extract_strided_slice %822 {offsets = [0, 96], sizes = [2, 32], strides = [1, 1]} : vector<2x128xf32> to vector<2x32xf32>
    %828 = arith.mulf %825, %718 : vector<2x32xf32>
    %829 = arith.mulf %824, %826 : vector<2x32xf32>
    %830 = arith.addf %828, %829 : vector<2x32xf32>
    %831 = math.tanh %830 : vector<2x32xf32>
    %832 = arith.mulf %827, %831 : vector<2x32xf32>
    %c0_200 = arith.constant 0 : index
    %c0_201 = arith.constant 0 : index
    %833 = vector.load %arg13[%c0_200, %c0_201] : memref<32x32xf32, #tpu.memory_space<vmem>>, vector<32x32xf32>
    %cst_202 = arith.constant dense<0.000000e+00> : vector<2x32xf32>
    %834 = tpu.matmul %832, %833, %cst_202 {dimension_numbers = #tpu.dot_dimension_numbers<[1], [0], [0], [1], [0, 0, 1, 1], [], []>} : vector<2x32xf32>, vector<32x32xf32>, vector<2x32xf32> -> vector<2x32xf32>
    %c0_203 = arith.constant 0 : index
    %c0_204 = arith.constant 0 : index
    %835 = vector.load %arg14[%c0_203, %c0_204] : memref<1x32xf32, #tpu.memory_space<vmem>>, vector<1x32xf32>
    %836 = vector.broadcast %835 : vector<1x32xf32> to vector<2x32xf32>
    %837 = arith.addf %834, %836 : vector<2x32xf32>
    %838 = tpu.concatenate %837, %837, %837, %837, %837, %837, %837, %837 in 0 : vector<2x32xf32>, vector<2x32xf32>, vector<2x32xf32>, vector<2x32xf32>, vector<2x32xf32>, vector<2x32xf32>, vector<2x32xf32>, vector<2x32xf32> -> vector<16x32xf32>
    %839 = arith.addf %838, %335 : vector<16x32xf32>
    %840 = math.tanh %839 : vector<16x32xf32>
    %841 = vector.broadcast %342 : vector<1x32xf32> to vector<16x32xf32>
    %842 = arith.mulf %840, %841 : vector<16x32xf32>
    %cst_205 = arith.constant dense<0.000000e+00> : vector<16xf32>
    %843 = vector.multi_reduction <add>, %842, %cst_205 [1] : vector<16x32xf32> to vector<16xf32>
    %844 = vector.shape_cast %843 : vector<16xf32> to vector<16x1xf32>
    %845 = vector.broadcast %343 : vector<1x1xf32> to vector<16x1xf32>
    %846 = arith.addf %844, %845 : vector<16x1xf32>
    %847 = vector.extract_strided_slice %846 {offsets = [0, 0], sizes = [2, 1], strides = [1, 1]} : vector<16x1xf32> to vector<2x1xf32>
    %848 = vector.extract_strided_slice %846 {offsets = [2, 0], sizes = [2, 1], strides = [1, 1]} : vector<16x1xf32> to vector<2x1xf32>
    %849 = arith.maximumf %847, %848 : vector<2x1xf32>
    %850 = vector.extract_strided_slice %846 {offsets = [4, 0], sizes = [2, 1], strides = [1, 1]} : vector<16x1xf32> to vector<2x1xf32>
    %851 = arith.maximumf %849, %850 : vector<2x1xf32>
    %852 = vector.extract_strided_slice %846 {offsets = [6, 0], sizes = [2, 1], strides = [1, 1]} : vector<16x1xf32> to vector<2x1xf32>
    %853 = arith.maximumf %851, %852 : vector<2x1xf32>
    %854 = vector.extract_strided_slice %846 {offsets = [8, 0], sizes = [2, 1], strides = [1, 1]} : vector<16x1xf32> to vector<2x1xf32>
    %855 = arith.maximumf %853, %854 : vector<2x1xf32>
    %856 = vector.extract_strided_slice %846 {offsets = [10, 0], sizes = [2, 1], strides = [1, 1]} : vector<16x1xf32> to vector<2x1xf32>
    %857 = arith.maximumf %855, %856 : vector<2x1xf32>
    %858 = vector.extract_strided_slice %846 {offsets = [12, 0], sizes = [2, 1], strides = [1, 1]} : vector<16x1xf32> to vector<2x1xf32>
    %859 = arith.maximumf %857, %858 : vector<2x1xf32>
    %860 = vector.extract_strided_slice %846 {offsets = [14, 0], sizes = [2, 1], strides = [1, 1]} : vector<16x1xf32> to vector<2x1xf32>
    %861 = arith.maximumf %859, %860 : vector<2x1xf32>
    %862 = tpu.concatenate %861, %861, %861, %861, %861, %861, %861, %861 in 0 : vector<2x1xf32>, vector<2x1xf32>, vector<2x1xf32>, vector<2x1xf32>, vector<2x1xf32>, vector<2x1xf32>, vector<2x1xf32>, vector<2x1xf32> -> vector<16x1xf32>
    %863 = arith.subf %846, %862 : vector<16x1xf32>
    %864 = math.exp %863 : vector<16x1xf32>
    %865 = vector.extract_strided_slice %864 {offsets = [0, 0], sizes = [2, 1], strides = [1, 1]} : vector<16x1xf32> to vector<2x1xf32>
    %866 = vector.extract_strided_slice %864 {offsets = [2, 0], sizes = [2, 1], strides = [1, 1]} : vector<16x1xf32> to vector<2x1xf32>
    %867 = arith.addf %865, %866 : vector<2x1xf32>
    %868 = vector.extract_strided_slice %864 {offsets = [4, 0], sizes = [2, 1], strides = [1, 1]} : vector<16x1xf32> to vector<2x1xf32>
    %869 = arith.addf %867, %868 : vector<2x1xf32>
    %870 = vector.extract_strided_slice %864 {offsets = [6, 0], sizes = [2, 1], strides = [1, 1]} : vector<16x1xf32> to vector<2x1xf32>
    %871 = arith.addf %869, %870 : vector<2x1xf32>
    %872 = vector.extract_strided_slice %864 {offsets = [8, 0], sizes = [2, 1], strides = [1, 1]} : vector<16x1xf32> to vector<2x1xf32>
    %873 = arith.addf %871, %872 : vector<2x1xf32>
    %874 = vector.extract_strided_slice %864 {offsets = [10, 0], sizes = [2, 1], strides = [1, 1]} : vector<16x1xf32> to vector<2x1xf32>
    %875 = arith.addf %873, %874 : vector<2x1xf32>
    %876 = vector.extract_strided_slice %864 {offsets = [12, 0], sizes = [2, 1], strides = [1, 1]} : vector<16x1xf32> to vector<2x1xf32>
    %877 = arith.addf %875, %876 : vector<2x1xf32>
    %878 = vector.extract_strided_slice %864 {offsets = [14, 0], sizes = [2, 1], strides = [1, 1]} : vector<16x1xf32> to vector<2x1xf32>
    %879 = arith.addf %877, %878 : vector<2x1xf32>
    %880 = vector.broadcast %864 : vector<16x1xf32> to vector<16x32xf32>
    %881 = arith.mulf %880, %330 : vector<16x32xf32>
    %882 = vector.extract_strided_slice %881 {offsets = [0, 0], sizes = [2, 32], strides = [1, 1]} : vector<16x32xf32> to vector<2x32xf32>
    %883 = vector.extract_strided_slice %881 {offsets = [2, 0], sizes = [2, 32], strides = [1, 1]} : vector<16x32xf32> to vector<2x32xf32>
    %884 = arith.addf %882, %883 : vector<2x32xf32>
    %885 = vector.extract_strided_slice %881 {offsets = [4, 0], sizes = [2, 32], strides = [1, 1]} : vector<16x32xf32> to vector<2x32xf32>
    %886 = arith.addf %884, %885 : vector<2x32xf32>
    %887 = vector.extract_strided_slice %881 {offsets = [6, 0], sizes = [2, 32], strides = [1, 1]} : vector<16x32xf32> to vector<2x32xf32>
    %888 = arith.addf %886, %887 : vector<2x32xf32>
    %889 = vector.extract_strided_slice %881 {offsets = [8, 0], sizes = [2, 32], strides = [1, 1]} : vector<16x32xf32> to vector<2x32xf32>
    %890 = arith.addf %888, %889 : vector<2x32xf32>
    %891 = vector.extract_strided_slice %881 {offsets = [10, 0], sizes = [2, 32], strides = [1, 1]} : vector<16x32xf32> to vector<2x32xf32>
    %892 = arith.addf %890, %891 : vector<2x32xf32>
    %893 = vector.extract_strided_slice %881 {offsets = [12, 0], sizes = [2, 32], strides = [1, 1]} : vector<16x32xf32> to vector<2x32xf32>
    %894 = arith.addf %892, %893 : vector<2x32xf32>
    %895 = vector.extract_strided_slice %881 {offsets = [14, 0], sizes = [2, 32], strides = [1, 1]} : vector<16x32xf32> to vector<2x32xf32>
    %896 = arith.addf %894, %895 : vector<2x32xf32>
    %897 = vector.broadcast %879 : vector<2x1xf32> to vector<2x32xf32>
    %898 = arith.divf %896, %897 : vector<2x32xf32>
    %899 = tpu.concatenate %832, %898 in 1 : vector<2x32xf32>, vector<2x32xf32> -> vector<2x64xf32>
    %c0_206 = arith.constant 0 : index
    %c0_207 = arith.constant 0 : index
    %900 = vector.load %arg19[%c0_206, %c0_207] : memref<64x128xf32, #tpu.memory_space<vmem>>, vector<64x128xf32>
    %cst_208 = arith.constant dense<0.000000e+00> : vector<2x128xf32>
    %901 = tpu.matmul %899, %900, %cst_208 {dimension_numbers = #tpu.dot_dimension_numbers<[1], [0], [0], [1], [0, 0, 1, 1], [], []>} : vector<2x64xf32>, vector<64x128xf32>, vector<2x128xf32> -> vector<2x128xf32>
    %c0_209 = arith.constant 0 : index
    %c0_210 = arith.constant 0 : index
    %902 = vector.load %arg20[%c0_209, %c0_210] : memref<1x128xf32, #tpu.memory_space<vmem>>, vector<1x128xf32>
    %903 = vector.broadcast %902 : vector<1x128xf32> to vector<2x128xf32>
    %904 = arith.addf %901, %903 : vector<2x128xf32>
    %905 = vector.extract_strided_slice %341 {offsets = [10, 0], sizes = [2, 128], strides = [1, 1]} : vector<16x128xf32> to vector<2x128xf32>
    %c0_211 = arith.constant 0 : index
    %c0_212 = arith.constant 0 : index
    %906 = vector.load %arg9[%c0_211, %c0_212] : memref<32x128xf32, #tpu.memory_space<vmem>>, vector<32x128xf32>
    %cst_213 = arith.constant dense<0.000000e+00> : vector<2x128xf32>
    %907 = tpu.matmul %811, %906, %cst_213 {dimension_numbers = #tpu.dot_dimension_numbers<[1], [0], [0], [1], [0, 0, 1, 1], [], []>} : vector<2x32xf32>, vector<32x128xf32>, vector<2x128xf32> -> vector<2x128xf32>
    %908 = arith.addf %905, %907 : vector<2x128xf32>
    %909 = arith.negf %908 : vector<2x128xf32>
    %910 = math.exp %909 : vector<2x128xf32>
    %cst_214 = arith.constant 1.000000e+00 : f32
    %911 = vector.broadcast %cst_214 : f32 to vector<2x128xf32>
    %912 = arith.addf %911, %910 : vector<2x128xf32>
    %913 = arith.divf %911, %912 : vector<2x128xf32>
    %914 = math.tanh %908 : vector<2x128xf32>
    %915 = vector.extract_strided_slice %913 {offsets = [0, 0], sizes = [2, 32], strides = [1, 1]} : vector<2x128xf32> to vector<2x32xf32>
    %916 = vector.extract_strided_slice %913 {offsets = [0, 32], sizes = [2, 32], strides = [1, 1]} : vector<2x128xf32> to vector<2x32xf32>
    %917 = vector.extract_strided_slice %914 {offsets = [0, 64], sizes = [2, 32], strides = [1, 1]} : vector<2x128xf32> to vector<2x32xf32>
    %918 = vector.extract_strided_slice %913 {offsets = [0, 96], sizes = [2, 32], strides = [1, 1]} : vector<2x128xf32> to vector<2x32xf32>
    %919 = arith.mulf %916, %809 : vector<2x32xf32>
    %920 = arith.mulf %915, %917 : vector<2x32xf32>
    %921 = arith.addf %919, %920 : vector<2x32xf32>
    %922 = math.tanh %921 : vector<2x32xf32>
    %923 = arith.mulf %918, %922 : vector<2x32xf32>
    %924 = tpu.concatenate %923, %832 in 1 : vector<2x32xf32>, vector<2x32xf32> -> vector<2x64xf32>
    %c0_215 = arith.constant 0 : index
    %c0_216 = arith.constant 0 : index
    %925 = vector.load %arg11[%c0_215, %c0_216] : memref<64x128xf32, #tpu.memory_space<vmem>>, vector<64x128xf32>
    %cst_217 = arith.constant dense<0.000000e+00> : vector<2x128xf32>
    %926 = tpu.matmul %924, %925, %cst_217 {dimension_numbers = #tpu.dot_dimension_numbers<[1], [0], [0], [1], [0, 0, 1, 1], [], []>} : vector<2x64xf32>, vector<64x128xf32>, vector<2x128xf32> -> vector<2x128xf32>
    %c0_218 = arith.constant 0 : index
    %c0_219 = arith.constant 0 : index
    %927 = vector.load %arg12[%c0_218, %c0_219] : memref<1x128xf32, #tpu.memory_space<vmem>>, vector<1x128xf32>
    %928 = vector.broadcast %927 : vector<1x128xf32> to vector<2x128xf32>
    %929 = arith.addf %926, %928 : vector<2x128xf32>
    %930 = arith.negf %929 : vector<2x128xf32>
    %931 = math.exp %930 : vector<2x128xf32>
    %cst_220 = arith.constant 1.000000e+00 : f32
    %932 = vector.broadcast %cst_220 : f32 to vector<2x128xf32>
    %933 = arith.addf %932, %931 : vector<2x128xf32>
    %934 = arith.divf %932, %933 : vector<2x128xf32>
    %935 = math.tanh %929 : vector<2x128xf32>
    %936 = vector.extract_strided_slice %934 {offsets = [0, 0], sizes = [2, 32], strides = [1, 1]} : vector<2x128xf32> to vector<2x32xf32>
    %937 = vector.extract_strided_slice %934 {offsets = [0, 32], sizes = [2, 32], strides = [1, 1]} : vector<2x128xf32> to vector<2x32xf32>
    %938 = vector.extract_strided_slice %935 {offsets = [0, 64], sizes = [2, 32], strides = [1, 1]} : vector<2x128xf32> to vector<2x32xf32>
    %939 = vector.extract_strided_slice %934 {offsets = [0, 96], sizes = [2, 32], strides = [1, 1]} : vector<2x128xf32> to vector<2x32xf32>
    %940 = arith.mulf %937, %830 : vector<2x32xf32>
    %941 = arith.mulf %936, %938 : vector<2x32xf32>
    %942 = arith.addf %940, %941 : vector<2x32xf32>
    %943 = math.tanh %942 : vector<2x32xf32>
    %944 = arith.mulf %939, %943 : vector<2x32xf32>
    %c0_221 = arith.constant 0 : index
    %c0_222 = arith.constant 0 : index
    %945 = vector.load %arg13[%c0_221, %c0_222] : memref<32x32xf32, #tpu.memory_space<vmem>>, vector<32x32xf32>
    %cst_223 = arith.constant dense<0.000000e+00> : vector<2x32xf32>
    %946 = tpu.matmul %944, %945, %cst_223 {dimension_numbers = #tpu.dot_dimension_numbers<[1], [0], [0], [1], [0, 0, 1, 1], [], []>} : vector<2x32xf32>, vector<32x32xf32>, vector<2x32xf32> -> vector<2x32xf32>
    %c0_224 = arith.constant 0 : index
    %c0_225 = arith.constant 0 : index
    %947 = vector.load %arg14[%c0_224, %c0_225] : memref<1x32xf32, #tpu.memory_space<vmem>>, vector<1x32xf32>
    %948 = vector.broadcast %947 : vector<1x32xf32> to vector<2x32xf32>
    %949 = arith.addf %946, %948 : vector<2x32xf32>
    %950 = tpu.concatenate %949, %949, %949, %949, %949, %949, %949, %949 in 0 : vector<2x32xf32>, vector<2x32xf32>, vector<2x32xf32>, vector<2x32xf32>, vector<2x32xf32>, vector<2x32xf32>, vector<2x32xf32>, vector<2x32xf32> -> vector<16x32xf32>
    %951 = arith.addf %950, %335 : vector<16x32xf32>
    %952 = math.tanh %951 : vector<16x32xf32>
    %953 = vector.broadcast %342 : vector<1x32xf32> to vector<16x32xf32>
    %954 = arith.mulf %952, %953 : vector<16x32xf32>
    %cst_226 = arith.constant dense<0.000000e+00> : vector<16xf32>
    %955 = vector.multi_reduction <add>, %954, %cst_226 [1] : vector<16x32xf32> to vector<16xf32>
    %956 = vector.shape_cast %955 : vector<16xf32> to vector<16x1xf32>
    %957 = vector.broadcast %343 : vector<1x1xf32> to vector<16x1xf32>
    %958 = arith.addf %956, %957 : vector<16x1xf32>
    %959 = vector.extract_strided_slice %958 {offsets = [0, 0], sizes = [2, 1], strides = [1, 1]} : vector<16x1xf32> to vector<2x1xf32>
    %960 = vector.extract_strided_slice %958 {offsets = [2, 0], sizes = [2, 1], strides = [1, 1]} : vector<16x1xf32> to vector<2x1xf32>
    %961 = arith.maximumf %959, %960 : vector<2x1xf32>
    %962 = vector.extract_strided_slice %958 {offsets = [4, 0], sizes = [2, 1], strides = [1, 1]} : vector<16x1xf32> to vector<2x1xf32>
    %963 = arith.maximumf %961, %962 : vector<2x1xf32>
    %964 = vector.extract_strided_slice %958 {offsets = [6, 0], sizes = [2, 1], strides = [1, 1]} : vector<16x1xf32> to vector<2x1xf32>
    %965 = arith.maximumf %963, %964 : vector<2x1xf32>
    %966 = vector.extract_strided_slice %958 {offsets = [8, 0], sizes = [2, 1], strides = [1, 1]} : vector<16x1xf32> to vector<2x1xf32>
    %967 = arith.maximumf %965, %966 : vector<2x1xf32>
    %968 = vector.extract_strided_slice %958 {offsets = [10, 0], sizes = [2, 1], strides = [1, 1]} : vector<16x1xf32> to vector<2x1xf32>
    %969 = arith.maximumf %967, %968 : vector<2x1xf32>
    %970 = vector.extract_strided_slice %958 {offsets = [12, 0], sizes = [2, 1], strides = [1, 1]} : vector<16x1xf32> to vector<2x1xf32>
    %971 = arith.maximumf %969, %970 : vector<2x1xf32>
    %972 = vector.extract_strided_slice %958 {offsets = [14, 0], sizes = [2, 1], strides = [1, 1]} : vector<16x1xf32> to vector<2x1xf32>
    %973 = arith.maximumf %971, %972 : vector<2x1xf32>
    %974 = tpu.concatenate %973, %973, %973, %973, %973, %973, %973, %973 in 0 : vector<2x1xf32>, vector<2x1xf32>, vector<2x1xf32>, vector<2x1xf32>, vector<2x1xf32>, vector<2x1xf32>, vector<2x1xf32>, vector<2x1xf32> -> vector<16x1xf32>
    %975 = arith.subf %958, %974 : vector<16x1xf32>
    %976 = math.exp %975 : vector<16x1xf32>
    %977 = vector.extract_strided_slice %976 {offsets = [0, 0], sizes = [2, 1], strides = [1, 1]} : vector<16x1xf32> to vector<2x1xf32>
    %978 = vector.extract_strided_slice %976 {offsets = [2, 0], sizes = [2, 1], strides = [1, 1]} : vector<16x1xf32> to vector<2x1xf32>
    %979 = arith.addf %977, %978 : vector<2x1xf32>
    %980 = vector.extract_strided_slice %976 {offsets = [4, 0], sizes = [2, 1], strides = [1, 1]} : vector<16x1xf32> to vector<2x1xf32>
    %981 = arith.addf %979, %980 : vector<2x1xf32>
    %982 = vector.extract_strided_slice %976 {offsets = [6, 0], sizes = [2, 1], strides = [1, 1]} : vector<16x1xf32> to vector<2x1xf32>
    %983 = arith.addf %981, %982 : vector<2x1xf32>
    %984 = vector.extract_strided_slice %976 {offsets = [8, 0], sizes = [2, 1], strides = [1, 1]} : vector<16x1xf32> to vector<2x1xf32>
    %985 = arith.addf %983, %984 : vector<2x1xf32>
    %986 = vector.extract_strided_slice %976 {offsets = [10, 0], sizes = [2, 1], strides = [1, 1]} : vector<16x1xf32> to vector<2x1xf32>
    %987 = arith.addf %985, %986 : vector<2x1xf32>
    %988 = vector.extract_strided_slice %976 {offsets = [12, 0], sizes = [2, 1], strides = [1, 1]} : vector<16x1xf32> to vector<2x1xf32>
    %989 = arith.addf %987, %988 : vector<2x1xf32>
    %990 = vector.extract_strided_slice %976 {offsets = [14, 0], sizes = [2, 1], strides = [1, 1]} : vector<16x1xf32> to vector<2x1xf32>
    %991 = arith.addf %989, %990 : vector<2x1xf32>
    %992 = vector.broadcast %976 : vector<16x1xf32> to vector<16x32xf32>
    %993 = arith.mulf %992, %330 : vector<16x32xf32>
    %994 = vector.extract_strided_slice %993 {offsets = [0, 0], sizes = [2, 32], strides = [1, 1]} : vector<16x32xf32> to vector<2x32xf32>
    %995 = vector.extract_strided_slice %993 {offsets = [2, 0], sizes = [2, 32], strides = [1, 1]} : vector<16x32xf32> to vector<2x32xf32>
    %996 = arith.addf %994, %995 : vector<2x32xf32>
    %997 = vector.extract_strided_slice %993 {offsets = [4, 0], sizes = [2, 32], strides = [1, 1]} : vector<16x32xf32> to vector<2x32xf32>
    %998 = arith.addf %996, %997 : vector<2x32xf32>
    %999 = vector.extract_strided_slice %993 {offsets = [6, 0], sizes = [2, 32], strides = [1, 1]} : vector<16x32xf32> to vector<2x32xf32>
    %1000 = arith.addf %998, %999 : vector<2x32xf32>
    %1001 = vector.extract_strided_slice %993 {offsets = [8, 0], sizes = [2, 32], strides = [1, 1]} : vector<16x32xf32> to vector<2x32xf32>
    %1002 = arith.addf %1000, %1001 : vector<2x32xf32>
    %1003 = vector.extract_strided_slice %993 {offsets = [10, 0], sizes = [2, 32], strides = [1, 1]} : vector<16x32xf32> to vector<2x32xf32>
    %1004 = arith.addf %1002, %1003 : vector<2x32xf32>
    %1005 = vector.extract_strided_slice %993 {offsets = [12, 0], sizes = [2, 32], strides = [1, 1]} : vector<16x32xf32> to vector<2x32xf32>
    %1006 = arith.addf %1004, %1005 : vector<2x32xf32>
    %1007 = vector.extract_strided_slice %993 {offsets = [14, 0], sizes = [2, 32], strides = [1, 1]} : vector<16x32xf32> to vector<2x32xf32>
    %1008 = arith.addf %1006, %1007 : vector<2x32xf32>
    %1009 = vector.broadcast %991 : vector<2x1xf32> to vector<2x32xf32>
    %1010 = arith.divf %1008, %1009 : vector<2x32xf32>
    %1011 = tpu.concatenate %944, %1010 in 1 : vector<2x32xf32>, vector<2x32xf32> -> vector<2x64xf32>
    %c0_227 = arith.constant 0 : index
    %c0_228 = arith.constant 0 : index
    %1012 = vector.load %arg19[%c0_227, %c0_228] : memref<64x128xf32, #tpu.memory_space<vmem>>, vector<64x128xf32>
    %cst_229 = arith.constant dense<0.000000e+00> : vector<2x128xf32>
    %1013 = tpu.matmul %1011, %1012, %cst_229 {dimension_numbers = #tpu.dot_dimension_numbers<[1], [0], [0], [1], [0, 0, 1, 1], [], []>} : vector<2x64xf32>, vector<64x128xf32>, vector<2x128xf32> -> vector<2x128xf32>
    %c0_230 = arith.constant 0 : index
    %c0_231 = arith.constant 0 : index
    %1014 = vector.load %arg20[%c0_230, %c0_231] : memref<1x128xf32, #tpu.memory_space<vmem>>, vector<1x128xf32>
    %1015 = vector.broadcast %1014 : vector<1x128xf32> to vector<2x128xf32>
    %1016 = arith.addf %1013, %1015 : vector<2x128xf32>
    %1017 = vector.extract_strided_slice %341 {offsets = [12, 0], sizes = [2, 128], strides = [1, 1]} : vector<16x128xf32> to vector<2x128xf32>
    %c0_232 = arith.constant 0 : index
    %c0_233 = arith.constant 0 : index
    %1018 = vector.load %arg9[%c0_232, %c0_233] : memref<32x128xf32, #tpu.memory_space<vmem>>, vector<32x128xf32>
    %cst_234 = arith.constant dense<0.000000e+00> : vector<2x128xf32>
    %1019 = tpu.matmul %923, %1018, %cst_234 {dimension_numbers = #tpu.dot_dimension_numbers<[1], [0], [0], [1], [0, 0, 1, 1], [], []>} : vector<2x32xf32>, vector<32x128xf32>, vector<2x128xf32> -> vector<2x128xf32>
    %1020 = arith.addf %1017, %1019 : vector<2x128xf32>
    %1021 = arith.negf %1020 : vector<2x128xf32>
    %1022 = math.exp %1021 : vector<2x128xf32>
    %cst_235 = arith.constant 1.000000e+00 : f32
    %1023 = vector.broadcast %cst_235 : f32 to vector<2x128xf32>
    %1024 = arith.addf %1023, %1022 : vector<2x128xf32>
    %1025 = arith.divf %1023, %1024 : vector<2x128xf32>
    %1026 = math.tanh %1020 : vector<2x128xf32>
    %1027 = vector.extract_strided_slice %1025 {offsets = [0, 0], sizes = [2, 32], strides = [1, 1]} : vector<2x128xf32> to vector<2x32xf32>
    %1028 = vector.extract_strided_slice %1025 {offsets = [0, 32], sizes = [2, 32], strides = [1, 1]} : vector<2x128xf32> to vector<2x32xf32>
    %1029 = vector.extract_strided_slice %1026 {offsets = [0, 64], sizes = [2, 32], strides = [1, 1]} : vector<2x128xf32> to vector<2x32xf32>
    %1030 = vector.extract_strided_slice %1025 {offsets = [0, 96], sizes = [2, 32], strides = [1, 1]} : vector<2x128xf32> to vector<2x32xf32>
    %1031 = arith.mulf %1028, %921 : vector<2x32xf32>
    %1032 = arith.mulf %1027, %1029 : vector<2x32xf32>
    %1033 = arith.addf %1031, %1032 : vector<2x32xf32>
    %1034 = math.tanh %1033 : vector<2x32xf32>
    %1035 = arith.mulf %1030, %1034 : vector<2x32xf32>
    %1036 = tpu.concatenate %1035, %944 in 1 : vector<2x32xf32>, vector<2x32xf32> -> vector<2x64xf32>
    %c0_236 = arith.constant 0 : index
    %c0_237 = arith.constant 0 : index
    %1037 = vector.load %arg11[%c0_236, %c0_237] : memref<64x128xf32, #tpu.memory_space<vmem>>, vector<64x128xf32>
    %cst_238 = arith.constant dense<0.000000e+00> : vector<2x128xf32>
    %1038 = tpu.matmul %1036, %1037, %cst_238 {dimension_numbers = #tpu.dot_dimension_numbers<[1], [0], [0], [1], [0, 0, 1, 1], [], []>} : vector<2x64xf32>, vector<64x128xf32>, vector<2x128xf32> -> vector<2x128xf32>
    %c0_239 = arith.constant 0 : index
    %c0_240 = arith.constant 0 : index
    %1039 = vector.load %arg12[%c0_239, %c0_240] : memref<1x128xf32, #tpu.memory_space<vmem>>, vector<1x128xf32>
    %1040 = vector.broadcast %1039 : vector<1x128xf32> to vector<2x128xf32>
    %1041 = arith.addf %1038, %1040 : vector<2x128xf32>
    %1042 = arith.negf %1041 : vector<2x128xf32>
    %1043 = math.exp %1042 : vector<2x128xf32>
    %cst_241 = arith.constant 1.000000e+00 : f32
    %1044 = vector.broadcast %cst_241 : f32 to vector<2x128xf32>
    %1045 = arith.addf %1044, %1043 : vector<2x128xf32>
    %1046 = arith.divf %1044, %1045 : vector<2x128xf32>
    %1047 = math.tanh %1041 : vector<2x128xf32>
    %1048 = vector.extract_strided_slice %1046 {offsets = [0, 0], sizes = [2, 32], strides = [1, 1]} : vector<2x128xf32> to vector<2x32xf32>
    %1049 = vector.extract_strided_slice %1046 {offsets = [0, 32], sizes = [2, 32], strides = [1, 1]} : vector<2x128xf32> to vector<2x32xf32>
    %1050 = vector.extract_strided_slice %1047 {offsets = [0, 64], sizes = [2, 32], strides = [1, 1]} : vector<2x128xf32> to vector<2x32xf32>
    %1051 = vector.extract_strided_slice %1046 {offsets = [0, 96], sizes = [2, 32], strides = [1, 1]} : vector<2x128xf32> to vector<2x32xf32>
    %1052 = arith.mulf %1049, %942 : vector<2x32xf32>
    %1053 = arith.mulf %1048, %1050 : vector<2x32xf32>
    %1054 = arith.addf %1052, %1053 : vector<2x32xf32>
    %1055 = math.tanh %1054 : vector<2x32xf32>
    %1056 = arith.mulf %1051, %1055 : vector<2x32xf32>
    %c0_242 = arith.constant 0 : index
    %c0_243 = arith.constant 0 : index
    %1057 = vector.load %arg13[%c0_242, %c0_243] : memref<32x32xf32, #tpu.memory_space<vmem>>, vector<32x32xf32>
    %cst_244 = arith.constant dense<0.000000e+00> : vector<2x32xf32>
    %1058 = tpu.matmul %1056, %1057, %cst_244 {dimension_numbers = #tpu.dot_dimension_numbers<[1], [0], [0], [1], [0, 0, 1, 1], [], []>} : vector<2x32xf32>, vector<32x32xf32>, vector<2x32xf32> -> vector<2x32xf32>
    %c0_245 = arith.constant 0 : index
    %c0_246 = arith.constant 0 : index
    %1059 = vector.load %arg14[%c0_245, %c0_246] : memref<1x32xf32, #tpu.memory_space<vmem>>, vector<1x32xf32>
    %1060 = vector.broadcast %1059 : vector<1x32xf32> to vector<2x32xf32>
    %1061 = arith.addf %1058, %1060 : vector<2x32xf32>
    %1062 = tpu.concatenate %1061, %1061, %1061, %1061, %1061, %1061, %1061, %1061 in 0 : vector<2x32xf32>, vector<2x32xf32>, vector<2x32xf32>, vector<2x32xf32>, vector<2x32xf32>, vector<2x32xf32>, vector<2x32xf32>, vector<2x32xf32> -> vector<16x32xf32>
    %1063 = arith.addf %1062, %335 : vector<16x32xf32>
    %1064 = math.tanh %1063 : vector<16x32xf32>
    %1065 = vector.broadcast %342 : vector<1x32xf32> to vector<16x32xf32>
    %1066 = arith.mulf %1064, %1065 : vector<16x32xf32>
    %cst_247 = arith.constant dense<0.000000e+00> : vector<16xf32>
    %1067 = vector.multi_reduction <add>, %1066, %cst_247 [1] : vector<16x32xf32> to vector<16xf32>
    %1068 = vector.shape_cast %1067 : vector<16xf32> to vector<16x1xf32>
    %1069 = vector.broadcast %343 : vector<1x1xf32> to vector<16x1xf32>
    %1070 = arith.addf %1068, %1069 : vector<16x1xf32>
    %1071 = vector.extract_strided_slice %1070 {offsets = [0, 0], sizes = [2, 1], strides = [1, 1]} : vector<16x1xf32> to vector<2x1xf32>
    %1072 = vector.extract_strided_slice %1070 {offsets = [2, 0], sizes = [2, 1], strides = [1, 1]} : vector<16x1xf32> to vector<2x1xf32>
    %1073 = arith.maximumf %1071, %1072 : vector<2x1xf32>
    %1074 = vector.extract_strided_slice %1070 {offsets = [4, 0], sizes = [2, 1], strides = [1, 1]} : vector<16x1xf32> to vector<2x1xf32>
    %1075 = arith.maximumf %1073, %1074 : vector<2x1xf32>
    %1076 = vector.extract_strided_slice %1070 {offsets = [6, 0], sizes = [2, 1], strides = [1, 1]} : vector<16x1xf32> to vector<2x1xf32>
    %1077 = arith.maximumf %1075, %1076 : vector<2x1xf32>
    %1078 = vector.extract_strided_slice %1070 {offsets = [8, 0], sizes = [2, 1], strides = [1, 1]} : vector<16x1xf32> to vector<2x1xf32>
    %1079 = arith.maximumf %1077, %1078 : vector<2x1xf32>
    %1080 = vector.extract_strided_slice %1070 {offsets = [10, 0], sizes = [2, 1], strides = [1, 1]} : vector<16x1xf32> to vector<2x1xf32>
    %1081 = arith.maximumf %1079, %1080 : vector<2x1xf32>
    %1082 = vector.extract_strided_slice %1070 {offsets = [12, 0], sizes = [2, 1], strides = [1, 1]} : vector<16x1xf32> to vector<2x1xf32>
    %1083 = arith.maximumf %1081, %1082 : vector<2x1xf32>
    %1084 = vector.extract_strided_slice %1070 {offsets = [14, 0], sizes = [2, 1], strides = [1, 1]} : vector<16x1xf32> to vector<2x1xf32>
    %1085 = arith.maximumf %1083, %1084 : vector<2x1xf32>
    %1086 = tpu.concatenate %1085, %1085, %1085, %1085, %1085, %1085, %1085, %1085 in 0 : vector<2x1xf32>, vector<2x1xf32>, vector<2x1xf32>, vector<2x1xf32>, vector<2x1xf32>, vector<2x1xf32>, vector<2x1xf32>, vector<2x1xf32> -> vector<16x1xf32>
    %1087 = arith.subf %1070, %1086 : vector<16x1xf32>
    %1088 = math.exp %1087 : vector<16x1xf32>
    %1089 = vector.extract_strided_slice %1088 {offsets = [0, 0], sizes = [2, 1], strides = [1, 1]} : vector<16x1xf32> to vector<2x1xf32>
    %1090 = vector.extract_strided_slice %1088 {offsets = [2, 0], sizes = [2, 1], strides = [1, 1]} : vector<16x1xf32> to vector<2x1xf32>
    %1091 = arith.addf %1089, %1090 : vector<2x1xf32>
    %1092 = vector.extract_strided_slice %1088 {offsets = [4, 0], sizes = [2, 1], strides = [1, 1]} : vector<16x1xf32> to vector<2x1xf32>
    %1093 = arith.addf %1091, %1092 : vector<2x1xf32>
    %1094 = vector.extract_strided_slice %1088 {offsets = [6, 0], sizes = [2, 1], strides = [1, 1]} : vector<16x1xf32> to vector<2x1xf32>
    %1095 = arith.addf %1093, %1094 : vector<2x1xf32>
    %1096 = vector.extract_strided_slice %1088 {offsets = [8, 0], sizes = [2, 1], strides = [1, 1]} : vector<16x1xf32> to vector<2x1xf32>
    %1097 = arith.addf %1095, %1096 : vector<2x1xf32>
    %1098 = vector.extract_strided_slice %1088 {offsets = [10, 0], sizes = [2, 1], strides = [1, 1]} : vector<16x1xf32> to vector<2x1xf32>
    %1099 = arith.addf %1097, %1098 : vector<2x1xf32>
    %1100 = vector.extract_strided_slice %1088 {offsets = [12, 0], sizes = [2, 1], strides = [1, 1]} : vector<16x1xf32> to vector<2x1xf32>
    %1101 = arith.addf %1099, %1100 : vector<2x1xf32>
    %1102 = vector.extract_strided_slice %1088 {offsets = [14, 0], sizes = [2, 1], strides = [1, 1]} : vector<16x1xf32> to vector<2x1xf32>
    %1103 = arith.addf %1101, %1102 : vector<2x1xf32>
    %1104 = vector.broadcast %1088 : vector<16x1xf32> to vector<16x32xf32>
    %1105 = arith.mulf %1104, %330 : vector<16x32xf32>
    %1106 = vector.extract_strided_slice %1105 {offsets = [0, 0], sizes = [2, 32], strides = [1, 1]} : vector<16x32xf32> to vector<2x32xf32>
    %1107 = vector.extract_strided_slice %1105 {offsets = [2, 0], sizes = [2, 32], strides = [1, 1]} : vector<16x32xf32> to vector<2x32xf32>
    %1108 = arith.addf %1106, %1107 : vector<2x32xf32>
    %1109 = vector.extract_strided_slice %1105 {offsets = [4, 0], sizes = [2, 32], strides = [1, 1]} : vector<16x32xf32> to vector<2x32xf32>
    %1110 = arith.addf %1108, %1109 : vector<2x32xf32>
    %1111 = vector.extract_strided_slice %1105 {offsets = [6, 0], sizes = [2, 32], strides = [1, 1]} : vector<16x32xf32> to vector<2x32xf32>
    %1112 = arith.addf %1110, %1111 : vector<2x32xf32>
    %1113 = vector.extract_strided_slice %1105 {offsets = [8, 0], sizes = [2, 32], strides = [1, 1]} : vector<16x32xf32> to vector<2x32xf32>
    %1114 = arith.addf %1112, %1113 : vector<2x32xf32>
    %1115 = vector.extract_strided_slice %1105 {offsets = [10, 0], sizes = [2, 32], strides = [1, 1]} : vector<16x32xf32> to vector<2x32xf32>
    %1116 = arith.addf %1114, %1115 : vector<2x32xf32>
    %1117 = vector.extract_strided_slice %1105 {offsets = [12, 0], sizes = [2, 32], strides = [1, 1]} : vector<16x32xf32> to vector<2x32xf32>
    %1118 = arith.addf %1116, %1117 : vector<2x32xf32>
    %1119 = vector.extract_strided_slice %1105 {offsets = [14, 0], sizes = [2, 32], strides = [1, 1]} : vector<16x32xf32> to vector<2x32xf32>
    %1120 = arith.addf %1118, %1119 : vector<2x32xf32>
    %1121 = vector.broadcast %1103 : vector<2x1xf32> to vector<2x32xf32>
    %1122 = arith.divf %1120, %1121 : vector<2x32xf32>
    %1123 = tpu.concatenate %1056, %1122 in 1 : vector<2x32xf32>, vector<2x32xf32> -> vector<2x64xf32>
    %c0_248 = arith.constant 0 : index
    %c0_249 = arith.constant 0 : index
    %1124 = vector.load %arg19[%c0_248, %c0_249] : memref<64x128xf32, #tpu.memory_space<vmem>>, vector<64x128xf32>
    %cst_250 = arith.constant dense<0.000000e+00> : vector<2x128xf32>
    %1125 = tpu.matmul %1123, %1124, %cst_250 {dimension_numbers = #tpu.dot_dimension_numbers<[1], [0], [0], [1], [0, 0, 1, 1], [], []>} : vector<2x64xf32>, vector<64x128xf32>, vector<2x128xf32> -> vector<2x128xf32>
    %c0_251 = arith.constant 0 : index
    %c0_252 = arith.constant 0 : index
    %1126 = vector.load %arg20[%c0_251, %c0_252] : memref<1x128xf32, #tpu.memory_space<vmem>>, vector<1x128xf32>
    %1127 = vector.broadcast %1126 : vector<1x128xf32> to vector<2x128xf32>
    %1128 = arith.addf %1125, %1127 : vector<2x128xf32>
    %1129 = tpu.concatenate %344, %456, %568, %680, %792, %904, %1016, %1128 in 0 : vector<2x128xf32>, vector<2x128xf32>, vector<2x128xf32>, vector<2x128xf32>, vector<2x128xf32>, vector<2x128xf32>, vector<2x128xf32>, vector<2x128xf32> -> vector<16x128xf32>
    %c0_253 = arith.constant 0 : index
    %c0_254 = arith.constant 0 : index
    %1130 = vector.load %arg21[%c0_253, %c0_254] : memref<16x128xf32, #tpu.memory_space<vmem>>, vector<16x128xf32>
    tpu.vector_store %arg21[%c0_253, %c0_254], %1129 {strides = array<i32>} : memref<16x128xf32, #tpu.memory_space<vmem>>, vector<16x128xf32>,
    return
  }
  func.func @transform_0(%arg0: i32) -> (i32, i32) {
    %c0_i32 = arith.constant 0 : i32
    %c0_i32_0 = arith.constant 0 : i32
    %c0_i32_1 = arith.constant 0 : i32
    return %c0_i32, %c0_i32_0 : i32, i32
  }
  func.func @transform_1(%arg0: i32) -> (i32, i32) {
    %c0_i32 = arith.constant 0 : i32
    %c0_i32_0 = arith.constant 0 : i32
    %c0_i32_1 = arith.constant 0 : i32
    return %c0_i32, %c0_i32_0 : i32, i32
  }
  func.func @transform_2(%arg0: i32) -> (i32, i32) {
    %c0_i32 = arith.constant 0 : i32
    %c0_i32_0 = arith.constant 0 : i32
    %c0_i32_1 = arith.constant 0 : i32
    return %c0_i32, %c0_i32_0 : i32, i32
  }
  func.func @transform_3(%arg0: i32) -> (i32, i32) {
    %c0_i32 = arith.constant 0 : i32
    %c0_i32_0 = arith.constant 0 : i32
    %c0_i32_1 = arith.constant 0 : i32
    return %c0_i32, %c0_i32_0 : i32, i32
  }
  func.func @transform_4(%arg0: i32) -> (i32, i32) {
    %c0_i32 = arith.constant 0 : i32
    %c0_i32_0 = arith.constant 0 : i32
    %c0_i32_1 = arith.constant 0 : i32
    return %c0_i32, %c0_i32_0 : i32, i32
  }
  func.func @transform_5(%arg0: i32) -> (i32, i32) {
    %c0_i32 = arith.constant 0 : i32
    %c0_i32_0 = arith.constant 0 : i32
    %c0_i32_1 = arith.constant 0 : i32
    return %c0_i32, %c0_i32_0 : i32, i32
  }
  func.func @transform_6(%arg0: i32) -> (i32, i32) {
    %c0_i32 = arith.constant 0 : i32
    %c0_i32_0 = arith.constant 0 : i32
    %c0_i32_1 = arith.constant 0 : i32
    return %c0_i32, %c0_i32_0 : i32, i32
  }
  func.func @transform_7(%arg0: i32) -> (i32, i32) {
    %c0_i32 = arith.constant 0 : i32
    %c0_i32_0 = arith.constant 0 : i32
    %c0_i32_1 = arith.constant 0 : i32
    return %c0_i32, %c0_i32_0 : i32, i32
  }
  func.func @transform_8(%arg0: i32) -> (i32, i32) {
    %c0_i32 = arith.constant 0 : i32
    %c0_i32_0 = arith.constant 0 : i32
    %c0_i32_1 = arith.constant 0 : i32
    return %c0_i32, %c0_i32_0 : i32, i32
  }
  func.func @transform_9(%arg0: i32) -> (i32, i32) {
    %c0_i32 = arith.constant 0 : i32
    %c0_i32_0 = arith.constant 0 : i32
    %c0_i32_1 = arith.constant 0 : i32
    return %c0_i32, %c0_i32_0 : i32, i32
  }
  func.func @transform_10(%arg0: i32) -> (i32, i32) {
    %c0_i32 = arith.constant 0 : i32
    %c0_i32_0 = arith.constant 0 : i32
    %c0_i32_1 = arith.constant 0 : i32
    return %c0_i32, %c0_i32_0 : i32, i32
  }
  func.func @transform_11(%arg0: i32) -> (i32, i32) {
    %c0_i32 = arith.constant 0 : i32
    %c0_i32_0 = arith.constant 0 : i32
    %c0_i32_1 = arith.constant 0 : i32
    return %c0_i32, %c0_i32_0 : i32, i32
  }
  func.func @transform_12(%arg0: i32) -> (i32, i32) {
    %c0_i32 = arith.constant 0 : i32
    %c0_i32_0 = arith.constant 0 : i32
    %c0_i32_1 = arith.constant 0 : i32
    return %c0_i32, %c0_i32_0 : i32, i32
  }
  func.func @transform_13(%arg0: i32) -> (i32, i32) {
    %c0_i32 = arith.constant 0 : i32
    %c0_i32_0 = arith.constant 0 : i32
    %c0_i32_1 = arith.constant 0 : i32
    return %c0_i32, %c0_i32_0 : i32, i32
  }
  func.func @transform_14(%arg0: i32) -> (i32, i32) {
    %c0_i32 = arith.constant 0 : i32
    %c0_i32_0 = arith.constant 0 : i32
    %c0_i32_1 = arith.constant 0 : i32
    return %c0_i32, %c0_i32_0 : i32, i32
  }
  func.func @transform_15(%arg0: i32) -> (i32, i32) {
    %c0_i32 = arith.constant 0 : i32
    %c0_i32_0 = arith.constant 0 : i32
    %c0_i32_1 = arith.constant 0 : i32
    return %c0_i32, %c0_i32_0 : i32, i32
  }
  func.func @transform_16(%arg0: i32) -> (i32, i32) {
    %c0_i32 = arith.constant 0 : i32
    %c0_i32_0 = arith.constant 0 : i32
    %c0_i32_1 = arith.constant 0 : i32
    return %c0_i32, %c0_i32_0 : i32, i32
  }
  func.func @transform_17(%arg0: i32) -> (i32, i32) {
    %c0_i32 = arith.constant 0 : i32
    %c0_i32_0 = arith.constant 0 : i32
    %c0_i32_1 = arith.constant 0 : i32
    return %c0_i32, %c0_i32_0 : i32, i32
  }
  func.func @transform_18(%arg0: i32) -> (i32, i32) {
    %c0_i32 = arith.constant 0 : i32
    %c0_i32_0 = arith.constant 0 : i32
    %c0_i32_1 = arith.constant 0 : i32
    return %c0_i32, %c0_i32_0 : i32, i32
  }
  func.func @transform_19(%arg0: i32) -> (i32, i32) {
    %c0_i32 = arith.constant 0 : i32
    %c0_i32_0 = arith.constant 0 : i32
    %c0_i32_1 = arith.constant 0 : i32
    return %c0_i32, %c0_i32_0 : i32, i32
  }
  func.func @transform_20(%arg0: i32) -> (i32, i32) {
    %c0_i32 = arith.constant 0 : i32
    %c0_i32_0 = arith.constant 0 : i32
    %c0_i32_1 = arith.constant 0 : i32
    return %c0_i32, %c0_i32_0 : i32, i32
  }
}

</mosaic_0001>

<bundles_post_ra>
// kernel: seq2seq_forward.1
= control target key start
LH: loop header
LB: loop body
LE: loop exit
PB: predicated region body
PF: predicated region fallthrough
CT: control target
= control target key end

     0   :  { %vm78_vm0 = vcmask 130048   ;;  %v7391_v0 = vmov 0.0|0.0   ;;  %vm7392_vm1 = vmmov 0   ;;  %v7393_v4 = vmov 0.0   ;;  %s7395_s27 = smov 32   ;;  %s8741_s2 = inlined_call_operand.vmem [shape: f32[16,128], index: 2, kind: input, shape index: {}]   ;;  %s8742_s3 = inlined_call_operand.vmem [shape: f32[32,128], index: 3, kind: input, shape index: {}]   ;;  %s8743_s0 = inlined_call_operand.vmem [shape: f32[16,16], index: 0, kind: input, shape index: {}]   ;;  %s8744_s4 = inlined_call_operand.vmem [shape: f32[1,128], index: 4, kind: input, shape index: {}]   ;;  %s8745_s5 = inlined_call_operand.vmem [shape: f32[64,128], index: 5, kind: input, shape index: {}]   ;;  %s8746_s6 = inlined_call_operand.vmem [shape: f32[1,128], index: 6, kind: input, shape index: {}]   ;;  %s8747_s14 = inlined_call_operand.vmem [shape: f32[32,32], index: 14, kind: input, shape index: {}]   ;;  %s8748_s7 = inlined_call_operand.vmem [shape: f32[16,128], index: 7, kind: input, shape index: {}]   ;;  %s8749_s1 = inlined_call_operand.vmem [shape: f32[16,16], index: 1, kind: input, shape index: {}]   ;;  %s8750_s8 = inlined_call_operand.vmem [shape: f32[32,128], index: 8, kind: input, shape index: {}]   ;;  %s8751_s9 = inlined_call_operand.vmem [shape: f32[1,128], index: 9, kind: input, shape index: {}]   ;;  %s8752_s10 = inlined_call_operand.vmem [shape: f32[64,128], index: 10, kind: input, shape index: {}]   ;;  %s8753_s11 = inlined_call_operand.vmem [shape: f32[1,128], index: 11, kind: input, shape index: {}]   ;;  %s8754_s12 = inlined_call_operand.vmem [shape: f32[32,32], index: 12, kind: input, shape index: {}]   ;;  %s8755_s17 = inlined_call_operand.<no memory space> [shape: f32[1,1], index: 17, kind: input, shape index: {}]   ;;  %s8756_s13 = inlined_call_operand.vmem [shape: f32[1,32], index: 13, kind: input, shape index: {}]   ;;  %s8757_s15 = inlined_call_operand.vmem [shape: f32[1,32], index: 15, kind: input, shape index: {}]   ;;  %s8758_s16 = inlined_call_operand.vmem [shape: f32[1,32], index: 16, kind: input, shape index: {}]   ;;  %s8759_s18 = inlined_call_operand.vmem [shape: f32[64,128], index: 18, kind: input, shape index: {}]   ;;  %s8760_s19 = inlined_call_operand.vmem [shape: f32[1,128], index: 19, kind: input, shape index: {}]   ;;  %s8761_s20 = inlined_call_operand.vmem [shape: f32[16,128], index: 20, kind: output, shape index: {}]  }
   0x1   :  { %8766 = sst [smem:[#allocation3_spill]] %s8741_s2  ;;  %6659 = vmatprep.subr.bf16.mxu1 %v7391_v0  ;;  %5985 = vmatprep.mubr.msk.f32.mxu1 %vm7392_vm1, %v7393_v4  ;;  %vm164_vm2 = vcmask 261120   ;;  %vm283_vm3 = vcmask 523264   ;;  %v7630_v48 = vld [vmem:[%s8746_s6] ss:$0 sm:$0xff]  ;;  %vm1881_vm4 = vcmask 1041408  }
   0x2   :  { %8767 = sst [smem:[#allocation4_spill]] %s8742_s3  ;;  %s8771_s23 = sld [smem:[#allocation3_spill]]  ;;  %vm1883_vm5 = vcmask 1043456   ;;  %vm1885_vm6 = vcmask 1045504  }
   0x3   :  { %8768 = sst [smem:[#allocation5_spill]] %s8743_s0  ;;  %s8772_s26 = sld [smem:[#allocation4_spill]] }
   0x4   :  { %8769 = sst [smem:[#allocation6_spill]] %s8744_s4  ;;  %s8773_s30 = sld [smem:[#allocation5_spill]] }
   0x5   :  { %8770 = sst [smem:[#allocation7_spill]] %s8745_s5  ;;  %s8774_s4 = sld [smem:[#allocation6_spill]] }
   0x6   :  { %s8775_s29 = sld [smem:[#allocation7_spill]] }
   0x8   :  { %v69_v1 = vld [vmem:[%s8771_s23] sm:$0xff]  ;;  %v70_v2 = vld [vmem:[%s8771_s23 + $0x8] sm:$0xff] }
   0x9   :  { %v160_v3 = vld [vmem:[%s8772_s26] sm:$0xff]  ;;  %v6655_v5 = vpack.c.bf16 %v70_v2, %v69_v1  ;;  %v161_v6 = vld [vmem:[%s8772_s26 + $0x8] sm:$0xff]  ;;  %v162_v9 = vld [vmem:[%s8772_s26 + $0x10] sm:$0xff] }
   0xa   :  { %v67_v7 = vld [vmem:[%s8773_s30] sm:$0xff]  ;;  %v7520_v8 = vpack.c.bf16 %v161_v6, %v160_v3  ;;  %v163_v10 = vld [vmem:[%s8772_s26 + $0x18] sm:$0xff]  ;;  %v68_v11 = vld [vmem:[%s8773_s30 + $0x8] sm:$0xff]  ;;  %s7394_s26 = smov 64  }
   0xb   :  { %5974 = vmatprep.mubr.msk.f32.mxu0 %vm78_vm0, %v67_v7  ;;  %6656 = vmatprep.subr.bf16.mxu0 %v6655_v5  ;;  %v7533_v12 = vpack.c.bf16 %v163_v10, %v162_v9  ;;  %v5560_v13 = vld [vmem:[%s8774_s4] ss:$0 sm:$0xff] }
   0xc   :  { %6661 = vmatpush3.bf16.msra.mxu1 %v7520_v8  ;;  %6658 = vmatpush3.bf16.msra.mxu0 %v6655_v5  ;;  %v268_v31 = vld [vmem:[%s8775_s29] sm:$0xff]  ;;  %v269_v32 = vld [vmem:[%s8775_s29 + $0x8] sm:$0xff]  ;;  %v270_v33 = vld [vmem:[%s8775_s29 + $0x10] sm:$0xff] }
   0xd   :  { %6662 = vmatprep.subr.bf16.mxu1 %v7391_v0  ;;  %6665 = vmatprep.subr.bf16.mxu0 %v7391_v0  ;;  %v7571_v34 = vpack.c.bf16 %v269_v32, %v268_v31  ;;  %v271_v35 = vld [vmem:[%s8775_s29 + $0x18] sm:$0xff]  ;;  %v272_v37 = vld [vmem:[%s8775_s29 + $0x20] sm:$0xff]  ;;  %v273_v38 = vld [vmem:[%s8775_s29 + $0x28] sm:$0xff] }
   0xe   :  { %v7577_v36 = vpack.c.bf16 %v271_v35, %v270_v33  ;;  %v7587_v39 = vpack.c.bf16 %v273_v38, %v272_v37  ;;  %v274_v40 = vld [vmem:[%s8775_s29 + $0x30] sm:$0xff]  ;;  %v275_v41 = vld [vmem:[%s8775_s29 + $0x38] sm:$0xff] }
   0xf   :  { %5975 = vmatmul.mubr.msk.f32.vlgmr.msra.gmra.mrb[0].mxu0 %vm78_vm0, %v68_v11  ;;  %v7598_v43 = vpack.c.bf16 %v275_v41, %v274_v40 }
  0x10   :  { %6664 = vmatpush3.bf16.msra.mxu1 %v7533_v12  ;;  %6004 = vmatprep.mubr.msk.f32.mxu0 %vm7392_vm1, %v7393_v4 }
  0x11   :  { %6677 = vmatprep.subr.bf16.mxu1 %v7391_v0  ;;  %6667 = vmatpush3.bf16.msra.mxu0 %v7571_v34 }
  0x12   :  { %6668 = vmatprep.subr.bf16.mxu0 %v7391_v0 }
  0x13   :  { %5986 = vmatmul.mubr.f32.vlgmr.msra.gmra.mrb[0].mxu1 %v7393_v4 }
  0x14   :  { %6679 = vmatpush3.bf16.msra.mxu1 %v7520_v8  ;;  %6015 = vmatprep.mubr.msk.f32.mxu1 %vm7392_vm1, %v7393_v4 }
  0x15   :  { %6680 = vmatprep.subr.bf16.mxu1 %v7391_v0  ;;  %6670 = vmatpush3.bf16.msra.mxu0 %v7577_v36 }
  0x16   :  { %6671 = vmatprep.subr.bf16.mxu0 %v7391_v0 }
  0x18   :  { %6682 = vmatpush3.bf16.msra.mxu1 %v7533_v12 }
  0x19   :  { %6683 = vmatprep.subr.bf16.mxu1 %v7391_v0  ;;  %6673 = vmatpush3.bf16.msra.mxu0 %v7587_v39 }
  0x1a   :  { %6674 = vmatprep.subr.bf16.mxu0 %v7391_v0 }
  0x1d   :  { %6676 = vmatpush3.bf16.msra.mxu0 %v7598_v43 }
  0x1e   :  { %6701 = vmatprep.subr.bf16.mxu0 %v7391_v0 }
  0xe2   :  { %v5976_v14 = vpop.f32.mrb[0].mxu0 }
  0xe3   :  { %v7552_v15 = vadd.f32 %v5976_v14, %v5560_v13  ;;  %v151_v16 = vpop.f32.mrb[1].mxu0 }
  0xe4   :  { %v7554_v17 = vadd.f32 %v5560_v13, %v151_v16 }
  0xe6   :  { %v234_v18 = vpop.f32.mrb[0].mxu1 }
  0xe7   :  { %v238_v19 = vadd.f32 %v234_v18, %v7554_v17  ;;  %v5987_v20 = vpop.f32.mrb[1].mxu1 }
  0xe9   :  { %7075 = vtanh.f32 %v238_v19  ;;  %v5563_v22 = vmul.f32 -1.442695, %v238_v19 }
  0xeb   :  { %7077 = vpow2.f32 %v5563_v22 }
  0xf3   :  { %v7076_v21 = vpop.eup %7075 }
  0xf4   :  { %248 = vrot.lane.b32.xlu0 %v7076_v21, %s7394_s26 }
  0xf5   :  { %v7078_v23 = vpop.eup %7077 }
  0xf6   :  { %v242_v24 = vadd.f32 1.0, %v7078_v23 }
  0xf8   :  { %7079 = vrcp.f32 %v242_v24 }
 0x102   :  { %v7080_v25 = vpop.eup %7079 }
 0x103   :  { %v246_v28 = vmul.f32 0.0, %v7080_v25 }
 0x166   :  { %v249_v26 = vpop.permute.xlu0 %248 }
 0x167   :  { %v251_v27 = vmul.f32 %v7080_v25, %v249_v26 }
 0x169   :  { %253 = vrot.lane.b32.xlu0 %v251_v27, %s7395_s27 }
 0x1db   :  { %v254_v29 = vpop.permute.xlu0 %253 }
 0x1dc   :  { %v7559_v30 = vadd.f32 %v254_v29, %v246_v28 }
 0x1de   :  { %7081 = vtanh.f32 %v7559_v30  ;;  %v465_v9 = vrot.slane %v7559_v30, 6 }
 0x1e8   :  { %v7082_v42 = vpop.eup %7081 }
 0x1e9   :  { %259 = vrot.lane.b32.xlu1 %v7082_v42, %s7394_s26 }
 0x25b   :  { %v260_v44 = vpop.permute.xlu1 %259 }
 0x25c   :  { %v262_v45 = vmul.f32 %v7080_v25, %v260_v44 }
 0x25e   :  { %264 = vrot.lane.b32.xlu1 %v262_v45, %s7395_s27 }
 0x2d0   :  { %v265_v46 = vpop.permute.xlu1 %264 }
 0x2d1   :  { %v267_v47 = vsel %vm164_vm2, %v265_v46, 0.0  ;;  %6016 = vmatmul.mubr.msk.f32.vlgmr.msra.gmra.mrb[2].mxu1 %vm164_vm2, %v265_v46 }
 0x2d2   :  { %6005 = vmatmul.mubr.msk.f32.vlgmr.msra.gmra.mrb[2].mxu0 %vm283_vm3, %v267_v47  ;;  %6685 = vmatpush3.bf16.msra.mxu1 %v7571_v34 }
 0x2d3   :  { %6686 = vmatprep.subr.bf16.mxu1 %v7391_v0  ;;  %6034 = vmatprep.mubr.msk.f32.mxu1 %vm7392_vm1, %v7393_v4 }
 0x2d4   :  { %6703 = vmatpush3.bf16.msra.mxu0 %v7571_v34  ;;  %6064 = vmatprep.mubr.msk.f32.mxu0 %vm7392_vm1, %v7393_v4 }
 0x2d5   :  { %6704 = vmatprep.subr.bf16.mxu0 %v7391_v0 }
 0x2d6   :  { %6688 = vmatpush3.bf16.msra.mxu1 %v7577_v36 }
 0x2d7   :  { %6689 = vmatprep.subr.bf16.mxu1 %v7391_v0 }
 0x2d8   :  { %6706 = vmatpush3.bf16.msra.mxu0 %v7577_v36 }
 0x2d9   :  { %6707 = vmatprep.subr.bf16.mxu0 %v7391_v0 }
 0x2da   :  { %6691 = vmatpush3.bf16.msra.mxu1 %v7587_v39 }
 0x2db   :  { %6692 = vmatprep.subr.bf16.mxu1 %v7391_v0 }
 0x2dc   :  { %6709 = vmatpush3.bf16.msra.mxu0 %v7587_v39 }
 0x2dd   :  { %6710 = vmatprep.subr.bf16.mxu0 %v7391_v0 }
 0x2de   :  { %6694 = vmatpush3.bf16.msra.mxu1 %v7598_v43 }
 0x2df   :  { %6695 = vmatprep.subr.bf16.mxu1 %v7391_v0 }
 0x2e0   :  { %6712 = vmatpush3.bf16.msra.mxu0 %v7598_v43 }
 0x2e1   :  { %6731 = vmatprep.subr.bf16.mxu0 %v7391_v0 }
 0x3a4   :  { %v449_v49 = vpop.f32.mrb[2].mxu1 }
 0x3a5   :  { %v454_v50 = vrot.slane %v449_v49, 6  ;;  %v353_v51 = vpop.f32.mrb[2].mxu0  ;;  %v6017_v52 = vpop.f32.mrb[3].mxu1 }
 0x3a6   :  { %v354_v53 = vadd.f32 %v7630_v48, %v353_v51  ;;  %v6006_v54 = vpop.f32.mrb[3].mxu0 }
 0x3a7   :  { %v456_v55 = vadd.f32 %v454_v50, %v7554_v17 }
 0x3a8   :  { %7083 = vtanh.f32 %v354_v53  ;;  %v5566_v58 = vmul.f32 -1.442695, %v354_v53 }
 0x3a9   :  { %7085 = vtanh.f32 %v456_v55  ;;  %v5568_v59 = vmul.f32 -1.442695, %v456_v55 }
 0x3aa   :  { %7087 = vpow2.f32 %v5566_v58 }
 0x3ab   :  { %7089 = vpow2.f32 %v5568_v59 }
 0x3b2   :  { %v7084_v56 = vpop.eup %7083 }
 0x3b3   :  { %v7086_v57 = vpop.eup %7085  ;;  %366 = vrot.lane.b32.xlu0 %v7084_v56, %s7394_s26 }
 0x3b4   :  { %469 = vrot.lane.b32.xlu1 %v7086_v57, %s7394_s26  ;;  %v7088_v60 = vpop.eup %7087 }
 0x3b5   :  { %v7090_v61 = vpop.eup %7089  ;;  %v360_v62 = vadd.f32 1.0, %v7088_v60 }
 0x3b6   :  { %v460_v63 = vadd.f32 1.0, %v7090_v61 }
 0x3b7   :  { %7091 = vrcp.f32 %v360_v62 }
 0x3b8   :  { %7093 = vrcp.f32 %v460_v63 }
 0x3c1   :  { %v7092_v1 = vpop.eup %7091 }
 0x3c2   :  { %v7094_v3 = vpop.eup %7093  ;;  %v364_v10 = vmul.f32 0.0, %v7092_v1 }
 0x3c3   :  { %v467_v13 = vmul.f32 %v7094_v3, %v465_v9 }
 0x425   :  { %v367_v2 = vpop.permute.xlu0 %366 }
 0x426   :  { %v369_v5 = vmul.f32 %v7092_v1, %v367_v2  ;;  %v470_v6 = vpop.permute.xlu1 %469 }
 0x427   :  { %v472_v7 = vmul.f32 %v7094_v3, %v470_v6 }
 0x428   :  { %371 = vrot.lane.b32.xlu0 %v369_v5, %s7395_s27 }
 0x429   :  { %474 = vrot.lane.b32.xlu1 %v472_v7, %s7395_s27 }
 0x49a   :  { %v372_v11 = vpop.permute.xlu0 %371 }
 0x49b   :  { %v7639_v14 = vadd.f32 %v372_v11, %v364_v10  ;;  %v475_v16 = vpop.permute.xlu1 %474 }
 0x49c   :  { %v7641_v18 = vadd.f32 %v475_v16, %v467_v13 }
 0x49d   :  { %7095 = vtanh.f32 %v7639_v14 }
 0x49e   :  { %7097 = vtanh.f32 %v7641_v18  ;;  %v679_v61 = vrot.slane %v7641_v18, 6 }
 0x4a7   :  { %v7096_v19 = vpop.eup %7095 }
 0x4a8   :  { %v7098_v20 = vpop.eup %7097  ;;  %377 = vrot.lane.b32.xlu0 %v7096_v19, %s7394_s26 }
 0x4a9   :  { %480 = vrot.lane.b32.xlu1 %v7098_v20, %s7394_s26 }
 0x51a   :  { %v378_v21 = vpop.permute.xlu0 %377 }
 0x51b   :  { %v7647_v22 = vmul.f32 %v7092_v1, %v378_v21  ;;  %v481_v23 = vpop.permute.xlu1 %480 }
 0x51c   :  { %v483_v24 = vmul.f32 %v7094_v3, %v481_v23 }
 0x51d   :  { %v489_v25 = vrot.slane %v7647_v22, 6 }
 0x51e   :  { %485 = vrot.lane.b32.xlu0 %v483_v24, %s7395_s27  ;;  %v592_v26 = vrot.slane %v483_v24, 2 }
 0x51f   :  { %490 = vrot.lane.b32.xlu1 %v489_v25, %s7394_s26 }
 0x522   :  { %593 = vrot.lane.b32.xlu0 %v592_v26, %s7395_s27 }
 0x590   :  { %v486_v27 = vpop.permute.xlu0 %485 }
 0x591   :  { %v491_v28 = vpop.permute.xlu1 %490 }
 0x592   :  { %v493_v29 = vsel %vm164_vm2, %v486_v27, %v491_v28 }
 0x593   :  { %v495_v30 = vrot.slane %v493_v29, 2 }
 0x594   :  { %v594_v31 = vpop.permute.xlu0 %593 }
 0x595   :  { %6035 = vmatmul.mubr.msk.f32.vlgmr.msra.gmra.mrb[4].mxu1 %vm283_vm3, %v495_v30 }
 0x596   :  { %6697 = vmatpush3.bf16.msra.mxu1 %v7520_v8  ;;  %6045 = vmatprep.mubr.msk.f32.mxu1 %vm7392_vm1, %v7393_v4 }
 0x597   :  { %6698 = vmatprep.subr.bf16.mxu1 %v7391_v0 }
 0x59a   :  { %6700 = vmatpush3.bf16.msra.mxu1 %v7533_v12 }
 0x59b   :  { %6713 = vmatprep.subr.bf16.mxu1 %v7391_v0 }
 0x59d   :  { %6046 = vmatmul.mubr.msk.f32.vlgmr.msra.gmra.mrb[6].mxu1 %vm164_vm2, %v594_v31 }
 0x59e   :  { %6715 = vmatpush3.bf16.msra.mxu1 %v7520_v8  ;;  %6075 = vmatprep.mubr.msk.f32.mxu1 %vm7392_vm1, %v7393_v4 }
 0x59f   :  { %6716 = vmatprep.subr.bf16.mxu1 %v7391_v0 }
 0x5a2   :  { %6718 = vmatpush3.bf16.msra.mxu1 %v7533_v12 }
 0x5a3   :  { %6719 = vmatprep.subr.bf16.mxu1 %v7391_v0 }
 0x668   :  { %v564_v32 = vpop.f32.mrb[4].mxu1 }
 0x669   :  { %v565_v33 = vadd.f32 %v7630_v48, %v564_v32  ;;  %v6036_v35 = vpop.f32.mrb[5].mxu1 }
 0x66b   :  { %7099 = vtanh.f32 %v565_v33  ;;  %v5570_v45 = vmul.f32 -1.442695, %v565_v33 }
 0x670   :  { %v663_v37 = vpop.f32.mrb[6].mxu1 }
 0x671   :  { %v668_v38 = vrot.slane %v663_v37, 4  ;;  %v6047_v40 = vpop.f32.mrb[7].mxu1 }
 0x673   :  { %v670_v41 = vadd.f32 %v668_v38, %v7554_v17 }
 0x675   :  { %v7100_v42 = vpop.eup %7099  ;;  %7101 = vtanh.f32 %v670_v41  ;;  %v5572_v46 = vmul.f32 -1.442695, %v670_v41 }
 0x676   :  { %577 = vrot.lane.b32.xlu1 %v7100_v42, %s7394_s26  ;;  %7103 = vpow2.f32 %v5570_v45 }
 0x677   :  { %7105 = vpow2.f32 %v5572_v46 }
 0x67f   :  { %v7102_v44 = vpop.eup %7101 }
 0x680   :  { %683 = vrot.lane.b32.xlu0 %v7102_v44, %s7394_s26  ;;  %v7104_v47 = vpop.eup %7103 }
 0x681   :  { %v571_v49 = vadd.f32 1.0, %v7104_v47  ;;  %v7106_v50 = vpop.eup %7105 }
 0x682   :  { %v674_v51 = vadd.f32 1.0, %v7106_v50 }
 0x683   :  { %7107 = vrcp.f32 %v571_v49 }
 0x684   :  { %7109 = vrcp.f32 %v674_v51 }
 0x68d   :  { %v7108_v52 = vpop.eup %7107 }
 0x68e   :  { %v7110_v55 = vpop.eup %7109  ;;  %v575_v58 = vmul.f32 %v7108_v52, %v7639_v14 }
 0x68f   :  { %v681_v62 = vmul.f32 %v7110_v55, %v679_v61 }
 0x6e8   :  { %v578_v53 = vpop.permute.xlu1 %577 }
 0x6e9   :  { %v580_v54 = vmul.f32 %v7108_v52, %v578_v53 }
 0x6eb   :  { %582 = vrot.lane.b32.xlu1 %v580_v54, %s7395_s27 }
 0x6f2   :  { %v684_v56 = vpop.permute.xlu0 %683 }
 0x6f3   :  { %v686_v57 = vmul.f32 %v7110_v55, %v684_v56 }
 0x6f5   :  { %688 = vrot.lane.b32.xlu0 %v686_v57, %s7395_s27 }
 0x75d   :  { %v583_v59 = vpop.permute.xlu1 %582 }
 0x75e   :  { %v7675_v60 = vadd.f32 %v583_v59, %v575_v58 }
 0x760   :  { %7111 = vtanh.f32 %v7675_v60 }
 0x767   :  { %v689_v63 = vpop.permute.xlu0 %688 }
 0x768   :  { %v7679_v1 = vadd.f32 %v689_v63, %v681_v62 }
 0x76a   :  { %v7112_v2 = vpop.eup %7111  ;;  %7113 = vtanh.f32 %v7679_v1  ;;  %v893_v46 = vrot.slane %v7679_v1, 6 }
 0x76b   :  { %588 = vrot.lane.b32.xlu1 %v7112_v2, %s7394_s26 }
 0x774   :  { %v7114_v3 = vpop.eup %7113 }
 0x775   :  { %694 = vrot.lane.b32.xlu0 %v7114_v3, %s7394_s26 }
 0x7dd   :  { %v589_v5 = vpop.permute.xlu1 %588 }
 0x7de   :  { %v7684_v6 = vmul.f32 %v7108_v52, %v589_v5 }
 0x7e0   :  { %v703_v7 = vrot.slane %v7684_v6, 4 }
 0x7e2   :  { %704 = vrot.lane.b32.xlu0 %v703_v7, %s7394_s26 }
 0x7e7   :  { %v695_v9 = vpop.permute.xlu0 %694 }
 0x7e8   :  { %v697_v10 = vmul.f32 %v7110_v55, %v695_v9  ;;  %v1868_v55 = vrot.slane %v7684_v6, 6 }
 0x7ea   :  { %699 = vrot.lane.b32.xlu1 %v697_v10, %s7395_s27  ;;  %v806_v11 = vrot.slane %v697_v10, 4  ;;  %v1882_v61 = vsel %vm1881_vm4, %v7647_v22, %v1868_v55 }
 0x7ee   :  { %807 = vrot.lane.b32.xlu1 %v806_v11, %s7395_s27 }
 0x854   :  { %v705_v13 = vpop.permute.xlu0 %704 }
 0x85c   :  { %v700_v14 = vpop.permute.xlu1 %699 }
 0x85d   :  { %v707_v16 = vsel %vm164_vm2, %v700_v14, %v705_v13 }
 0x85e   :  { %v709_v18 = vrot.slane %v707_v16, 4 }
 0x860   :  { %v808_v19 = vpop.permute.xlu1 %807  ;;  %6065 = vmatmul.mubr.msk.f32.vlgmr.msra.gmra.mrb[4].mxu0 %vm283_vm3, %v709_v18 }
 0x861   :  { %6076 = vmatmul.mubr.msk.f32.vlgmr.msra.gmra.mrb[8].mxu1 %vm164_vm2, %v808_v19  ;;  %6733 = vmatpush3.bf16.msra.mxu0 %v7520_v8 }
 0x862   :  { %6721 = vmatpush3.bf16.msra.mxu1 %v7571_v34  ;;  %6734 = vmatprep.subr.bf16.mxu0 %v7391_v0 }
 0x863   :  { %6722 = vmatprep.subr.bf16.mxu1 %v7391_v0  ;;  %6094 = vmatprep.mubr.msk.f32.mxu1 %vm7392_vm1, %v7393_v4 }
 0x864   :  { %6105 = vmatprep.mubr.msk.f32.mxu0 %vm7392_vm1, %v7393_v4 }
 0x865   :  { %6736 = vmatpush3.bf16.msra.mxu0 %v7533_v12 }
 0x866   :  { %6724 = vmatpush3.bf16.msra.mxu1 %v7577_v36  ;;  %6737 = vmatprep.subr.bf16.mxu0 %v7391_v0 }
 0x867   :  { %6725 = vmatprep.subr.bf16.mxu1 %v7391_v0 }
 0x86a   :  { %6727 = vmatpush3.bf16.msra.mxu1 %v7587_v39 }
 0x86b   :  { %6728 = vmatprep.subr.bf16.mxu1 %v7391_v0 }
 0x86e   :  { %6730 = vmatpush3.bf16.msra.mxu1 %v7598_v43 }
 0x86f   :  { %6749 = vmatprep.subr.bf16.mxu1 %v7391_v0 }
 0x933   :  { %v778_v20 = vpop.f32.mrb[4].mxu0 }
 0x934   :  { %v779_v21 = vadd.f32 %v7630_v48, %v778_v20  ;;  %v6066_v23 = vpop.f32.mrb[5].mxu0  ;;  %v877_v24 = vpop.f32.mrb[8].mxu1 }
 0x935   :  { %v882_v25 = vrot.slane %v877_v24, 2  ;;  %v6077_v26 = vpop.f32.mrb[9].mxu1 }
 0x936   :  { %7115 = vtanh.f32 %v779_v21  ;;  %v5574_v30 = vmul.f32 -1.442695, %v779_v21 }
 0x937   :  { %v884_v27 = vadd.f32 %v882_v25, %v7554_v17 }
 0x939   :  { %7117 = vtanh.f32 %v884_v27  ;;  %v5576_v31 = vmul.f32 -1.442695, %v884_v27 }
 0x93a   :  { %7119 = vpow2.f32 %v5574_v30 }
 0x93b   :  { %7121 = vpow2.f32 %v5576_v31 }
 0x940   :  { %v7116_v28 = vpop.eup %7115 }
 0x941   :  { %791 = vrot.lane.b32.xlu0 %v7116_v28, %s7394_s26 }
 0x943   :  { %v7118_v29 = vpop.eup %7117 }
 0x944   :  { %897 = vrot.lane.b32.xlu1 %v7118_v29, %s7394_s26  ;;  %v7120_v32 = vpop.eup %7119 }
 0x945   :  { %v7122_v33 = vpop.eup %7121  ;;  %v785_v35 = vadd.f32 1.0, %v7120_v32 }
 0x946   :  { %v888_v37 = vadd.f32 1.0, %v7122_v33 }
 0x947   :  { %7123 = vrcp.f32 %v785_v35 }
 0x948   :  { %7125 = vrcp.f32 %v888_v37 }
 0x951   :  { %v7124_v38 = vpop.eup %7123 }
 0x952   :  { %v7126_v41 = vpop.eup %7125  ;;  %v789_v45 = vmul.f32 %v7124_v38, %v7675_v60 }
 0x953   :  { %v895_v50 = vmul.f32 %v7126_v41, %v893_v46 }
 0x9b3   :  { %v792_v40 = vpop.permute.xlu0 %791 }
 0x9b4   :  { %v794_v17 = vmul.f32 %v7124_v38, %v792_v40 }
 0x9b6   :  { %v898_v42 = vpop.permute.xlu1 %897  ;;  %796 = vrot.lane.b32.xlu0 %v794_v17, %s7395_s27 }
 0x9b7   :  { %v900_v44 = vmul.f32 %v7126_v41, %v898_v42 }
 0x9b9   :  { %902 = vrot.lane.b32.xlu1 %v900_v44, %s7395_s27 }
 0xa28   :  { %v797_v47 = vpop.permute.xlu0 %796 }
 0xa29   :  { %v7717_v49 = vadd.f32 %v797_v47, %v789_v45 }
 0xa2b   :  { %7127 = vtanh.f32 %v7717_v49  ;;  %v903_v51 = vpop.permute.xlu1 %902 }
 0xa2c   :  { %v7720_v52 = vadd.f32 %v903_v51, %v895_v50 }
 0xa2e   :  { %7129 = vtanh.f32 %v7720_v52  ;;  %v1104_v32 = vrot.slane %v7720_v52, 6 }
 0xa35   :  { %v7128_v53 = vpop.eup %7127 }
 0xa36   :  { %802 = vrot.lane.b32.xlu0 %v7128_v53, %s7394_s26 }
 0xa38   :  { %v7130_v54 = vpop.eup %7129 }
 0xa39   :  { %908 = vrot.lane.b32.xlu1 %v7130_v54, %s7394_s26 }
 0xaa8   :  { %v803_v56 = vpop.permute.xlu0 %802 }
 0xaa9   :  { %v805_v57 = vmul.f32 %v7124_v38, %v803_v56 }
 0xaab   :  { %v917_v58 = vrot.slane %v805_v57, 2  ;;  %v1870_v59 = vrot.slane %v805_v57, 4  ;;  %v909_v60 = vpop.permute.xlu1 %908 }
 0xaac   :  { %v911_v62 = vmul.f32 %v7126_v41, %v909_v60 }
 0xaad   :  { %v7729_v63 = vsel %vm1883_vm5, %v1882_v61, %v1870_v59  ;;  %918 = vrot.lane.b32.xlu1 %v917_v58, %s7394_s26 }
 0xaae   :  { %913 = vrot.lane.b32.xlu0 %v911_v62, %s7395_s27  ;;  %v1020_v1 = vrot.slane %v911_v62, 6 }
 0xab2   :  { %1021 = vrot.lane.b32.xlu0 %v1020_v1, %s7395_s27 }
 0xb1f   :  { %v919_v2 = vpop.permute.xlu1 %918 }
 0xb20   :  { %v914_v3 = vpop.permute.xlu0 %913 }
 0xb21   :  { %v921_v5 = vsel %vm164_vm2, %v914_v3, %v919_v2 }
 0xb22   :  { %v923_v6 = vrot.slane %v921_v5, 6 }
 0xb24   :  { %6095 = vmatmul.mubr.msk.f32.vlgmr.msra.gmra.mrb[10].mxu1 %vm283_vm3, %v923_v6  ;;  %v1022_v7 = vpop.permute.xlu0 %1021 }
 0xb25   :  { %6106 = vmatmul.mubr.msk.f32.vlgmr.msra.gmra.mrb[6].mxu0 %vm164_vm2, %v1022_v7  ;;  %6751 = vmatpush3.bf16.msra.mxu1 %v7520_v8 }
 0xb26   :  { %6739 = vmatpush3.bf16.msra.mxu0 %v7571_v34  ;;  %6752 = vmatprep.subr.bf16.mxu1 %v7391_v0 }
 0xb27   :  { %6740 = vmatprep.subr.bf16.mxu0 %v7391_v0  ;;  %6135 = vmatprep.mubr.msk.f32.mxu1 %vm7392_vm1, %v7393_v4 }
 0xb28   :  { %6124 = vmatprep.mubr.msk.f32.mxu0 %vm7392_vm1, %v7393_v4 }
 0xb29   :  { %6754 = vmatpush3.bf16.msra.mxu1 %v7533_v12 }
 0xb2a   :  { %6742 = vmatpush3.bf16.msra.mxu0 %v7577_v36  ;;  %6755 = vmatprep.subr.bf16.mxu1 %v7391_v0 }
 0xb2b   :  { %6743 = vmatprep.subr.bf16.mxu0 %v7391_v0 }
 0xb2e   :  { %6745 = vmatpush3.bf16.msra.mxu0 %v7587_v39 }
 0xb2f   :  { %6746 = vmatprep.subr.bf16.mxu0 %v7391_v0 }
 0xb32   :  { %6748 = vmatpush3.bf16.msra.mxu0 %v7598_v43 }
 0xb33   :  { %6767 = vmatprep.subr.bf16.mxu0 %v7391_v0 }
 0xbf7   :  { %v992_v22 = vpop.f32.mrb[10].mxu1 }
 0xbf8   :  { %v993_v9 = vadd.f32 %v7630_v48, %v992_v22  ;;  %v6096_v10 = vpop.f32.mrb[11].mxu1  ;;  %v1091_v11 = vpop.f32.mrb[6].mxu0 }
 0xbf9   :  { %v1095_v13 = vadd.f32 %v1091_v11, %v7552_v15  ;;  %v6107_v14 = vpop.f32.mrb[7].mxu0 }
 0xbfa   :  { %7131 = vtanh.f32 %v993_v9  ;;  %v5578_v19 = vmul.f32 -1.442695, %v993_v9 }
 0xbfb   :  { %7133 = vtanh.f32 %v1095_v13  ;;  %v5580_v20 = vmul.f32 -1.442695, %v1095_v13 }
 0xbfc   :  { %7135 = vpow2.f32 %v5578_v19 }
 0xbfd   :  { %7137 = vpow2.f32 %v5580_v20 }
 0xc04   :  { %v7132_v16 = vpop.eup %7131 }
 0xc05   :  { %v7134_v18 = vpop.eup %7133  ;;  %1005 = vrot.lane.b32.xlu1 %v7132_v16, %s7394_s26 }
 0xc06   :  { %1108 = vrot.lane.b32.xlu0 %v7134_v18, %s7394_s26  ;;  %v7136_v21 = vpop.eup %7135 }
 0xc07   :  { %v7138_v23 = vpop.eup %7137  ;;  %v999_v24 = vadd.f32 1.0, %v7136_v21 }
 0xc08   :  { %v1099_v25 = vadd.f32 1.0, %v7138_v23 }
 0xc09   :  { %7139 = vrcp.f32 %v999_v24 }
 0xc0a   :  { %7141 = vrcp.f32 %v1099_v25 }
 0xc13   :  { %v7140_v26 = vpop.eup %7139 }
 0xc14   :  { %v7142_v28 = vpop.eup %7141  ;;  %v1003_v33 = vmul.f32 %v7140_v26, %v7717_v49 }
 0xc15   :  { %v1106_v37 = vmul.f32 %v7142_v28, %v1104_v32 }
 0xc77   :  { %v1006_v27 = vpop.permute.xlu1 %1005 }
 0xc78   :  { %v1008_v29 = vmul.f32 %v7140_v26, %v1006_v27  ;;  %v1109_v30 = vpop.permute.xlu0 %1108 }
 0xc79   :  { %v1111_v31 = vmul.f32 %v7142_v28, %v1109_v30 }
 0xc7a   :  { %1010 = vrot.lane.b32.xlu1 %v1008_v29, %s7395_s27 }
 0xc7b   :  { %1113 = vrot.lane.b32.xlu0 %v1111_v31, %s7395_s27 }
 0xcec   :  { %v1011_v35 = vpop.permute.xlu1 %1010 }
 0xced   :  { %v7761_v38 = vadd.f32 %v1011_v35, %v1003_v33  ;;  %v1114_v40 = vpop.permute.xlu0 %1113 }
 0xcee   :  { %v7763_v17 = vadd.f32 %v1114_v40, %v1106_v37 }
 0xcef   :  { %7143 = vtanh.f32 %v7761_v38 }
 0xcf0   :  { %7145 = vtanh.f32 %v7763_v17  ;;  %v1313_v14 = vrot.slane %v7763_v17, 6 }
 0xcf9   :  { %v7144_v41 = vpop.eup %7143 }
 0xcfa   :  { %v7146_v42 = vpop.eup %7145  ;;  %1016 = vrot.lane.b32.xlu1 %v7144_v41, %s7394_s26 }
 0xcfb   :  { %1119 = vrot.lane.b32.xlu0 %v7146_v42, %s7394_s26 }
 0xd6c   :  { %v1017_v44 = vpop.permute.xlu1 %1016 }
 0xd6d   :  { %v1019_v45 = vmul.f32 %v7140_v26, %v1017_v44  ;;  %v1120_v46 = vpop.permute.xlu0 %1119 }
 0xd6e   :  { %v1122_v47 = vmul.f32 %v7142_v28, %v1120_v46 }
 0xd6f   :  { %v1872_v49 = vrot.slane %v1019_v45, 2  ;;  %1128 = vrot.lane.b32.xlu0 %v1019_v45, %s7394_s26 }
 0xd70   :  { %1124 = vrot.lane.b32.xlu1 %v1122_v47, %s7395_s27 }
 0xd71   :  { %v7773_v50 = vsel %vm1885_vm6, %v7729_v63, %v1872_v49 }
 0xde1   :  { %v1129_v51 = vpop.permute.xlu0 %1128 }
 0xde2   :  { %v1125_v52 = vpop.permute.xlu1 %1124 }
 0xde3   :  { %v1131_v53 = vsel %vm164_vm2, %v1125_v52, %v1129_v51  ;;  %6136 = vmatmul.mubr.msk.f32.vlgmr.msra.gmra.mrb[12].mxu1 %vm164_vm2, %v1125_v52 }
 0xde4   :  { %6125 = vmatmul.mubr.msk.f32.vlgmr.msra.gmra.mrb[8].mxu0 %vm283_vm3, %v1131_v53  ;;  %6757 = vmatpush3.bf16.msra.mxu1 %v7571_v34 }
 0xde5   :  { %6758 = vmatprep.subr.bf16.mxu1 %v7391_v0  ;;  %6769 = vmatpush3.bf16.msra.mxu0 %v7520_v8 }
 0xde6   :  { %6770 = vmatprep.subr.bf16.mxu0 %v7391_v0  ;;  %6154 = vmatprep.mubr.msk.f32.mxu1 %vm7392_vm1, %v7393_v4 }
 0xde7   :  { %6165 = vmatprep.mubr.msk.f32.mxu0 %vm7392_vm1, %v7393_v4 }
 0xde8   :  { %6760 = vmatpush3.bf16.msra.mxu1 %v7577_v36 }
 0xde9   :  { %6761 = vmatprep.subr.bf16.mxu1 %v7391_v0  ;;  %6772 = vmatpush3.bf16.msra.mxu0 %v7533_v12 }
 0xdea   :  { %6773 = vmatprep.subr.bf16.mxu0 %v7391_v0 }
 0xdec   :  { %6763 = vmatpush3.bf16.msra.mxu1 %v7587_v39 }
 0xded   :  { %6764 = vmatprep.subr.bf16.mxu1 %v7391_v0 }
 0xdf0   :  { %6766 = vmatpush3.bf16.msra.mxu1 %v7598_v43 }
 0xdf1   :  { %6785 = vmatprep.subr.bf16.mxu1 %v7391_v0 }
 0xeb6   :  { %v1297_v54 = vpop.f32.mrb[12].mxu1 }
 0xeb7   :  { %v1302_v55 = vrot.slane %v1297_v54, 6  ;;  %v1201_v56 = vpop.f32.mrb[8].mxu0  ;;  %v6137_v57 = vpop.f32.mrb[13].mxu1 }
 0xeb8   :  { %v1202_v58 = vadd.f32 %v7630_v48, %v1201_v56  ;;  %v6126_v59 = vpop.f32.mrb[9].mxu0 }
 0xeb9   :  { %v1304_v60 = vadd.f32 %v1302_v55, %v7552_v15 }
 0xeba   :  { %7147 = vtanh.f32 %v1202_v58  ;;  %v5582_v63 = vmul.f32 -1.442695, %v1202_v58 }
 0xebb   :  { %7149 = vtanh.f32 %v1304_v60  ;;  %v5584_v1 = vmul.f32 -1.442695, %v1304_v60 }
 0xebc   :  { %7151 = vpow2.f32 %v5582_v63 }
 0xebd   :  { %7153 = vpow2.f32 %v5584_v1 }
 0xec4   :  { %v7148_v61 = vpop.eup %7147 }
 0xec5   :  { %v7150_v62 = vpop.eup %7149  ;;  %1214 = vrot.lane.b32.xlu1 %v7148_v61, %s7394_s26 }
 0xec6   :  { %1317 = vrot.lane.b32.xlu0 %v7150_v62, %s7394_s26  ;;  %v7152_v2 = vpop.eup %7151 }
 0xec7   :  { %v7154_v3 = vpop.eup %7153  ;;  %v1208_v5 = vadd.f32 1.0, %v7152_v2 }
 0xec8   :  { %v1308_v6 = vadd.f32 1.0, %v7154_v3 }
 0xec9   :  { %7155 = vrcp.f32 %v1208_v5 }
 0xeca   :  { %7157 = vrcp.f32 %v1308_v6 }
 0xed3   :  { %v7156_v7 = vpop.eup %7155 }
 0xed4   :  { %v7158_v9 = vpop.eup %7157  ;;  %v1212_v16 = vmul.f32 %v7156_v7, %v7761_v38 }
 0xed5   :  { %v1315_v19 = vmul.f32 %v7158_v9, %v1313_v14 }
 0xf37   :  { %v1215_v22 = vpop.permute.xlu1 %1214 }
 0xf38   :  { %v1217_v10 = vmul.f32 %v7156_v7, %v1215_v22  ;;  %v1318_v11 = vpop.permute.xlu0 %1317 }
 0xf39   :  { %v1320_v13 = vmul.f32 %v7158_v9, %v1318_v11 }
 0xf3a   :  { %1219 = vrot.lane.b32.xlu1 %v1217_v10, %s7395_s27 }
 0xf3b   :  { %1322 = vrot.lane.b32.xlu0 %v1320_v13, %s7395_s27 }
 0xfac   :  { %v1220_v18 = vpop.permute.xlu1 %1219 }
 0xfad   :  { %v7802_v20 = vadd.f32 %v1220_v18, %v1212_v16  ;;  %v1323_v21 = vpop.permute.xlu0 %1322 }
 0xfae   :  { %v7804_v23 = vadd.f32 %v1323_v21, %v1315_v19 }
 0xfaf   :  { %7159 = vtanh.f32 %v7802_v20 }
 0xfb0   :  { %7161 = vtanh.f32 %v7804_v23  ;;  %v1527_v62 = vrot.slane %v7804_v23, 6 }
 0xfb9   :  { %v7160_v24 = vpop.eup %7159 }
 0xfba   :  { %v7162_v25 = vpop.eup %7161  ;;  %1225 = vrot.lane.b32.xlu1 %v7160_v24, %s7394_s26 }
 0xfbb   :  { %1328 = vrot.lane.b32.xlu0 %v7162_v25, %s7394_s26 }
0x102c   :  { %v1226_v26 = vpop.permute.xlu1 %1225 }
0x102d   :  { %v7810_v27 = vmul.f32 %v7156_v7, %v1226_v26  ;;  %v1329_v28 = vpop.permute.xlu0 %1328 }
0x102e   :  { %v1331_v29 = vmul.f32 %v7158_v9, %v1329_v28 }
0x102f   :  { %v1337_v30 = vrot.slane %v7810_v27, 6 }
0x1030   :  { %1333 = vrot.lane.b32.xlu1 %v1331_v29, %s7395_s27  ;;  %v1440_v31 = vrot.slane %v1331_v29, 2 }
0x1031   :  { %1338 = vrot.lane.b32.xlu0 %v1337_v30, %s7394_s26 }
0x1034   :  { %1441 = vrot.lane.b32.xlu1 %v1440_v31, %s7395_s27 }
0x10a2   :  { %v1334_v32 = vpop.permute.xlu1 %1333 }
0x10a3   :  { %v1339_v33 = vpop.permute.xlu0 %1338 }
0x10a4   :  { %v1341_v35 = vsel %vm164_vm2, %v1334_v32, %v1339_v33 }
0x10a5   :  { %v1343_v37 = vrot.slane %v1341_v35, 2 }
0x10a6   :  { %v1442_v38 = vpop.permute.xlu1 %1441 }
0x10a7   :  { %6155 = vmatmul.mubr.msk.f32.vlgmr.msra.gmra.mrb[14].mxu1 %vm283_vm3, %v1343_v37  ;;  %6166 = vmatmul.mubr.msk.f32.vlgmr.msra.gmra.mrb[10].mxu0 %vm164_vm2, %v1442_v38 }
0x10a8   :  { %6775 = vmatpush3.bf16.msra.mxu0 %v7571_v34  ;;  %6787 = vmatpush3.bf16.msra.mxu1 %v7520_v8 }
0x10a9   :  { %6776 = vmatprep.subr.bf16.mxu0 %v7391_v0  ;;  %6788 = vmatprep.subr.bf16.mxu1 %v7391_v0 }
0x10aa   :  { %6184 = vmatprep.mubr.msk.f32.mxu0 %vm7392_vm1, %v7393_v4  ;;  %6195 = vmatprep.mubr.msk.f32.mxu1 %vm7392_vm1, %v7393_v4 }
0x10ac   :  { %6778 = vmatpush3.bf16.msra.mxu0 %v7577_v36  ;;  %6790 = vmatpush3.bf16.msra.mxu1 %v7533_v12 }
0x10ad   :  { %6779 = vmatprep.subr.bf16.mxu0 %v7391_v0  ;;  %6791 = vmatprep.subr.bf16.mxu1 %v7391_v0 }
0x10b0   :  { %6781 = vmatpush3.bf16.msra.mxu0 %v7587_v39 }
0x10b1   :  { %6782 = vmatprep.subr.bf16.mxu0 %v7391_v0 }
0x10b4   :  { %6784 = vmatpush3.bf16.msra.mxu0 %v7598_v43 }
0x117a   :  { %v1412_v8 = vpop.f32.mrb[14].mxu1  ;;  %v1511_v40 = vpop.f32.mrb[10].mxu0 }
0x117b   :  { %v1413_v17 = vadd.f32 %v7630_v48, %v1412_v8  ;;  %v1516_v41 = vrot.slane %v1511_v40, 4  ;;  %v6156_v42 = vpop.f32.mrb[15].mxu1  ;;  %v6167_v44 = vpop.f32.mrb[11].mxu0 }
0x117d   :  { %7163 = vtanh.f32 %v1413_v17  ;;  %v1518_v12 = vadd.f32 %v1516_v41, %v7552_v15  ;;  %v5586_v47 = vmul.f32 -1.442695, %v1413_v17 }
0x117f   :  { %7165 = vtanh.f32 %v1518_v12  ;;  %v5588_v49 = vmul.f32 -1.442695, %v1518_v12 }
0x1180   :  { %7167 = vpow2.f32 %v5586_v47 }
0x1181   :  { %7169 = vpow2.f32 %v5588_v49 }
0x1187   :  { %v7164_v45 = vpop.eup %7163 }
0x1188   :  { %1425 = vrot.lane.b32.xlu0 %v7164_v45, %s7394_s26 }
0x1189   :  { %v7166_v46 = vpop.eup %7165 }
0x118a   :  { %1531 = vrot.lane.b32.xlu1 %v7166_v46, %s7394_s26  ;;  %v7168_v51 = vpop.eup %7167 }
0x118b   :  { %v7170_v52 = vpop.eup %7169  ;;  %v1419_v53 = vadd.f32 1.0, %v7168_v51 }
0x118c   :  { %v1522_v54 = vadd.f32 1.0, %v7170_v52 }
0x118d   :  { %7171 = vrcp.f32 %v1419_v53 }
0x118e   :  { %7173 = vrcp.f32 %v1522_v54 }
0x1197   :  { %v7172_v55 = vpop.eup %7171 }
0x1198   :  { %v7174_v58 = vpop.eup %7173  ;;  %v1423_v61 = vmul.f32 %v7172_v55, %v7802_v20 }
0x1199   :  { %v1529_v2 = vmul.f32 %v7174_v58, %v1527_v62 }
0x11fa   :  { %v1426_v56 = vpop.permute.xlu0 %1425 }
0x11fb   :  { %v1428_v57 = vmul.f32 %v7172_v55, %v1426_v56 }
0x11fc   :  { %v1532_v59 = vpop.permute.xlu1 %1531 }
0x11fd   :  { %1430 = vrot.lane.b32.xlu0 %v1428_v57, %s7395_s27  ;;  %v1534_v60 = vmul.f32 %v7174_v58, %v1532_v59 }
0x11ff   :  { %1536 = vrot.lane.b32.xlu1 %v1534_v60, %s7395_s27 }
0x126f   :  { %v1431_v63 = vpop.permute.xlu0 %1430 }
0x1270   :  { %v7842_v1 = vadd.f32 %v1431_v63, %v1423_v61 }
0x1271   :  { %v1537_v3 = vpop.permute.xlu1 %1536 }
0x1272   :  { %7175 = vtanh.f32 %v7842_v1  ;;  %v7845_v5 = vadd.f32 %v1537_v3, %v1529_v2 }
0x1274   :  { %7177 = vtanh.f32 %v7845_v5  ;;  %v1741_v42 = vrot.slane %v7845_v5, 6 }
0x127c   :  { %v7176_v6 = vpop.eup %7175 }
0x127d   :  { %1436 = vrot.lane.b32.xlu0 %v7176_v6, %s7394_s26 }
0x127e   :  { %v7178_v7 = vpop.eup %7177 }
0x127f   :  { %1542 = vrot.lane.b32.xlu1 %v7178_v7, %s7394_s26 }
0x12ef   :  { %v1437_v22 = vpop.permute.xlu0 %1436 }
0x12f0   :  { %v7850_v9 = vmul.f32 %v7172_v55, %v1437_v22 }
0x12f1   :  { %v1543_v11 = vpop.permute.xlu1 %1542 }
0x12f2   :  { %v1551_v10 = vrot.slane %v7850_v9, 4  ;;  %v1545_v13 = vmul.f32 %v7174_v58, %v1543_v11  ;;  %v1874_v52 = vrot.slane %v7850_v9, 6 }
0x12f4   :  { %1552 = vrot.lane.b32.xlu1 %v1551_v10, %s7394_s26  ;;  %1547 = vrot.lane.b32.xlu0 %v1545_v13, %s7395_s27  ;;  %v1654_v14 = vrot.slane %v1545_v13, 4  ;;  %v1887_v58 = vsel %vm1881_vm4, %v7810_v27, %v1874_v52 }
0x12f8   :  { %1655 = vrot.lane.b32.xlu0 %v1654_v14, %s7395_s27 }
0x1366   :  { %v1553_v16 = vpop.permute.xlu1 %1552  ;;  %v1548_v18 = vpop.permute.xlu0 %1547 }
0x1367   :  { %v1555_v19 = vsel %vm164_vm2, %v1548_v18, %v1553_v16 }
0x1368   :  { %v1557_v20 = vrot.slane %v1555_v19, 4  ;;  %v1890_v19 = vld [vmem:[%s8747_s14] sm:$0xff] }
0x136a   :  { %v1656_v21 = vpop.permute.xlu0 %1655  ;;  %6185 = vmatmul.mubr.msk.f32.vlgmr.msra.gmra.mrb[12].mxu0 %vm283_vm3, %v1557_v20  ;;  %v1891_v20 = vld [vmem:[%s8747_s14 + $0x8] sm:$0xff] }
0x136b   :  { %6196 = vmatmul.mubr.msk.f32.vlgmr.msra.gmra.mrb[16].mxu1 %vm164_vm2, %v1656_v21  ;;  %v1892_v21 = vld [vmem:[%s8747_s14 + $0x10] sm:$0xff] }
0x136c   :  { %6793 = vmatpush3.bf16.msra.mxu1 %v7571_v34  ;;  %6214 = vmatprep.mubr.msk.f32.mxu1 %vm7392_vm1, %v7393_v4 }
0x136d   :  { %6794 = vmatprep.subr.bf16.mxu1 %v7391_v0 }
0x1370   :  { %6796 = vmatpush3.bf16.msra.mxu1 %v7577_v36 }
0x1371   :  { %6797 = vmatprep.subr.bf16.mxu1 %v7391_v0 }
0x1374   :  { %6799 = vmatpush3.bf16.msra.mxu1 %v7587_v39 }
0x1375   :  { %6800 = vmatprep.subr.bf16.mxu1 %v7391_v0 }
0x1378   :  { %6802 = vmatpush3.bf16.msra.mxu1 %v7598_v43 }
0x1379   :  { %6821 = vmatprep.subr.bf16.mxu1 %v7391_v0 }
0x143d   :  { %v1626_v23 = vpop.f32.mrb[12].mxu0 }
0x143e   :  { %v1627_v34 = vadd.f32 %v7630_v48, %v1626_v23  ;;  %v6186_v24 = vpop.f32.mrb[13].mxu0  ;;  %v1725_v25 = vpop.f32.mrb[16].mxu1  ;;  %v6803_v23 = vpack.c.bf16 %v1891_v20, %v1890_v19 }
0x143f   :  { %v1730_v26 = vrot.slane %v1725_v25, 2  ;;  %v6197_v28 = vpop.f32.mrb[17].mxu1  ;;  %v1988_v25 = vld [vmem:[%s8748_s7] sm:$0xff] }
0x1440   :  { %7179 = vtanh.f32 %v1627_v34  ;;  %v5590_v43 = vmul.f32 -1.442695, %v1627_v34  ;;  %v1893_v34 = vld [vmem:[%s8747_s14 + $0x18] sm:$0xff]  ;;  %6804 = vmatprep.subr.bf16.mxu0 %v6803_v23 }
0x1441   :  { %v1732_v36 = vadd.f32 %v1730_v26, %v7552_v15  ;;  %v6807_v24 = vpack.c.bf16 %v1893_v34, %v1892_v21  ;;  %v1989_v26 = vld [vmem:[%s8748_s7 + $0x8] sm:$0xff]  ;;  %6806 = vmatpush3.bf16.msra.mxu0 %v6803_v23  ;;  %v8048_v23 = vld [vmem:[%s8753_s11] ss:$0 sm:$0xff] }
0x1442   :  { %v6811_v28 = vpack.c.bf16 %v1989_v26, %v1988_v25 }
0x1443   :  { %7181 = vtanh.f32 %v1732_v36  ;;  %v5592_v30 = vmul.f32 -1.442695, %v1732_v36  ;;  %6808 = vmatprep.subr.bf16.mxu0 %v6807_v24 }
0x1444   :  { %7183 = vpow2.f32 %v5590_v43 }
0x1445   :  { %7185 = vpow2.f32 %v5592_v30  ;;  %6810 = vmatpush3.bf16.msra.mxu0 %v6807_v24 }
0x1446   :  { %6812 = vmatprep.subr.bf16.mxu0 %v6811_v28 }
0x144a   :  { %v7180_v29 = vpop.eup %7179 }
0x144b   :  { %1639 = vrot.lane.b32.xlu1 %v7180_v29, %s7394_s26 }
0x144d   :  { %v7182_v39 = vpop.eup %7181 }
0x144e   :  { %1745 = vrot.lane.b32.xlu0 %v7182_v39, %s7394_s26  ;;  %v7184_v31 = vpop.eup %7183 }
0x144f   :  { %v7186_v32 = vpop.eup %7185  ;;  %v1633_v33 = vadd.f32 1.0, %v7184_v31  ;;  %v1986_v31 = vld [vmem:[%s8749_s1] sm:$0xff] }
0x1450   :  { %v1736_v35 = vadd.f32 1.0, %v7186_v32  ;;  %v2080_v32 = vld [vmem:[%s8750_s8] sm:$0xff] }
0x1451   :  { %7187 = vrcp.f32 %v1633_v33  ;;  %v2081_v33 = vld [vmem:[%s8750_s8 + $0x8] sm:$0xff] }
0x1452   :  { %7189 = vrcp.f32 %v1736_v35 }
0x145b   :  { %v7188_v37 = vpop.eup %7187 }
0x145c   :  { %v7190_v8 = vpop.eup %7189  ;;  %v1637_v41 = vmul.f32 %v7188_v37, %v7842_v1 }
0x145d   :  { %v1743_v45 = vmul.f32 %v7190_v8, %v1741_v42 }
0x14bd   :  { %v1640_v38 = vpop.permute.xlu1 %1639 }
0x14be   :  { %v1642_v15 = vmul.f32 %v7188_v37, %v1640_v38  ;;  %v7943_v38 = vpack.c.bf16 %v2081_v33, %v2080_v32 }
0x14c0   :  { %v1746_v40 = vpop.permute.xlu0 %1745  ;;  %1644 = vrot.lane.b32.xlu1 %v1642_v15, %s7395_s27  ;;  %v2082_v15 = vld [vmem:[%s8750_s8 + $0x10] sm:$0xff] }
0x14c1   :  { %v1748_v17 = vmul.f32 %v7190_v8, %v1746_v40 }
0x14c3   :  { %1750 = vrot.lane.b32.xlu0 %v1748_v17, %s7395_s27 }
0x1532   :  { %v1645_v44 = vpop.permute.xlu1 %1644 }
0x1533   :  { %v1647_v12 = vadd.f32 %v1645_v44, %v1637_v41  ;;  %v5598_v44 = vld [vmem:[%s8751_s9] ss:$0 sm:$0xff] }
0x1535   :  { %7191 = vtanh.f32 %v1647_v12  ;;  %v1751_v46 = vpop.permute.xlu0 %1750 }
0x1536   :  { %v7877_v47 = vadd.f32 %v1751_v46, %v1743_v45 }
0x1538   :  { %7193 = vtanh.f32 %v7877_v47 }
0x153f   :  { %v7192_v49 = vpop.eup %7191 }
0x1540   :  { %1650 = vrot.lane.b32.xlu1 %v7192_v49, %s7394_s26 }
0x1542   :  { %v7194_v51 = vpop.eup %7193 }
0x1543   :  { %1756 = vrot.lane.b32.xlu0 %v7194_v51, %s7394_s26 }
0x15b2   :  { %v1651_v53 = vpop.permute.xlu1 %1650 }
0x15b3   :  { %v1653_v54 = vmul.f32 %v7188_v37, %v1651_v53  ;;  %v1987_v37 = vld [vmem:[%s8749_s1 + $0x8] sm:$0xff] }
0x15b5   :  { %v1765_v55 = vrot.slane %v1653_v54, 2  ;;  %v1876_v56 = vrot.slane %v1653_v54, 4  ;;  %v1757_v57 = vpop.permute.xlu0 %1756 }
0x15b6   :  { %v1759_v59 = vmul.f32 %v7190_v8, %v1757_v57  ;;  %v2083_v8 = vld [vmem:[%s8750_s8 + $0x18] sm:$0xff] }
0x15b7   :  { %v1888_v60 = vsel %vm1883_vm5, %v1887_v58, %v1876_v56  ;;  %1766 = vrot.lane.b32.xlu0 %v1765_v55, %s7394_s26  ;;  %v7954_v40 = vpack.c.bf16 %v2083_v8, %v2082_v15 }
0x15b8   :  { %1761 = vrot.lane.b32.xlu1 %v1759_v59, %s7395_s27  ;;  %v2084_v13 = vrot.slane %v1759_v59, 6 }
0x1629   :  { %v1767_v61 = vpop.permute.xlu0 %1766 }
0x162a   :  { %v1762_v62 = vpop.permute.xlu1 %1761 }
0x162b   :  { %v1769_v63 = vsel %vm164_vm2, %v1762_v62, %v1767_v61  ;;  %v2168_v61 = vrot.slane %v7877_v47, 6  ;;  %v2198_v47 = vld [vmem:[%s8752_s10 + $0x18] sm:$0xff] }
0x162c   :  { %v1771_v1 = vrot.slane %v1769_v63, 6 }
0x162e   :  { %6215 = vmatmul.mubr.msk.f32.vlgmr.msra.gmra.mrb[18].mxu1 %vm283_vm3, %v1771_v1 }
0x162f   :  { %6262 = vmatprep.mubr.msk.f32.mxu1 %vm7392_vm1, %v7393_v4 }
0x1701   :  { %v1840_v2 = vpop.f32.mrb[18].mxu1 }
0x1702   :  { %v1841_v27 = vadd.f32 %v7630_v48, %v1840_v2  ;;  %v6216_v3 = vpop.f32.mrb[19].mxu1  ;;  %v2195_v2 = vld [vmem:[%s8752_s10] sm:$0xff] }
0x1703   :  { %v2197_v3 = vld [vmem:[%s8752_s10 + $0x10] sm:$0xff] }
0x1704   :  { %7195 = vtanh.f32 %v1841_v27  ;;  %v5594_v6 = vmul.f32 -1.442695, %v1841_v27  ;;  %v2196_v27 = vld [vmem:[%s8752_s10 + $0x8] sm:$0xff] }
0x1706   :  { %7197 = vpow2.f32 %v5594_v6  ;;  %v7997_v6 = vpack.c.bf16 %v2198_v47, %v2197_v3 }
0x170e   :  { %v7196_v5 = vpop.eup %7195 }
0x170f   :  { %1853 = vrot.lane.b32.xlu1 %v7196_v5, %s7394_s26  ;;  %v7991_v5 = vpack.c.bf16 %v2196_v27, %v2195_v2 }
0x1710   :  { %v7198_v7 = vpop.eup %7197 }
0x1711   :  { %v1847_v22 = vadd.f32 1.0, %v7198_v7  ;;  %6823 = vmatpush3.bf16.msra.mxu1 %v7991_v5  ;;  %v2199_v7 = vld [vmem:[%s8752_s10 + $0x20] sm:$0xff] }
0x1712   :  { %6824 = vmatprep.subr.bf16.mxu1 %v7391_v0 }
0x1713   :  { %7199 = vrcp.f32 %v1847_v22  ;;  %v2200_v22 = vld [vmem:[%s8752_s10 + $0x28] sm:$0xff] }
0x1715   :  { %6826 = vmatpush3.bf16.msra.mxu1 %v7997_v6 }
0x1716   :  { %6827 = vmatprep.subr.bf16.mxu1 %v7391_v0 }
0x171d   :  { %v7200_v9 = vpop.eup %7199 }
0x171e   :  { %v1851_v48 = vmul.f32 %v7200_v9, %v1647_v12 }
0x1781   :  { %v1854_v10 = vpop.permute.xlu1 %1853 }
0x1782   :  { %v1856_v11 = vmul.f32 %v7200_v9, %v1854_v10 }
0x1784   :  { %1858 = vrot.lane.b32.xlu0 %v1856_v11, %s7395_s27  ;;  %v2201_v11 = vld [vmem:[%s8752_s10 + $0x30] sm:$0xff] }
0x1788   :  { %1903 = vrot.lane.b32.xlu0 %v7773_v50, %s7395_s27 }
0x178c   :  { %2085 = vrot.lane.b32.xlu0 %v2084_v13, %s7395_s27  ;;  %v2202_v13 = vld [vmem:[%s8752_s10 + $0x38] sm:$0xff] }
0x17f6   :  { %v1859_v14 = vpop.permute.xlu0 %1858 }
0x17f7   :  { %v7898_v16 = vadd.f32 %v1859_v14, %v1851_v48  ;;  %v8018_v48 = vpack.c.bf16 %v2202_v13, %v2201_v11 }
0x17f9   :  { %7201 = vtanh.f32 %v7898_v16 }
0x17fa   :  { %v1904_v18 = vpop.permute.xlu0 %1903 }
0x17fb   :  { %6225 = vmatprep.mubr.msk.f32.mxu0 %vm164_vm2, %v1904_v18 }
0x17fe   :  { %v2086_v17 = vpop.permute.xlu0 %2085 }
0x1803   :  { %v7202_v36 = vpop.eup %7201 }
0x1804   :  { %1864 = vrot.lane.b32.xlu1 %v7202_v36, %s7394_s26 }
0x1876   :  { %v1865_v29 = vpop.permute.xlu1 %1864 }
0x1877   :  { %v7921_v39 = vmul.f32 %v7200_v9, %v1865_v29  ;;  %v8007_v9 = vpack.c.bf16 %v2200_v22, %v2199_v7 }
0x1879   :  { %v1879_v43 = vrot.slane %v7921_v39, 2  ;;  %6829 = vmatpush3.bf16.msra.mxu1 %v8007_v9 }
0x187a   :  { %6830 = vmatprep.subr.bf16.mxu1 %v7391_v0 }
0x187b   :  { %v7925_v30 = vsel %vm1885_vm6, %v1888_v60, %v1879_v43 }
0x187c   :  { %1905 = vrot.lane.b32.xlu1 %v7925_v30, %s7395_s27 }
0x187d   :  { %6832 = vmatpush3.bf16.msra.mxu1 %v8018_v48 }
0x187e   :  { %6851 = vmatprep.subr.bf16.mxu1 %v7391_v0 }
0x18ee   :  { %v1906_v35 = vpop.permute.xlu1 %1905 }
0x18ef   :  { %6226 = vmatmul.mubr.msk.f32.vlgmr.msra.gmra.mrb[14].mxu0 %vm164_vm2, %v1906_v35 }
0x18f0   :  { %6814 = vmatpush3.bf16.msra.mxu0 %v6811_v28  ;;  %6232 = vmatprep.mubr.msk.f32.mxu0 %vm78_vm0, %v1986_v31 }
0x18f1   :  { %6815 = vmatprep.subr.bf16.mxu0 %v7391_v0 }
0x18f3   :  { %6233 = vmatmul.mubr.msk.f32.vlgmr.msra.gmra.mrb[16].mxu0 %vm78_vm0, %v1987_v37 }
0x18f4   :  { %6817 = vmatpush3.bf16.msra.mxu0 %v7943_v38  ;;  %6243 = vmatprep.mubr.msk.f32.mxu0 %vm7392_vm1, %v7393_v4 }
0x18f5   :  { %6818 = vmatprep.subr.bf16.mxu0 %v7391_v0 }
0x18f8   :  { %6820 = vmatpush3.bf16.msra.mxu0 %v7954_v40 }
0x18f9   :  { %6833 = vmatprep.subr.bf16.mxu0 %v7391_v0 }
0x18fb   :  { %6244 = vmatmul.mubr.msk.f32.vlgmr.msra.gmra.mrb[18].mxu0 %vm164_vm2, %v2086_v17 }
0x18fc   :  { %6273 = vmatprep.mubr.msk.f32.mxu0 %vm7392_vm1, %v7393_v4 }
0x19c2   :  { %v7964_v41 = vpop.f32.mrb[14].mxu0 }
0x19c3   :  { %v7966_v42 = vpop.f32.mrb[15].mxu0 }
0x19c6   :  { %v6234_v12 = vpop.f32.mrb[16].mxu0 }
0x19c7   :  { %v7971_v45 = vadd.f32 %v6234_v12, %v5598_v44  ;;  %v2069_v46 = vpop.f32.mrb[17].mxu0 }
0x19c8   :  { %v7973_v49 = vadd.f32 %v5598_v44, %v2069_v46 }
0x19ce   :  { %v2155_v51 = vpop.f32.mrb[18].mxu0 }
0x19cf   :  { %v2159_v52 = vadd.f32 %v2155_v51, %v7973_v49  ;;  %v6245_v53 = vpop.f32.mrb[19].mxu0 }
0x19d1   :  { %7203 = vtanh.f32 %v2159_v52  ;;  %v5602_v55 = vmul.f32 -1.442695, %v2159_v52 }
0x19d3   :  { %7205 = vpow2.f32 %v5602_v55 }
0x19db   :  { %v7204_v54 = vpop.eup %7203 }
0x19dc   :  { %2172 = vrot.lane.b32.xlu1 %v7204_v54, %s7394_s26 }
0x19dd   :  { %v7206_v56 = vpop.eup %7205 }
0x19de   :  { %v2163_v57 = vadd.f32 1.0, %v7206_v56 }
0x19e0   :  { %7207 = vrcp.f32 %v2163_v57 }
0x19ea   :  { %v7208_v58 = vpop.eup %7207 }
0x19eb   :  { %v2170_v62 = vmul.f32 %v7208_v58, %v2168_v61  ;;  %v2309_v61 = vld [vmem:[%s8754_s12 + $0x10] sm:$0xff] }
0x1a4e   :  { %v2173_v59 = vpop.permute.xlu1 %2172 }
0x1a4f   :  { %v2175_v60 = vmul.f32 %v7208_v58, %v2173_v59 }
0x1a51   :  { %2177 = vrot.lane.b32.xlu0 %v2175_v60, %s7395_s27  ;;  %v2308_v60 = vld [vmem:[%s8754_s12 + $0x8] sm:$0xff] }
0x1ac3   :  { %v2178_v63 = vpop.permute.xlu0 %2177 }
0x1ac4   :  { %v7979_v1 = vadd.f32 %v2178_v63, %v2170_v62  ;;  %v2310_v63 = vld [vmem:[%s8754_s12 + $0x18] sm:$0xff] }
0x1ac6   :  { %7209 = vtanh.f32 %v7979_v1  ;;  %v2703_v55 = vrot.slane %v7979_v1, 6  ;;  %v8080_v1 = vpack.c.bf16 %v2310_v63, %v2309_v61  ;;  %v7396_v61 = vmov 0  }
0x1ac7   :  { %7073 = vset.pattern.permute.xlu0 %v7396_v61  ;;  %7074 = vset.pattern.permute.xlu1 %v7396_v61 }
0x1ad0   :  { %v7210_v10 = vpop.eup %7209 }
0x1ad1   :  { %2183 = vrot.lane.b32.xlu1 %v7210_v10, %s7394_s26 }
0x1ad5   :  { %2191 = vrot.lane.b32.xlu1 %v7921_v39, %s7394_s26 }
0x1b43   :  { %v2184_v14 = vpop.permute.xlu1 %2183 }
0x1b44   :  { %v2186_v18 = vmul.f32 %v7208_v58, %v2184_v14 }
0x1b46   :  { %2188 = vrot.lane.b32.xlu0 %v2186_v18, %s7395_s27 }
0x1b47   :  { %v2192_v19 = vpop.permute.xlu1 %2191 }
0x1bb8   :  { %v2189_v20 = vpop.permute.xlu0 %2188 }
0x1bb9   :  { %v2194_v21 = vsel %vm164_vm2, %v2189_v20, %v2192_v19 }
0x1bba   :  { %6263 = vmatmul.mubr.msk.f32.vlgmr.msra.gmra.mrb[20].mxu1 %vm283_vm3, %v2194_v21  ;;  %v25_v21 = vstv %s8755_s17 }
0x1bbb   :  { %6853 = vmatpush3.bf16.msra.mxu1 %v7943_v38  ;;  %6303 = vmatprep.mubr.msk.f32.mxu1 %vm7392_vm1, %v7393_v4  ;;  %26 = vst [vmem:[#allocation2] sm:$0x1] %v25_v21 }
0x1bbc   :  { %6854 = vmatprep.subr.bf16.mxu1 %v7391_v0 }
0x1bbf   :  { %6856 = vmatpush3.bf16.msra.mxu1 %v7954_v40 }
0x1bc0   :  { %6857 = vmatprep.subr.bf16.mxu1 %v7391_v0 }
0x1bc2   :  { %6304 = vmatmul.mubr.msk.f32.vlgmr.msra.gmra.mrb[22].mxu1 %vm164_vm2, %v2189_v20 }
0x1bc3   :  { %6859 = vmatpush3.bf16.msra.mxu1 %v7991_v5  ;;  %6322 = vmatprep.mubr.msk.f32.mxu1 %vm7392_vm1, %v7393_v4 }
0x1bc4   :  { %6860 = vmatprep.subr.bf16.mxu1 %v7391_v0 }
0x1bc7   :  { %6862 = vmatpush3.bf16.msra.mxu1 %v7997_v6 }
0x1bc8   :  { %6863 = vmatprep.subr.bf16.mxu1 %v7391_v0 }
0x1bcb   :  { %6865 = vmatpush3.bf16.msra.mxu1 %v8007_v9 }
0x1bcc   :  { %6866 = vmatprep.subr.bf16.mxu1 %v7391_v0 }
0x1bcf   :  { %6868 = vmatpush3.bf16.msra.mxu1 %v8018_v48 }
0x1bd0   :  { %6887 = vmatprep.subr.bf16.mxu1 %v7391_v0 }
0x1c8d   :  { %v2279_v34 = vpop.f32.mrb[20].mxu1 }
0x1c8e   :  { %v2280_v24 = vadd.f32 %v8048_v23, %v2279_v34  ;;  %v6264_v25 = vpop.f32.mrb[21].mxu1  ;;  %v8121_v34 = vld [vmem:[%s8756_s13] ss:$0 sm:$0xff] }
0x1c90   :  { %7211 = vtanh.f32 %v2280_v24  ;;  %v5605_v31 = vmul.f32 -1.442695, %v2280_v24 }
0x1c95   :  { %v2687_v26 = vpop.f32.mrb[22].mxu1 }
0x1c96   :  { %v2692_v28 = vrot.slane %v2687_v26, 6  ;;  %v6305_v36 = vpop.f32.mrb[23].mxu1 }
0x1c98   :  { %v2694_v29 = vadd.f32 %v2692_v28, %v7973_v49  ;;  %v5595_v28 = vld [vmem:[%s8757_s15] ss:$0 sm:$0xff] }
0x1c9a   :  { %v7212_v39 = vpop.eup %7211  ;;  %7213 = vtanh.f32 %v2694_v29  ;;  %v5613_v32 = vmul.f32 -1.442695, %v2694_v29 }
0x1c9b   :  { %2292 = vrot.lane.b32.xlu0 %v7212_v39, %s7394_s26  ;;  %7215 = vpow2.f32 %v5605_v31  ;;  %v8129_v31 = vadd.f32 %v7964_v41, %v5595_v28  ;;  %v8141_v41 = vld [vmem:[%s8758_s16] ss:$0 sm:$0xff] }
0x1c9c   :  { %7217 = vpow2.f32 %v5613_v32  ;;  %v8132_v32 = vadd.f32 %v5595_v28, %v7966_v42 }
0x1ca4   :  { %v7214_v43 = vpop.eup %7213 }
0x1ca5   :  { %2707 = vrot.lane.b32.xlu1 %v7214_v43, %s7394_s26  ;;  %v7216_v33 = vpop.eup %7215 }
0x1ca6   :  { %v2286_v35 = vadd.f32 1.0, %v7216_v33  ;;  %v7218_v37 = vpop.eup %7217 }
0x1ca7   :  { %v2698_v15 = vadd.f32 1.0, %v7218_v37 }
0x1ca8   :  { %7219 = vrcp.f32 %v2286_v35 }
0x1ca9   :  { %7221 = vrcp.f32 %v2698_v15 }
0x1cb2   :  { %v7220_v8 = vpop.eup %7219 }
0x1cb3   :  { %v7222_v12 = vpop.eup %7221  ;;  %v2290_v52 = vmul.f32 %v7220_v8, %v7898_v16  ;;  %v2307_v16 = vld [vmem:[%s8754_s12] sm:$0xff] }
0x1cb4   :  { %v2705_v56 = vmul.f32 %v7222_v12, %v2703_v55  ;;  %v8074_v62 = vpack.c.bf16 %v2308_v60, %v2307_v16 }
0x1cb6   :  { %6835 = vmatpush3.bf16.msra.mxu0 %v8074_v62 }
0x1cb7   :  { %6836 = vmatprep.subr.bf16.mxu0 %v7391_v0 }
0x1cba   :  { %6838 = vmatpush3.bf16.msra.mxu0 %v8080_v1 }
0x1cbb   :  { %6839 = vmatprep.subr.bf16.mxu0 %v7391_v0 }
0x1d0d   :  { %v2293_v17 = vpop.permute.xlu0 %2292 }
0x1d0e   :  { %v2295_v44 = vmul.f32 %v7220_v8, %v2293_v17 }
0x1d10   :  { %2297 = vrot.lane.b32.xlu0 %v2295_v44, %s7395_s27 }
0x1d17   :  { %v2708_v46 = vpop.permute.xlu1 %2707 }
0x1d18   :  { %v2710_v51 = vmul.f32 %v7222_v12, %v2708_v46 }
0x1d1a   :  { %2712 = vrot.lane.b32.xlu1 %v2710_v51, %s7395_s27 }
0x1d82   :  { %v2298_v53 = vpop.permute.xlu0 %2297 }
0x1d83   :  { %v8057_v54 = vadd.f32 %v2298_v53, %v2290_v52 }
0x1d85   :  { %7223 = vtanh.f32 %v8057_v54 }
0x1d8c   :  { %v2713_v57 = vpop.permute.xlu1 %2712 }
0x1d8d   :  { %v8061_v58 = vadd.f32 %v2713_v57, %v2705_v56 }
0x1d8f   :  { %v7224_v59 = vpop.eup %7223  ;;  %7225 = vtanh.f32 %v8061_v58 }
0x1d90   :  { %2303 = vrot.lane.b32.xlu0 %v7224_v59, %s7394_s26 }
0x1d99   :  { %v7226_v2 = vpop.eup %7225 }
0x1d9a   :  { %2718 = vrot.lane.b32.xlu1 %v7226_v2, %s7394_s26 }
0x1e02   :  { %v2304_v27 = vpop.permute.xlu0 %2303 }
0x1e03   :  { %v2306_v3 = vmul.f32 %v7220_v8, %v2304_v27 }
0x1e05   :  { %2319 = vrot.lane.b32.xlu0 %v2306_v3, %s7395_s27  ;;  %v2726_v47 = vrot.slane %v2306_v3, 6 }
0x1e09   :  { %2727 = vrot.lane.b32.xlu0 %v2726_v47, %s7394_s26 }
0x1e0c   :  { %v2719_v7 = vpop.permute.xlu1 %2718 }
0x1e0d   :  { %v2721_v22 = vmul.f32 %v7222_v12, %v2719_v7 }
0x1e0f   :  { %2723 = vrot.lane.b32.xlu1 %v2721_v22, %s7395_s27  ;;  %v3103_v10 = vrot.slane %v2721_v22, 2  ;;  %v8151_v22 = vld [vmem:[#allocation2] ss:$0 sm:$0xff] }
0x1e13   :  { %3104 = vrot.lane.b32.xlu1 %v3103_v10, %s7395_s27 }
0x1e77   :  { %v8090_v11 = vpop.permute.xlu0 %2319 }
0x1e78   :  { %6274 = vmatmul.mubr.msk.f32.vlgmr.msra.gmra.mrb[20].mxu0 %vm164_vm2, %v8090_v11 }
0x1e79   :  { %6292 = vmatprep.mubr.msk.f32.mxu0 %vm7392_vm1, %v7393_v4 }
0x1e7b   :  { %v2728_v13 = vpop.permute.xlu0 %2727 }
0x1e81   :  { %v2724_v14 = vpop.permute.xlu1 %2723 }
0x1e82   :  { %v2730_v18 = vsel %vm164_vm2, %v2724_v14, %v2728_v13 }
0x1e83   :  { %v2732_v19 = vrot.slane %v2730_v18, 2 }
0x1e85   :  { %6323 = vmatmul.mubr.msk.f32.vlgmr.msra.gmra.mrb[24].mxu1 %vm283_vm3, %v2732_v19  ;;  %v3105_v20 = vpop.permute.xlu1 %3104 }
0x1e86   :  { %6889 = vmatpush3.bf16.msra.mxu1 %v7943_v38  ;;  %6363 = vmatprep.mubr.msk.f32.mxu1 %vm7392_vm1, %v7393_v4 }
0x1e87   :  { %6890 = vmatprep.subr.bf16.mxu1 %v7391_v0 }
0x1e8a   :  { %6892 = vmatpush3.bf16.msra.mxu1 %v7954_v40 }
0x1e8b   :  { %6893 = vmatprep.subr.bf16.mxu1 %v7391_v0 }
0x1e8d   :  { %6364 = vmatmul.mubr.msk.f32.vlgmr.msra.gmra.mrb[26].mxu1 %vm164_vm2, %v3105_v20 }
0x1e8e   :  { %6895 = vmatpush3.bf16.msra.mxu1 %v7991_v5  ;;  %6382 = vmatprep.mubr.msk.f32.mxu1 %vm7392_vm1, %v7393_v4 }
0x1e8f   :  { %6896 = vmatprep.subr.bf16.mxu1 %v7391_v0 }
0x1e92   :  { %6898 = vmatpush3.bf16.msra.mxu1 %v7997_v6 }
0x1e93   :  { %6899 = vmatprep.subr.bf16.mxu1 %v7391_v0 }
0x1e96   :  { %6901 = vmatpush3.bf16.msra.mxu1 %v8007_v9 }
0x1e97   :  { %6902 = vmatprep.subr.bf16.mxu1 %v7391_v0 }
0x1e9a   :  { %6904 = vmatpush3.bf16.msra.mxu1 %v8018_v48 }
0x1e9b   :  { %6923 = vmatprep.subr.bf16.mxu1 %v7391_v0 }
0x1f4b   :  { %v2389_v24 = vpop.f32.mrb[20].mxu0 }
0x1f4c   :  { %v2390_v25 = vadd.f32 %v8121_v34, %v2389_v24  ;;  %v6275_v26 = vpop.f32.mrb[21].mxu0 }
0x1f4e   :  { %v2394_v36 = vrot.slane %v2390_v25, 6  ;;  %v2396_v29 = vrot.slane %v2390_v25, 4  ;;  %v2398_v39 = vrot.slane %v2390_v25, 2 }
0x1f50   :  { %v2400_v43 = vsel %vm1881_vm4, %v2390_v25, %v2394_v36 }
0x1f51   :  { %v2401_v33 = vsel %vm1883_vm5, %v2400_v43, %v2396_v29 }
0x1f52   :  { %v2402_v35 = vsel %vm1885_vm6, %v2401_v33, %v2398_v39 }
0x1f53   :  { %v2404_v37 = vadd.f32 %v2402_v35, %v8129_v31  ;;  %v2403_v15 = vadd.f32 %v2402_v35, %v8132_v32 }
0x1f55   :  { %7227 = vtanh.f32 %v2404_v37 }
0x1f56   :  { %7229 = vtanh.f32 %v2403_v15 }
0x1f58   :  { %v2801_v8 = vpop.f32.mrb[24].mxu1 }
0x1f59   :  { %v6324_v17 = vpop.f32.mrb[25].mxu1  ;;  %v2802_v59 = vadd.f32 %v8048_v23, %v2801_v8 }
0x1f5b   :  { %v5615_v2 = vmul.f32 -1.442695, %v2802_v59 }
0x1f5f   :  { %v7228_v44 = vpop.eup %7227 }
0x1f60   :  { %v7230_v42 = vpop.eup %7229  ;;  %v3174_v12 = vpop.f32.mrb[26].mxu1  ;;  %v2414_v46 = vmul.f32 %v7228_v44, %v8141_v41 }
0x1f61   :  { %v3179_v51 = vrot.slane %v3174_v12, 4  ;;  %v6365_v52 = vpop.f32.mrb[27].mxu1  ;;  %v2413_v53 = vmul.f32 %v7230_v42, %v8141_v41 }
0x1f62   :  { %v2418_v55 = vsel %vm164_vm2, %v2414_v46, 0.0 }
0x1f63   :  { %2419 = vadd.xlane.f32.xlu1 %v2418_v55  ;;  %v2415_v56 = vsel %vm164_vm2, %v2413_v53, 0.0  ;;  %v3181_v57 = vadd.f32 %v3179_v51, %v7973_v49 }
0x1f64   :  { %2416 = vadd.xlane.f32.xlu0 %v2415_v56 }
0x1f65   :  { %7231 = vtanh.f32 %v3181_v57  ;;  %v5619_v63 = vmul.f32 -1.442695, %v3181_v57 }
0x1f66   :  { %7233 = vtanh.f32 %v2802_v59 }
0x1f67   :  { %7235 = vpow2.f32 %v5619_v63 }
0x1f68   :  { %7237 = vpow2.f32 %v5615_v2 }
0x1f6f   :  { %v7232_v16 = vpop.eup %7231 }
0x1f70   :  { %v7234_v60 = vpop.eup %7233 }
0x1f71   :  { %v7236_v27 = vpop.eup %7235 }
0x1f72   :  { %v7238_v3 = vpop.eup %7237  ;;  %v3185_v47 = vadd.f32 1.0, %v7236_v27 }
0x1f73   :  { %v2808_v7 = vadd.f32 1.0, %v7238_v3 }
0x1f74   :  { %3194 = vrot.lane.b32.xlu1 %v7232_v16, %s7394_s26  ;;  %7239 = vrcp.f32 %v3185_v47 }
0x1f75   :  { %7241 = vrcp.f32 %v2808_v7 }
0x1f7a   :  { %2814 = vrot.lane.b32.xlu0 %v7234_v60, %s7394_s26 }
0x1f7e   :  { %v8154_v18 = vpop.eup %7239 }
0x1f7f   :  { %v8156_v21 = vpop.eup %7241 }
0x1ff0   :  { %v2420_v10 = vpop.xlane.xlu1 %2419 }
0x1ff1   :  { %v2417_v13 = vpop.xlane.xlu0 %2416  ;;  %v2428_v29 = vadd.f32 %v8151_v22, %v2420_v10 }
0x1ff2   :  { %v2427_v14 = vadd.f32 %v8151_v22, %v2417_v13 }
0x1ff3   :  { %v2441_v35 = vrot.slane %v2428_v29, 2  ;;  %v2444_v15 = vrot.slane %v2428_v29, 4  ;;  %v2447_v17 = vrot.slane %v2428_v29, 6 }
0x1ff4   :  { %v2430_v19 = vrot.slane %v2427_v14, 2  ;;  %v3195_v20 = vpop.permute.xlu1 %3194  ;;  %v2433_v28 = vrot.slane %v2427_v14, 4  ;;  %v2436_v43 = vrot.slane %v2427_v14, 6 }
0x1ff5   :  { %v3197_v24 = vmul.f32 %v8154_v18, %v3195_v20  ;;  %v2815_v25 = vpop.permute.xlu0 %2814 }
0x1ff6   :  { %v2432_v26 = vmax.f32 %v2427_v14, %v2430_v19  ;;  %v2817_v36 = vmul.f32 %v8156_v21, %v2815_v25 }
0x1ff7   :  { %3199 = vrot.lane.b32.xlu1 %v3197_v24, %s7395_s27 }
0x1ff8   :  { %v2435_v39 = vmax.f32 %v2432_v26, %v2433_v28  ;;  %2819 = vrot.lane.b32.xlu0 %v2817_v36, %s7395_s27  ;;  %v3190_v26 = vrot.slane %v8061_v58, 6  ;;  %v2532_v58 = vld [vmem:[%s8759_s18 + $0x8] sm:$0xff] }
0x1ffa   :  { %v2438_v33 = vmax.f32 %v2435_v39, %v2436_v43  ;;  %v3192_v28 = vmul.f32 %v8154_v18, %v3190_v26 }
0x1ffc   :  { %v2439_v37 = vmax.f32 %v2438_v33, %v2428_v29 }
0x1ffe   :  { %v2443_v8 = vmax.f32 %v2439_v37, %v2441_v35  ;;  %v2531_v35 = vld [vmem:[%s8759_s18] sm:$0xff] }
0x1fff   :  { %v8185_v37 = vpack.c.bf16 %v2532_v58, %v2531_v35 }
0x2000   :  { %v2446_v44 = vmax.f32 %v2443_v8, %v2444_v15  ;;  %v2534_v15 = vld [vmem:[%s8759_s18 + $0x18] sm:$0xff] }
0x2001   :  { %6841 = vmatpush3.bf16.msra.mxu0 %v8185_v37 }
0x2002   :  { %v2449_v42 = vmax.f32 %v2446_v44, %v2447_v17  ;;  %6842 = vmatprep.subr.bf16.mxu0 %v7391_v0  ;;  %v2535_v44 = vld [vmem:[%s8759_s18 + $0x20] sm:$0xff] }
0x2004   :  { %v2451_v12 = vrot.slane %v2449_v42, 6  ;;  %v2453_v46 = vrot.slane %v2449_v42, 4  ;;  %v2455_v51 = vrot.slane %v2449_v42, 2 }
0x2006   :  { %v2457_v52 = vsel %vm1881_vm4, %v2449_v42, %v2451_v12  ;;  %v2536_v42 = vld [vmem:[%s8759_s18 + $0x28] sm:$0xff] }
0x2007   :  { %v2458_v53 = vsel %vm1883_vm5, %v2457_v52, %v2453_v46  ;;  %v8203_v46 = vpack.c.bf16 %v2536_v42, %v2535_v44  ;;  %v2538_v52 = vld [vmem:[%s8759_s18 + $0x38] sm:$0xff] }
0x2008   :  { %v2459_v55 = vsel %vm1885_vm6, %v2458_v53, %v2455_v51  ;;  %v2537_v51 = vld [vmem:[%s8759_s18 + $0x30] sm:$0xff] }
0x2009   :  { %v2460_v56 = vsub.f32 %v2427_v14, %v2459_v55  ;;  %v2461_v57 = vsub.f32 %v2428_v29, %v2459_v55  ;;  %v2812_v29 = vmul.f32 %v8156_v21, %v8057_v54  ;;  %v2533_v54 = vld [vmem:[%s8759_s18 + $0x10] sm:$0xff]  ;;  %v8213_v53 = vpack.c.bf16 %v2538_v52, %v2537_v51 }
0x200a   :  { %v8191_v8 = vpack.c.bf16 %v2534_v15, %v2533_v54 }
0x200b   :  { %v2462_v59 = vmul.f32 1.442695, %v2460_v56  ;;  %v2464_v16 = vmul.f32 1.442695, %v2461_v57 }
0x200c   :  { %6844 = vmatpush3.bf16.msra.mxu0 %v8191_v8 }
0x200d   :  { %7243 = vpow2.f32 %v2462_v59  ;;  %6845 = vmatprep.subr.bf16.mxu0 %v7391_v0 }
0x200e   :  { %7245 = vpow2.f32 %v2464_v16 }
0x2010   :  { %6847 = vmatpush3.bf16.msra.mxu0 %v8203_v46 }
0x2011   :  { %6848 = vmatprep.subr.bf16.mxu0 %v7391_v0 }
0x2014   :  { %6850 = vmatpush3.bf16.msra.mxu0 %v8213_v53 }
0x2015   :  { %6869 = vmatprep.subr.bf16.mxu0 %v7391_v0 }
0x2017   :  { %v7244_v60 = vpop.eup %7243 }
0x2018   :  { %2488 = vperm.xlu0 %7073, %v7244_v60   ;;  %v2467_v61 = vrot.slane %v7244_v60, 2  ;;  %v2470_v2 = vrot.slane %v7244_v60, 4  ;;  %v2473_v3 = vrot.slane %v7244_v60, 6  ;;  %v7246_v47 = vpop.eup %7245 }
0x2019   :  { %v2478_v13 = vrot.slane %v7246_v47, 2  ;;  %v2481_v20 = vrot.slane %v7246_v47, 4  ;;  %v2484_v14 = vrot.slane %v7246_v47, 6 }
0x201a   :  { %v2469_v63 = vadd.f32 %v7244_v60, %v2467_v61 }
0x201c   :  { %v2472_v27 = vadd.f32 %v2470_v2, %v2469_v63 }
0x201e   :  { %v2475_v7 = vadd.f32 %v2473_v3, %v2472_v27 }
0x2020   :  { %v2476_v10 = vadd.f32 %v7246_v47, %v2475_v7 }
0x2022   :  { %v2480_v19 = vadd.f32 %v2478_v13, %v2476_v10 }
0x2024   :  { %v2483_v24 = vadd.f32 %v2481_v20, %v2480_v19 }
0x2026   :  { %v2486_v25 = vadd.f32 %v2484_v14, %v2483_v24 }
0x2028   :  { %2520 = vperm.xlu1 %7074, %v2486_v25  }
0x202c   :  { %2492 = vperm.xlu1 %7074, %v7246_v47  }
0x2069   :  { %v3200_v36 = vpop.permute.xlu1 %3199 }
0x206a   :  { %v8170_v39 = vadd.f32 %v3200_v36, %v3192_v28  ;;  %v2820_v43 = vpop.permute.xlu0 %2819 }
0x206b   :  { %v8172_v33 = vadd.f32 %v2820_v43, %v2812_v29 }
0x206c   :  { %7247 = vtanh.f32 %v8170_v39 }
0x206d   :  { %7249 = vtanh.f32 %v8172_v33 }
0x2076   :  { %v7248_v17 = vpop.eup %7247 }
0x2077   :  { %v7250_v12 = vpop.eup %7249  ;;  %3205 = vrot.lane.b32.xlu1 %v7248_v17, %s7394_s26 }
0x2078   :  { %2825 = vrot.lane.b32.xlu0 %v7250_v12, %s7394_s26 }
0x2097   :  { %v2489_v55 = vpop.permute.xlu0 %2488 }
0x2098   :  { %v2495_v56 = vmul.f32 %v2489_v55, %v7773_v50 }
0x209a   :  { %v2498_v57 = vrot.slane %v2495_v56, 2  ;;  %v2501_v16 = vrot.slane %v2495_v56, 4  ;;  %v2504_v63 = vrot.slane %v2495_v56, 6 }
0x209c   :  { %v2500_v59 = vadd.f32 %v2498_v57, %v2495_v56 }
0x209e   :  { %v2503_v61 = vadd.f32 %v2501_v16, %v2500_v59 }
0x20a0   :  { %v2506_v3 = vadd.f32 %v2504_v63, %v2503_v61 }
0x20a7   :  { %v2521_v60 = vpop.permute.xlu1 %2520 }
0x20a8   :  { %7251 = vrcp.f32 %v2521_v60 }
0x20ab   :  { %v2493_v2 = vpop.permute.xlu1 %2492 }
0x20ac   :  { %v2496_v27 = vmul.f32 %v2493_v2, %v7925_v30 }
0x20ae   :  { %v2507_v47 = vadd.f32 %v2506_v3, %v2496_v27  ;;  %v2509_v7 = vrot.slane %v2496_v27, 2  ;;  %v2512_v10 = vrot.slane %v2496_v27, 4  ;;  %v2515_v20 = vrot.slane %v2496_v27, 6 }
0x20b0   :  { %v2511_v13 = vadd.f32 %v2509_v7, %v2507_v47 }
0x20b2   :  { %v2514_v19 = vadd.f32 %v2512_v10, %v2511_v13  ;;  %v7252_v14 = vpop.eup %7251 }
0x20b4   :  { %v2517_v24 = vadd.f32 %v2515_v20, %v2514_v19 }
0x20b6   :  { %v2524_v25 = vmul.f32 %v7252_v14, %v2517_v24 }
0x20b8   :  { %2527 = vrot.lane.b32.xlu0 %v2524_v25, %s7394_s26 }
0x20e9   :  { %v3206_v26 = vpop.permute.xlu1 %3205 }
0x20ea   :  { %v3208_v28 = vmul.f32 %v8154_v18, %v3206_v26  ;;  %v2826_v36 = vpop.permute.xlu0 %2825 }
0x20eb   :  { %v2828_v29 = vmul.f32 %v8156_v21, %v2826_v36 }
0x20ec   :  { %3210 = vrot.lane.b32.xlu0 %v3208_v28, %s7395_s27  ;;  %v3590_v43 = vrot.slane %v3208_v28, 4 }
0x20ed   :  { %2830 = vrot.lane.b32.xlu1 %v2828_v29, %s7395_s27  ;;  %v3213_v35 = vrot.slane %v2828_v29, 4 }
0x20f0   :  { %3591 = vrot.lane.b32.xlu0 %v3590_v43, %s7395_s27 }
0x20f1   :  { %3214 = vrot.lane.b32.xlu1 %v3213_v35, %s7394_s26 }
0x212a   :  { %v2528_v58 = vpop.permute.xlu0 %2527 }
0x212b   :  { %v2530_v54 = vsel %vm164_vm2, %v8090_v11, %v2528_v58 }
0x212c   :  { %6293 = vmatmul.mubr.msk.f32.vlgmr.msra.gmra.mrb[22].mxu0 %vm283_vm3, %v2530_v54 }
0x212d   :  { %6871 = vmatpush3.bf16.msra.mxu0 %v8074_v62  ;;  %6333 = vmatprep.mubr.msk.f32.mxu0 %vm7392_vm1, %v7393_v4 }
0x212e   :  { %6872 = vmatprep.subr.bf16.mxu0 %v7391_v0 }
0x2131   :  { %6874 = vmatpush3.bf16.msra.mxu0 %v8080_v1 }
0x2132   :  { %6875 = vmatprep.subr.bf16.mxu0 %v7391_v0 }
0x215e   :  { %v3211_v11 = vpop.permute.xlu0 %3210 }
0x215f   :  { %v8236_v18 = vpop.permute.xlu1 %2830 }
0x2160   :  { %6334 = vmatmul.mubr.msk.f32.vlgmr.msra.gmra.mrb[24].mxu0 %vm164_vm2, %v8236_v18 }
0x2161   :  { %6877 = vmatpush3.bf16.msra.mxu0 %v8185_v37  ;;  %6352 = vmatprep.mubr.msk.f32.mxu0 %vm7392_vm1, %v7393_v4 }
0x2162   :  { %6878 = vmatprep.subr.bf16.mxu0 %v7391_v0  ;;  %v3592_v44 = vpop.permute.xlu0 %3591 }
0x2163   :  { %v3215_v21 = vpop.permute.xlu1 %3214 }
0x2164   :  { %v3217_v15 = vsel %vm164_vm2, %v3211_v11, %v3215_v21 }
0x2165   :  { %v3219_v17 = vrot.slane %v3217_v15, 4  ;;  %6880 = vmatpush3.bf16.msra.mxu0 %v8191_v8 }
0x2166   :  { %6881 = vmatprep.subr.bf16.mxu0 %v7391_v0 }
0x2167   :  { %6383 = vmatmul.mubr.msk.f32.vlgmr.msra.gmra.mrb[28].mxu1 %vm283_vm3, %v3219_v17 }
0x2168   :  { %6925 = vmatpush3.bf16.msra.mxu1 %v7943_v38  ;;  %6423 = vmatprep.mubr.msk.f32.mxu1 %vm7392_vm1, %v7393_v4 }
0x2169   :  { %6926 = vmatprep.subr.bf16.mxu1 %v7391_v0  ;;  %6883 = vmatpush3.bf16.msra.mxu0 %v8203_v46 }
0x216a   :  { %6884 = vmatprep.subr.bf16.mxu0 %v7391_v0 }
0x216c   :  { %6928 = vmatpush3.bf16.msra.mxu1 %v7954_v40 }
0x216d   :  { %6886 = vmatpush3.bf16.msra.mxu0 %v8213_v53  ;;  %6929 = vmatprep.subr.bf16.mxu1 %v7391_v0 }
0x216e   :  { %6905 = vmatprep.subr.bf16.mxu0 %v7391_v0 }
0x216f   :  { %6424 = vmatmul.mubr.msk.f32.vlgmr.msra.gmra.mrb[30].mxu1 %vm164_vm2, %v3592_v44 }
0x2170   :  { %6931 = vmatpush3.bf16.msra.mxu1 %v7991_v5  ;;  %6442 = vmatprep.mubr.msk.f32.mxu1 %vm7392_vm1, %v7393_v4 }
0x2171   :  { %6932 = vmatprep.subr.bf16.mxu1 %v7391_v0 }
0x2174   :  { %6934 = vmatpush3.bf16.msra.mxu1 %v7997_v6 }
0x2175   :  { %6935 = vmatprep.subr.bf16.mxu1 %v7391_v0 }
0x2178   :  { %6937 = vmatpush3.bf16.msra.mxu1 %v8007_v9 }
0x2179   :  { %6938 = vmatprep.subr.bf16.mxu1 %v7391_v0 }
0x217c   :  { %6940 = vmatpush3.bf16.msra.mxu1 %v8018_v48 }
0x217d   :  { %6959 = vmatprep.subr.bf16.mxu1 %v7391_v0 }
0x21ff   :  { %v8269_v42 = vpop.f32.mrb[22].mxu0 }
0x2200   :  { %v6294_v12 = vpop.f32.mrb[23].mxu0 }
0x2233   :  { %v2900_v51 = vpop.f32.mrb[24].mxu0 }
0x2234   :  { %v2901_v52 = vadd.f32 %v8121_v34, %v2900_v51  ;;  %v6335_v55 = vpop.f32.mrb[25].mxu0 }
0x2236   :  { %v2905_v56 = vrot.slane %v2901_v52, 6  ;;  %v2907_v57 = vrot.slane %v2901_v52, 4  ;;  %v2909_v59 = vrot.slane %v2901_v52, 2 }
0x2238   :  { %v2911_v16 = vsel %vm1881_vm4, %v2901_v52, %v2905_v56 }
0x2239   :  { %v2912_v60 = vsel %vm1883_vm5, %v2911_v16, %v2907_v57 }
0x223a   :  { %v2913_v61 = vsel %vm1885_vm6, %v2912_v60, %v2909_v59  ;;  %v3288_v63 = vpop.f32.mrb[28].mxu1 }
0x223b   :  { %v2914_v2 = vadd.f32 %v2913_v61, %v8132_v32  ;;  %v2915_v27 = vadd.f32 %v2913_v61, %v8129_v31  ;;  %v6384_v3 = vpop.f32.mrb[29].mxu1  ;;  %v3289_v28 = vadd.f32 %v8048_v23, %v3288_v63 }
0x223d   :  { %7253 = vtanh.f32 %v2914_v2  ;;  %v5621_v35 = vmul.f32 -1.442695, %v3289_v28 }
0x223e   :  { %7255 = vtanh.f32 %v2915_v27 }
0x2242   :  { %v3661_v47 = vpop.f32.mrb[30].mxu1 }
0x2243   :  { %v6425_v7 = vpop.f32.mrb[31].mxu1  ;;  %v3666_v20 = vrot.slane %v3661_v47, 2 }
0x2245   :  { %v3668_v26 = vadd.f32 %v3666_v20, %v7973_v49 }
0x2247   :  { %v7254_v10 = vpop.eup %7253  ;;  %7257 = vtanh.f32 %v3668_v26  ;;  %v5625_v43 = vmul.f32 -1.442695, %v3668_v26 }
0x2248   :  { %v7256_v13 = vpop.eup %7255  ;;  %v2918_v19 = vmul.f32 %v7254_v10, %v8141_v41  ;;  %7259 = vtanh.f32 %v3289_v28 }
0x2249   :  { %v2919_v24 = vmul.f32 %v7256_v13, %v8141_v41  ;;  %7261 = vpow2.f32 %v5625_v43 }
0x224a   :  { %v2920_v14 = vsel %vm164_vm2, %v2918_v19, 0.0  ;;  %7263 = vpow2.f32 %v5621_v35 }
0x224b   :  { %v2923_v25 = vsel %vm164_vm2, %v2919_v24, 0.0  ;;  %2921 = vadd.xlane.f32.xlu1 %v2920_v14 }
0x224c   :  { %2924 = vadd.xlane.f32.xlu0 %v2923_v25 }
0x2251   :  { %v7258_v36 = vpop.eup %7257 }
0x2252   :  { %v7260_v29 = vpop.eup %7259 }
0x2253   :  { %v7262_v58 = vpop.eup %7261 }
0x2254   :  { %v7264_v54 = vpop.eup %7263  ;;  %v3672_v11 = vadd.f32 1.0, %v7262_v58 }
0x2255   :  { %v3295_v21 = vadd.f32 1.0, %v7264_v54 }
0x2256   :  { %7265 = vrcp.f32 %v3672_v11 }
0x2257   :  { %7267 = vrcp.f32 %v3295_v21 }
0x225c   :  { %3681 = vrot.lane.b32.xlu1 %v7258_v36, %s7394_s26 }
0x2260   :  { %v8286_v44 = vpop.eup %7265 }
0x2261   :  { %v8288_v51 = vpop.eup %7267 }
0x2262   :  { %3301 = vrot.lane.b32.xlu0 %v7260_v29, %s7394_s26 }
0x22d8   :  { %v2922_v49 = vpop.xlane.xlu1 %2921 }
0x22d9   :  { %v2926_v23 = vadd.f32 %v8151_v22, %v2922_v49  ;;  %v2925_v15 = vpop.xlane.xlu0 %2924 }
0x22da   :  { %v2927_v61 = vadd.f32 %v8151_v22, %v2925_v15 }
0x22db   :  { %v2929_v17 = vrot.slane %v2926_v23, 2  ;;  %v2932_v55 = vrot.slane %v2926_v23, 4  ;;  %v2935_v60 = vrot.slane %v2926_v23, 6 }
0x22dc   :  { %v3682_v12 = vpop.permute.xlu1 %3681  ;;  %v2940_v27 = vrot.slane %v2927_v61, 2  ;;  %v2943_v47 = vrot.slane %v2927_v61, 4  ;;  %v2946_v10 = vrot.slane %v2927_v61, 6 }
0x22dd   :  { %v2931_v52 = vmax.f32 %v2926_v23, %v2929_v17  ;;  %v3684_v56 = vmul.f32 %v8286_v44, %v3682_v12  ;;  %v3302_v57 = vpop.permute.xlu0 %3301 }
0x22de   :  { %v3304_v59 = vmul.f32 %v8288_v51, %v3302_v57 }
0x22df   :  { %v2934_v16 = vmax.f32 %v2931_v52, %v2932_v55  ;;  %3686 = vrot.lane.b32.xlu0 %v3684_v56, %s7395_s27 }
0x22e0   :  { %3306 = vrot.lane.b32.xlu1 %v3304_v59, %s7395_s27 }
0x22e1   :  { %v2937_v63 = vmax.f32 %v2934_v16, %v2935_v60  ;;  %v3677_v16 = vrot.slane %v8170_v39, 6 }
0x22e3   :  { %v2938_v2 = vmax.f32 %v2937_v63, %v2927_v61  ;;  %v3679_v60 = vmul.f32 %v8286_v44, %v3677_v16 }
0x22e5   :  { %v2942_v3 = vmax.f32 %v2938_v2, %v2940_v27 }
0x22e7   :  { %v2945_v7 = vmax.f32 %v2942_v3, %v2943_v47 }
0x22e9   :  { %v2948_v13 = vmax.f32 %v2945_v7, %v2946_v10 }
0x22eb   :  { %v2950_v19 = vrot.slane %v2948_v13, 6  ;;  %v2952_v20 = vrot.slane %v2948_v13, 4  ;;  %v2954_v24 = vrot.slane %v2948_v13, 2 }
0x22ed   :  { %v2956_v14 = vsel %vm1881_vm4, %v2948_v13, %v2950_v19 }
0x22ee   :  { %v2957_v25 = vsel %vm1883_vm5, %v2956_v14, %v2952_v20 }
0x22ef   :  { %v2958_v26 = vsel %vm1885_vm6, %v2957_v25, %v2954_v24 }
0x22f0   :  { %v2959_v28 = vsub.f32 %v2926_v23, %v2958_v26  ;;  %v2960_v36 = vsub.f32 %v2927_v61, %v2958_v26  ;;  %v3299_v61 = vmul.f32 %v8288_v51, %v8172_v33 }
0x22f2   :  { %v2961_v29 = vmul.f32 1.442695, %v2959_v28  ;;  %v2963_v43 = vmul.f32 1.442695, %v2960_v36 }
0x22f4   :  { %7269 = vpow2.f32 %v2961_v29 }
0x22f5   :  { %7271 = vpow2.f32 %v2963_v43 }
0x22fe   :  { %v7270_v35 = vpop.eup %7269 }
0x22ff   :  { %2987 = vperm.xlu1 %7074, %v7270_v35   ;;  %v2966_v58 = vrot.slane %v7270_v35, 2  ;;  %v2969_v11 = vrot.slane %v7270_v35, 4  ;;  %v7272_v21 = vpop.eup %7271  ;;  %v2972_v15 = vrot.slane %v7270_v35, 6 }
0x2300   :  { %v2977_v52 = vrot.slane %v7272_v21, 2  ;;  %v2980_v56 = vrot.slane %v7272_v21, 4  ;;  %v2983_v57 = vrot.slane %v7272_v21, 6 }
0x2301   :  { %v2968_v54 = vadd.f32 %v7270_v35, %v2966_v58 }
0x2303   :  { %2991 = vperm.xlu1 %7074, %v7272_v21   ;;  %v2971_v49 = vadd.f32 %v2969_v11, %v2968_v54 }
0x2305   :  { %v2974_v17 = vadd.f32 %v2972_v15, %v2971_v49 }
0x2307   :  { %v2975_v12 = vadd.f32 %v7272_v21, %v2974_v17 }
0x2309   :  { %v2979_v55 = vadd.f32 %v2977_v52, %v2975_v12 }
0x230b   :  { %v2982_v23 = vadd.f32 %v2980_v56, %v2979_v55 }
0x230d   :  { %v2985_v59 = vadd.f32 %v2983_v57, %v2982_v23 }
0x230f   :  { %3019 = vperm.xlu0 %7073, %v2985_v59  }
0x2351   :  { %v3687_v63 = vpop.permute.xlu0 %3686 }
0x2352   :  { %v3307_v2 = vpop.permute.xlu1 %3306  ;;  %v8302_v27 = vadd.f32 %v3687_v63, %v3679_v60 }
0x2353   :  { %v8304_v3 = vadd.f32 %v3307_v2, %v3299_v61  ;;  %v8364_v61 = vld [vmem:[%s8760_s19] ss:$0 sm:$0xff] }
0x2354   :  { %7273 = vtanh.f32 %v8302_v27  ;;  %v2616_v63 = vadd.f32 %v8364_v61, %v8269_v42 }
0x2355   :  { %7275 = vtanh.f32 %v8304_v3 }
0x2356   :  { %v5531_v2 = vrot.slane %v2616_v63, 6 }
0x235e   :  { %v7274_v47 = vpop.eup %7273 }
0x235f   :  { %v7276_v7 = vpop.eup %7275  ;;  %3692 = vrot.lane.b32.xlu1 %v7274_v47, %s7394_s26 }
0x2360   :  { %3312 = vrot.lane.b32.xlu0 %v7276_v7, %s7394_s26 }
0x237e   :  { %v2988_v39 = vpop.permute.xlu1 %2987 }
0x237f   :  { %v2994_v10 = vmul.f32 %v2988_v39, %v7773_v50 }
0x2381   :  { %v2997_v33 = vrot.slane %v2994_v10, 2  ;;  %v3000_v19 = vrot.slane %v2994_v10, 4  ;;  %v3003_v24 = vrot.slane %v2994_v10, 6 }
0x2382   :  { %v2992_v14 = vpop.permute.xlu1 %2991 }
0x2383   :  { %v2999_v13 = vadd.f32 %v2997_v33, %v2994_v10  ;;  %v2995_v26 = vmul.f32 %v2992_v14, %v7925_v30  ;;  %v5548_v33 = vsel %vm1881_vm4, 0.0, %v5531_v2 }
0x2385   :  { %v3002_v20 = vadd.f32 %v3000_v19, %v2999_v13  ;;  %v3008_v36 = vrot.slane %v2995_v26, 2  ;;  %v3011_v35 = vrot.slane %v2995_v26, 4  ;;  %v3014_v54 = vrot.slane %v2995_v26, 6 }
0x2387   :  { %v3005_v25 = vadd.f32 %v3003_v24, %v3002_v20 }
0x2389   :  { %v3006_v28 = vadd.f32 %v3005_v25, %v2995_v26 }
0x238b   :  { %v3010_v43 = vadd.f32 %v3008_v36, %v3006_v28 }
0x238d   :  { %v3013_v58 = vadd.f32 %v3011_v35, %v3010_v43 }
0x238e   :  { %v3020_v29 = vpop.permute.xlu0 %3019 }
0x238f   :  { %7277 = vrcp.f32 %v3020_v29  ;;  %v3016_v11 = vadd.f32 %v3014_v54, %v3013_v58 }
0x2399   :  { %v7278_v21 = vpop.eup %7277 }
0x239a   :  { %v3023_v49 = vmul.f32 %v7278_v21, %v3016_v11 }
0x239c   :  { %3026 = vrot.lane.b32.xlu0 %v3023_v49, %s7394_s26 }
0x23d1   :  { %v3693_v15 = vpop.permute.xlu1 %3692 }
0x23d2   :  { %v3695_v17 = vmul.f32 %v8286_v44, %v3693_v15  ;;  %v3313_v12 = vpop.permute.xlu0 %3312 }
0x23d3   :  { %v3315_v52 = vmul.f32 %v8288_v51, %v3313_v12 }
0x23d4   :  { %3697 = vrot.lane.b32.xlu0 %v3695_v17, %s7395_s27  ;;  %v4077_v55 = vrot.slane %v3695_v17, 6 }
0x23d5   :  { %3317 = vrot.lane.b32.xlu1 %v3315_v52, %s7395_s27  ;;  %v3700_v56 = vrot.slane %v3315_v52, 2 }
0x23d8   :  { %4078 = vrot.lane.b32.xlu0 %v4077_v55, %s7395_s27  ;;  %v8387_v55 = vld [vmem:[%s8753_s11] ss:$0 sm:$0xff] }
0x23d9   :  { %3701 = vrot.lane.b32.xlu1 %v3700_v56, %s7394_s26 }
0x240e   :  { %v3027_v23 = vpop.permute.xlu0 %3026 }
0x240f   :  { %v3029_v57 = vsel %vm164_vm2, %v8236_v18, %v3027_v23 }
0x2410   :  { %6353 = vmatmul.mubr.msk.f32.vlgmr.msra.gmra.mrb[26].mxu0 %vm283_vm3, %v3029_v57 }
0x2411   :  { %6907 = vmatpush3.bf16.msra.mxu0 %v8074_v62  ;;  %6393 = vmatprep.mubr.msk.f32.mxu0 %vm7392_vm1, %v7393_v4 }
0x2412   :  { %6908 = vmatprep.subr.bf16.mxu0 %v7391_v0 }
0x2415   :  { %6910 = vmatpush3.bf16.msra.mxu0 %v8080_v1 }
0x2416   :  { %6911 = vmatprep.subr.bf16.mxu0 %v7391_v0 }
0x2446   :  { %v3698_v18 = vpop.permute.xlu0 %3697 }
0x2447   :  { %v8328_v44 = vpop.permute.xlu1 %3317 }
0x2448   :  { %6394 = vmatmul.mubr.msk.f32.vlgmr.msra.gmra.mrb[28].mxu0 %vm164_vm2, %v8328_v44 }
0x2449   :  { %6913 = vmatpush3.bf16.msra.mxu0 %v8185_v37  ;;  %6412 = vmatprep.mubr.msk.f32.mxu0 %vm7392_vm1, %v7393_v4 }
0x244a   :  { %6914 = vmatprep.subr.bf16.mxu0 %v7391_v0  ;;  %v4079_v60 = vpop.permute.xlu0 %4078 }
0x244b   :  { %v3702_v51 = vpop.permute.xlu1 %3701 }
0x244c   :  { %v3704_v59 = vsel %vm164_vm2, %v3698_v18, %v3702_v51 }
0x244d   :  { %v3706_v16 = vrot.slane %v3704_v59, 6  ;;  %6916 = vmatpush3.bf16.msra.mxu0 %v8191_v8 }
0x244e   :  { %6917 = vmatprep.subr.bf16.mxu0 %v7391_v0 }
0x244f   :  { %6443 = vmatmul.mubr.msk.f32.vlgmr.msra.gmra.mrb[32].mxu1 %vm283_vm3, %v3706_v16 }
0x2450   :  { %6961 = vmatpush3.bf16.msra.mxu1 %v7943_v38  ;;  %6483 = vmatprep.mubr.msk.f32.mxu1 %vm7392_vm1, %v7393_v4 }
0x2451   :  { %6962 = vmatprep.subr.bf16.mxu1 %v7391_v0  ;;  %6919 = vmatpush3.bf16.msra.mxu0 %v8203_v46 }
0x2452   :  { %6920 = vmatprep.subr.bf16.mxu0 %v7391_v0 }
0x2454   :  { %6964 = vmatpush3.bf16.msra.mxu1 %v7954_v40 }
0x2455   :  { %6922 = vmatpush3.bf16.msra.mxu0 %v8213_v53  ;;  %6965 = vmatprep.subr.bf16.mxu1 %v7391_v0 }
0x2456   :  { %6941 = vmatprep.subr.bf16.mxu0 %v7391_v0 }
0x2457   :  { %6484 = vmatmul.mubr.msk.f32.vlgmr.msra.gmra.mrb[34].mxu1 %vm164_vm2, %v4079_v60 }
0x2458   :  { %6967 = vmatpush3.bf16.msra.mxu1 %v7991_v5  ;;  %6502 = vmatprep.mubr.msk.f32.mxu1 %vm7392_vm1, %v7393_v4 }
0x2459   :  { %6968 = vmatprep.subr.bf16.mxu1 %v7391_v0 }
0x245c   :  { %6970 = vmatpush3.bf16.msra.mxu1 %v7997_v6 }
0x245d   :  { %6971 = vmatprep.subr.bf16.mxu1 %v7391_v0 }
0x2460   :  { %6973 = vmatpush3.bf16.msra.mxu1 %v8007_v9 }
0x2461   :  { %6974 = vmatprep.subr.bf16.mxu1 %v7391_v0 }
0x2464   :  { %6976 = vmatpush3.bf16.msra.mxu1 %v8018_v48 }
0x2465   :  { %6995 = vmatprep.subr.bf16.mxu1 %v7391_v0 }
0x24e3   :  { %v3099_v47 = vpop.f32.mrb[26].mxu0 }
0x24e4   :  { %v3100_v7 = vadd.f32 %v8364_v61, %v3099_v47  ;;  %v6354_v39 = vpop.f32.mrb[27].mxu0 }
0x24e6   :  { %v5534_v10 = vrot.slane %v3100_v7, 4 }
0x24e8   :  { %v8371_v13 = vsel %vm1883_vm5, %v5548_v33, %v5534_v10 }
0x251b   :  { %v3387_v19 = vpop.f32.mrb[28].mxu0 }
0x251c   :  { %v3388_v20 = vadd.f32 %v8121_v34, %v3387_v19  ;;  %v6395_v24 = vpop.f32.mrb[29].mxu0 }
0x251e   :  { %v3392_v14 = vrot.slane %v3388_v20, 6  ;;  %v3394_v25 = vrot.slane %v3388_v20, 4  ;;  %v3396_v26 = vrot.slane %v3388_v20, 2 }
0x2520   :  { %v3398_v42 = vsel %vm1881_vm4, %v3388_v20, %v3392_v14 }
0x2521   :  { %v3399_v28 = vsel %vm1883_vm5, %v3398_v42, %v3394_v25 }
0x2522   :  { %v3400_v36 = vsel %vm1885_vm6, %v3399_v28, %v3396_v26  ;;  %v3775_v29 = vpop.f32.mrb[32].mxu1 }
0x2523   :  { %v3401_v43 = vadd.f32 %v3400_v36, %v8132_v32  ;;  %v3402_v35 = vadd.f32 %v3400_v36, %v8129_v31  ;;  %v6444_v58 = vpop.f32.mrb[33].mxu1  ;;  %v3776_v56 = vadd.f32 %v8387_v55, %v3775_v29 }
0x2525   :  { %7279 = vtanh.f32 %v3401_v43  ;;  %v5627_v18 = vmul.f32 -1.442695, %v3776_v56 }
0x2526   :  { %7281 = vtanh.f32 %v3402_v35 }
0x252a   :  { %v4148_v54 = vpop.f32.mrb[34].mxu1 }
0x252b   :  { %v6485_v34 = vpop.f32.mrb[35].mxu1  ;;  %v4152_v52 = vadd.f32 %v4148_v54, %v7971_v45 }
0x252d   :  { %7283 = vtanh.f32 %v4152_v52  ;;  %v5631_v57 = vmul.f32 -1.442695, %v4152_v52 }
0x252e   :  { %7285 = vtanh.f32 %v3776_v56 }
0x252f   :  { %v7280_v11 = vpop.eup %7279  ;;  %7287 = vpow2.f32 %v5631_v57 }
0x2530   :  { %v7282_v21 = vpop.eup %7281  ;;  %v3405_v49 = vmul.f32 %v7280_v11, %v8141_v41  ;;  %7289 = vpow2.f32 %v5627_v18 }
0x2531   :  { %v3406_v15 = vmul.f32 %v7282_v21, %v8141_v41 }
0x2532   :  { %v3407_v17 = vsel %vm164_vm2, %v3405_v49, 0.0 }
0x2533   :  { %v3410_v12 = vsel %vm164_vm2, %v3406_v15, 0.0  ;;  %3408 = vadd.xlane.f32.xlu1 %v3407_v17 }
0x2534   :  { %3411 = vadd.xlane.f32.xlu0 %v3410_v12 }
0x2537   :  { %v7284_v23 = vpop.eup %7283 }
0x2538   :  { %v7286_v41 = vpop.eup %7285 }
0x2539   :  { %v7288_v51 = vpop.eup %7287 }
0x253a   :  { %v7290_v59 = vpop.eup %7289  ;;  %v4156_v16 = vadd.f32 1.0, %v7288_v51 }
0x253b   :  { %v3782_v60 = vadd.f32 1.0, %v7290_v59 }
0x253c   :  { %7291 = vrcp.f32 %v4156_v16 }
0x253d   :  { %7293 = vrcp.f32 %v3782_v60 }
0x2544   :  { %4165 = vrot.lane.b32.xlu1 %v7284_v23, %s7394_s26 }
0x2546   :  { %v8393_v39 = vpop.eup %7291 }
0x2547   :  { %v8395_v33 = vpop.eup %7293 }
0x254a   :  { %3788 = vrot.lane.b32.xlu0 %v7286_v41, %s7394_s26 }
0x25c0   :  { %v3409_v63 = vpop.xlane.xlu1 %3408 }
0x25c1   :  { %v3413_v2 = vadd.f32 %v8151_v22, %v3409_v63  ;;  %v3412_v47 = vpop.xlane.xlu0 %3411 }
0x25c2   :  { %v3414_v28 = vadd.f32 %v8151_v22, %v3412_v47 }
0x25c3   :  { %v3416_v7 = vrot.slane %v3413_v2, 2  ;;  %v3419_v20 = vrot.slane %v3413_v2, 4  ;;  %v3422_v42 = vrot.slane %v3413_v2, 6 }
0x25c4   :  { %v4166_v10 = vpop.permute.xlu1 %4165  ;;  %v3427_v43 = vrot.slane %v3414_v28, 2  ;;  %v3430_v58 = vrot.slane %v3414_v28, 4  ;;  %v3433_v34 = vrot.slane %v3414_v28, 6 }
0x25c5   :  { %v3418_v19 = vmax.f32 %v3413_v2, %v3416_v7  ;;  %v4168_v24 = vmul.f32 %v8393_v39, %v4166_v10  ;;  %v3789_v14 = vpop.permute.xlu0 %3788 }
0x25c6   :  { %v3791_v25 = vmul.f32 %v8395_v33, %v3789_v14 }
0x25c7   :  { %v3421_v26 = vmax.f32 %v3418_v19, %v3419_v20  ;;  %4170 = vrot.lane.b32.xlu0 %v4168_v24, %s7395_s27 }
0x25c8   :  { %3793 = vrot.lane.b32.xlu1 %v3791_v25, %s7395_s27  ;;  %v4161_v25 = vrot.slane %v8302_v27, 6 }
0x25c9   :  { %v3424_v36 = vmax.f32 %v3421_v26, %v3422_v42  ;;  %v3786_v42 = vmul.f32 %v8395_v33, %v8304_v3 }
0x25ca   :  { %v4163_v26 = vmul.f32 %v8393_v39, %v4161_v25 }
0x25cb   :  { %v3425_v29 = vmax.f32 %v3424_v36, %v3414_v28 }
0x25cd   :  { %v3429_v35 = vmax.f32 %v3425_v29, %v3427_v43 }
0x25cf   :  { %v3432_v54 = vmax.f32 %v3429_v35, %v3430_v58 }
0x25d1   :  { %v3435_v11 = vmax.f32 %v3432_v54, %v3433_v34 }
0x25d3   :  { %v3437_v21 = vrot.slane %v3435_v11, 6  ;;  %v3439_v49 = vrot.slane %v3435_v11, 4  ;;  %v3441_v15 = vrot.slane %v3435_v11, 2 }
0x25d5   :  { %v3443_v17 = vsel %vm1881_vm4, %v3435_v11, %v3437_v21 }
0x25d6   :  { %v3444_v12 = vsel %vm1883_vm5, %v3443_v17, %v3439_v49 }
0x25d7   :  { %v3445_v22 = vsel %vm1885_vm6, %v3444_v12, %v3441_v15 }
0x25d8   :  { %v3446_v52 = vsub.f32 %v3413_v2, %v3445_v22  ;;  %v3447_v56 = vsub.f32 %v3414_v28, %v3445_v22 }
0x25da   :  { %v3448_v23 = vmul.f32 1.442695, %v3446_v52  ;;  %v3450_v41 = vmul.f32 1.442695, %v3447_v56 }
0x25dc   :  { %7295 = vpow2.f32 %v3448_v23 }
0x25dd   :  { %7297 = vpow2.f32 %v3450_v41 }
0x25e6   :  { %v7296_v57 = vpop.eup %7295 }
0x25e7   :  { %3474 = vperm.xlu1 %7074, %v7296_v57   ;;  %v3453_v18 = vrot.slane %v7296_v57, 2  ;;  %v3456_v59 = vrot.slane %v7296_v57, 4  ;;  %v7298_v16 = vpop.eup %7297  ;;  %v3459_v63 = vrot.slane %v7296_v57, 6 }
0x25e8   :  { %v3464_v10 = vrot.slane %v7298_v16, 2  ;;  %v3467_v20 = vrot.slane %v7298_v16, 4  ;;  %v3470_v24 = vrot.slane %v7298_v16, 6 }
0x25e9   :  { %v3455_v51 = vadd.f32 %v7296_v57, %v3453_v18 }
0x25eb   :  { %3478 = vperm.xlu1 %7074, %v7298_v16   ;;  %v3458_v60 = vadd.f32 %v3456_v59, %v3455_v51 }
0x25ed   :  { %v3461_v47 = vadd.f32 %v3459_v63, %v3458_v60 }
0x25ef   :  { %v3462_v7 = vadd.f32 %v7298_v16, %v3461_v47 }
0x25f1   :  { %v3466_v19 = vadd.f32 %v3464_v10, %v3462_v7 }
0x25f3   :  { %v3469_v2 = vadd.f32 %v3467_v20, %v3466_v19 }
0x25f5   :  { %v3472_v14 = vadd.f32 %v3470_v24, %v3469_v2 }
0x25f7   :  { %3506 = vperm.xlu0 %7073, %v3472_v14  }
0x2639   :  { %v4171_v28 = vpop.permute.xlu0 %4170 }
0x263a   :  { %v3794_v36 = vpop.permute.xlu1 %3793  ;;  %v8409_v29 = vadd.f32 %v4171_v28, %v4163_v26  ;;  %v8476_v28 = vld [vmem:[%s8756_s13] ss:$0 sm:$0xff] }
0x263b   :  { %v8411_v43 = vadd.f32 %v3794_v36, %v3786_v42 }
0x263c   :  { %7299 = vtanh.f32 %v8409_v29 }
0x263d   :  { %7301 = vtanh.f32 %v8411_v43 }
0x2646   :  { %v7300_v35 = vpop.eup %7299 }
0x2647   :  { %v7302_v58 = vpop.eup %7301  ;;  %4176 = vrot.lane.b32.xlu1 %v7300_v35, %s7394_s26 }
0x2648   :  { %3799 = vrot.lane.b32.xlu0 %v7302_v58, %s7394_s26 }
0x2666   :  { %v3475_v27 = vpop.permute.xlu1 %3474 }
0x2667   :  { %v3481_v54 = vmul.f32 %v3475_v27, %v7773_v50 }
0x2669   :  { %v3484_v3 = vrot.slane %v3481_v54, 2  ;;  %v3487_v11 = vrot.slane %v3481_v54, 4  ;;  %v3490_v49 = vrot.slane %v3481_v54, 6 }
0x266a   :  { %v3479_v15 = vpop.permute.xlu1 %3478 }
0x266b   :  { %v3486_v34 = vadd.f32 %v3484_v3, %v3481_v54  ;;  %v3482_v12 = vmul.f32 %v3479_v15, %v7925_v30 }
0x266d   :  { %v3489_v21 = vadd.f32 %v3487_v11, %v3486_v34  ;;  %v3495_v52 = vrot.slane %v3482_v12, 2  ;;  %v3498_v41 = vrot.slane %v3482_v12, 4  ;;  %v3501_v18 = vrot.slane %v3482_v12, 6 }
0x266f   :  { %v3492_v17 = vadd.f32 %v3490_v49, %v3489_v21 }
0x2671   :  { %v3493_v22 = vadd.f32 %v3492_v17, %v3482_v12 }
0x2673   :  { %v3497_v23 = vadd.f32 %v3495_v52, %v3493_v22  ;;  %v8487_v52 = vld [vmem:[%s8758_s16] ss:$0 sm:$0xff] }
0x2675   :  { %v3500_v57 = vadd.f32 %v3498_v41, %v3497_v23 }
0x2676   :  { %v3507_v56 = vpop.permute.xlu0 %3506 }
0x2677   :  { %7303 = vrcp.f32 %v3507_v56  ;;  %v3503_v51 = vadd.f32 %v3501_v18, %v3500_v57 }
0x2681   :  { %v7304_v59 = vpop.eup %7303 }
0x2682   :  { %v3510_v16 = vmul.f32 %v7304_v59, %v3503_v51 }
0x2684   :  { %3513 = vrot.lane.b32.xlu0 %v3510_v16, %s7394_s26 }
0x26b9   :  { %v4177_v60 = vpop.permute.xlu1 %4176 }
0x26ba   :  { %v4179_v63 = vmul.f32 %v8393_v39, %v4177_v60  ;;  %v3800_v47 = vpop.permute.xlu0 %3799 }
0x26bb   :  { %v3802_v7 = vmul.f32 %v8395_v33, %v3800_v47 }
0x26bc   :  { %4181 = vrot.lane.b32.xlu0 %v4179_v63, %s7395_s27 }
0x26bd   :  { %3804 = vrot.lane.b32.xlu1 %v3802_v7, %s7395_s27 }
0x26c1   :  { %4184 = vrot.lane.b32.xlu1 %v3802_v7, %s7394_s26 }
0x26f6   :  { %v3514_v10 = vpop.permute.xlu0 %3513 }
0x26f7   :  { %v3516_v19 = vsel %vm164_vm2, %v8328_v44, %v3514_v10 }
0x26f8   :  { %6413 = vmatmul.mubr.msk.f32.vlgmr.msra.gmra.mrb[30].mxu0 %vm283_vm3, %v3516_v19 }
0x26f9   :  { %6943 = vmatpush3.bf16.msra.mxu0 %v8074_v62  ;;  %6453 = vmatprep.mubr.msk.f32.mxu0 %vm7392_vm1, %v7393_v4 }
0x26fa   :  { %6944 = vmatprep.subr.bf16.mxu0 %v7391_v0 }
0x26fd   :  { %6946 = vmatpush3.bf16.msra.mxu0 %v8080_v1 }
0x26fe   :  { %6947 = vmatprep.subr.bf16.mxu0 %v7391_v0 }
0x272e   :  { %v4182_v44 = vpop.permute.xlu0 %4181 }
0x272f   :  { %v8434_v39 = vpop.permute.xlu1 %3804 }
0x2730   :  { %6454 = vmatmul.mubr.msk.f32.vlgmr.msra.gmra.mrb[32].mxu0 %vm164_vm2, %v8434_v39 }
0x2731   :  { %6949 = vmatpush3.bf16.msra.mxu0 %v8185_v37  ;;  %6472 = vmatprep.mubr.msk.f32.mxu0 %vm7392_vm1, %v7393_v4 }
0x2732   :  { %6950 = vmatprep.subr.bf16.mxu0 %v7391_v0 }
0x2733   :  { %v4185_v33 = vpop.permute.xlu1 %4184 }
0x2734   :  { %v4187_v20 = vsel %vm164_vm2, %v4182_v44, %v4185_v33 }
0x2735   :  { %6503 = vmatmul.mubr.msk.f32.vlgmr.msra.gmra.mrb[36].mxu1 %vm283_vm3, %v4187_v20  ;;  %6952 = vmatpush3.bf16.msra.mxu0 %v8191_v8 }
0x2736   :  { %6997 = vmatpush3.bf16.msra.mxu1 %v7943_v38  ;;  %6543 = vmatprep.mubr.msk.f32.mxu1 %vm7392_vm1, %v7393_v4 }
0x2737   :  { %6998 = vmatprep.subr.bf16.mxu1 %v7391_v0  ;;  %6953 = vmatprep.subr.bf16.mxu0 %v7391_v0 }
0x2739   :  { %6955 = vmatpush3.bf16.msra.mxu0 %v8203_v46 }
0x273a   :  { %7000 = vmatpush3.bf16.msra.mxu1 %v7954_v40  ;;  %6956 = vmatprep.subr.bf16.mxu0 %v7391_v0 }
0x273b   :  { %7001 = vmatprep.subr.bf16.mxu1 %v7391_v0 }
0x273d   :  { %6544 = vmatmul.mubr.msk.f32.vlgmr.msra.gmra.mrb[38].mxu1 %vm164_vm2, %v4182_v44  ;;  %6958 = vmatpush3.bf16.msra.mxu0 %v8213_v53 }
0x273e   :  { %7003 = vmatpush3.bf16.msra.mxu1 %v7991_v5  ;;  %6977 = vmatprep.subr.bf16.mxu0 %v7391_v0 }
0x273f   :  { %7004 = vmatprep.subr.bf16.mxu1 %v7391_v0  ;;  %6562 = vmatprep.mubr.msk.f32.mxu1 %vm7392_vm1, %v7393_v4 }
0x2742   :  { %7006 = vmatpush3.bf16.msra.mxu1 %v7997_v6 }
0x2743   :  { %7007 = vmatprep.subr.bf16.mxu1 %v7391_v0 }
0x2746   :  { %7009 = vmatpush3.bf16.msra.mxu1 %v8007_v9 }
0x2747   :  { %7010 = vmatprep.subr.bf16.mxu1 %v7391_v0 }
0x274a   :  { %7012 = vmatpush3.bf16.msra.mxu1 %v8018_v48 }
0x274b   :  { %7031 = vmatprep.subr.bf16.mxu1 %v7391_v0 }
0x27cb   :  { %v3586_v2 = vpop.f32.mrb[30].mxu0 }
0x27cc   :  { %v3587_v24 = vadd.f32 %v8364_v61, %v3586_v2  ;;  %v6414_v14 = vpop.f32.mrb[31].mxu0  ;;  %v8497_v2 = vld [vmem:[#allocation2] ss:$0 sm:$0xff] }
0x27ce   :  { %v5537_v25 = vrot.slane %v3587_v24, 2 }
0x27d0   :  { %v5550_v26 = vsel %vm1885_vm6, %v8371_v13, %v5537_v25 }
0x27d1   :  { %5554 = vst [vmem:[%s8761_s20] sm:$0xff] %v5550_v26 }
0x2803   :  { %v3874_v42 = vpop.f32.mrb[32].mxu0 }
0x2804   :  { %v3875_v36 = vadd.f32 %v8476_v28, %v3874_v42  ;;  %v6455_v35 = vpop.f32.mrb[33].mxu0 }
0x2806   :  { %v3879_v58 = vrot.slane %v3875_v36, 6  ;;  %v3881_v61 = vrot.slane %v3875_v36, 4  ;;  %v3883_v27 = vrot.slane %v3875_v36, 2 }
0x2808   :  { %v3885_v54 = vsel %vm1881_vm4, %v3875_v36, %v3879_v58  ;;  %v4257_v3 = vpop.f32.mrb[36].mxu1 }
0x2809   :  { %v3886_v13 = vsel %vm1883_vm5, %v3885_v54, %v3881_v61  ;;  %v6504_v34 = vpop.f32.mrb[37].mxu1  ;;  %v4258_v59 = vadd.f32 %v8387_v55, %v4257_v3 }
0x280a   :  { %v3887_v11 = vsel %vm1885_vm6, %v3886_v13, %v3883_v27 }
0x280b   :  { %v3888_v21 = vadd.f32 %v3887_v11, %v8132_v32  ;;  %v3889_v49 = vadd.f32 %v3887_v11, %v8129_v31  ;;  %v5633_v63 = vmul.f32 -1.442695, %v4258_v59 }
0x280d   :  { %7305 = vtanh.f32 %v3888_v21 }
0x280e   :  { %7307 = vtanh.f32 %v3889_v49 }
0x2810   :  { %v4627_v15 = vpop.f32.mrb[38].mxu1 }
0x2811   :  { %v6545_v17 = vpop.f32.mrb[39].mxu1  ;;  %v4632_v41 = vrot.slane %v4627_v15, 6 }
0x2813   :  { %v4634_v51 = vadd.f32 %v4632_v41, %v7971_v45 }
0x2815   :  { %7309 = vtanh.f32 %v4634_v51  ;;  %v5637_v47 = vmul.f32 -1.442695, %v4634_v51 }
0x2816   :  { %7311 = vtanh.f32 %v4258_v59 }
0x2817   :  { %v7306_v12 = vpop.eup %7305  ;;  %7313 = vpow2.f32 %v5633_v63 }
0x2818   :  { %v7308_v22 = vpop.eup %7307  ;;  %v3892_v56 = vmul.f32 %v8487_v52, %v7306_v12  ;;  %7315 = vpow2.f32 %v5637_v47 }
0x2819   :  { %v3893_v23 = vmul.f32 %v8487_v52, %v7308_v22 }
0x281a   :  { %v3894_v57 = vsel %vm164_vm2, %v3892_v56, 0.0 }
0x281b   :  { %v3897_v18 = vsel %vm164_vm2, %v3893_v23, 0.0  ;;  %3895 = vadd.xlane.f32.xlu0 %v3894_v57 }
0x281c   :  { %3898 = vadd.xlane.f32.xlu1 %v3897_v18 }
0x281f   :  { %v7310_v16 = vpop.eup %7309 }
0x2820   :  { %v7312_v60 = vpop.eup %7311 }
0x2821   :  { %v7314_v7 = vpop.eup %7313 }
0x2822   :  { %v7316_v10 = vpop.eup %7315  ;;  %v4264_v19 = vadd.f32 1.0, %v7314_v7 }
0x2823   :  { %v4638_v44 = vadd.f32 1.0, %v7316_v10 }
0x2824   :  { %7317 = vrcp.f32 %v4264_v19 }
0x2825   :  { %7319 = vrcp.f32 %v4638_v44 }
0x282d   :  { %4647 = vrot.lane.b32.xlu1 %v7310_v16, %s7394_s26 }
0x282e   :  { %v8500_v25 = vpop.eup %7317 }
0x282f   :  { %v8502_v42 = vpop.eup %7319 }
0x2831   :  { %4270 = vrot.lane.b32.xlu0 %v7312_v60, %s7394_s26 }
0x28a8   :  { %v3896_v33 = vpop.xlane.xlu0 %3895 }
0x28a9   :  { %v3899_v20 = vpop.xlane.xlu1 %3898  ;;  %v3900_v24 = vadd.f32 %v8497_v2, %v3896_v33 }
0x28aa   :  { %v3901_v54 = vadd.f32 %v8497_v2, %v3899_v20 }
0x28ab   :  { %v3903_v14 = vrot.slane %v3900_v24, 2  ;;  %v3906_v35 = vrot.slane %v3900_v24, 4  ;;  %v3909_v13 = vrot.slane %v3900_v24, 6 }
0x28ac   :  { %v4271_v26 = vpop.permute.xlu0 %4270  ;;  %v3914_v11 = vrot.slane %v3901_v54, 2  ;;  %v3917_v49 = vrot.slane %v3901_v54, 4  ;;  %v3920_v17 = vrot.slane %v3901_v54, 6 }
0x28ad   :  { %v3905_v36 = vmax.f32 %v3900_v24, %v3903_v14  ;;  %v4648_v58 = vpop.permute.xlu1 %4647  ;;  %v4273_v61 = vmul.f32 %v8500_v25, %v4271_v26 }
0x28ae   :  { %v4650_v27 = vmul.f32 %v8502_v42, %v4648_v58 }
0x28af   :  { %v3908_v3 = vmax.f32 %v3905_v36, %v3906_v35  ;;  %4275 = vrot.lane.b32.xlu0 %v4273_v61, %s7395_s27 }
0x28b0   :  { %4652 = vrot.lane.b32.xlu1 %v4650_v27, %s7395_s27 }
0x28b1   :  { %v3911_v34 = vmax.f32 %v3908_v3, %v3909_v13  ;;  %v4268_v3 = vmul.f32 %v8500_v25, %v8411_v43 }
0x28b3   :  { %v3912_v21 = vmax.f32 %v3911_v34, %v3901_v54 }
0x28b5   :  { %v3916_v15 = vmax.f32 %v3912_v21, %v3914_v11 }
0x28b7   :  { %v3919_v12 = vmax.f32 %v3916_v15, %v3917_v49 }
0x28b9   :  { %v3922_v22 = vmax.f32 %v3919_v12, %v3920_v17 }
0x28bb   :  { %v3924_v56 = vrot.slane %v3922_v22, 6  ;;  %v3926_v23 = vrot.slane %v3922_v22, 4  ;;  %v3928_v41 = vrot.slane %v3922_v22, 2 }
0x28bd   :  { %v3930_v57 = vsel %vm1881_vm4, %v3922_v22, %v3924_v56 }
0x28be   :  { %v3931_v18 = vsel %vm1883_vm5, %v3930_v57, %v3926_v23 }
0x28bf   :  { %v3932_v51 = vsel %vm1885_vm6, %v3931_v18, %v3928_v41 }
0x28c0   :  { %v3933_v59 = vsub.f32 %v3900_v24, %v3932_v51  ;;  %v3934_v16 = vsub.f32 %v3901_v54, %v3932_v51  ;;  %v4643_v54 = vrot.slane %v8409_v29, 6 }
0x28c2   :  { %v3935_v60 = vmul.f32 1.442695, %v3933_v59  ;;  %v3937_v63 = vmul.f32 1.442695, %v3934_v16  ;;  %v4645_v13 = vmul.f32 %v8502_v42, %v4643_v54 }
0x28c4   :  { %7321 = vpow2.f32 %v3935_v60 }
0x28c5   :  { %7323 = vpow2.f32 %v3937_v63 }
0x28ce   :  { %v7322_v47 = vpop.eup %7321 }
0x28cf   :  { %3961 = vperm.xlu0 %7073, %v7322_v47   ;;  %v3940_v7 = vrot.slane %v7322_v47, 2  ;;  %v3943_v19 = vrot.slane %v7322_v47, 4  ;;  %v7324_v44 = vpop.eup %7323  ;;  %v3946_v20 = vrot.slane %v7322_v47, 6 }
0x28d0   :  { %v3951_v36 = vrot.slane %v7324_v44, 2  ;;  %v3954_v58 = vrot.slane %v7324_v44, 4  ;;  %v3957_v61 = vrot.slane %v7324_v44, 6 }
0x28d1   :  { %v3942_v10 = vadd.f32 %v7322_v47, %v3940_v7 }
0x28d3   :  { %3965 = vperm.xlu0 %7073, %v7324_v44   ;;  %v3945_v33 = vadd.f32 %v3943_v19, %v3942_v10 }
0x28d5   :  { %v3948_v14 = vadd.f32 %v3946_v20, %v3945_v33 }
0x28d7   :  { %v3949_v26 = vadd.f32 %v7324_v44, %v3948_v14 }
0x28d9   :  { %v3953_v35 = vadd.f32 %v3951_v36, %v3949_v26 }
0x28db   :  { %v3956_v24 = vadd.f32 %v3954_v58, %v3953_v35 }
0x28dd   :  { %v3959_v27 = vadd.f32 %v3957_v61, %v3956_v24 }
0x28df   :  { %3993 = vperm.xlu1 %7074, %v3959_v27  }
0x2921   :  { %v4276_v34 = vpop.permute.xlu0 %4275 }
0x2922   :  { %v4653_v11 = vpop.permute.xlu1 %4652  ;;  %v8516_v21 = vadd.f32 %v4276_v34, %v4268_v3 }
0x2923   :  { %v8518_v49 = vadd.f32 %v4653_v11, %v4645_v13 }
0x2924   :  { %7325 = vtanh.f32 %v8516_v21 }
0x2925   :  { %7327 = vtanh.f32 %v8518_v49 }
0x292e   :  { %v7326_v15 = vpop.eup %7325 }
0x292f   :  { %v7328_v17 = vpop.eup %7327  ;;  %4281 = vrot.lane.b32.xlu1 %v7326_v15, %s7394_s26 }
0x2930   :  { %4658 = vrot.lane.b32.xlu0 %v7328_v17, %s7394_s26 }
0x294e   :  { %v3962_v29 = vpop.permute.xlu0 %3961 }
0x294f   :  { %v3968_v43 = vmul.f32 %v3962_v29, %v7773_v50 }
0x2951   :  { %v3971_v12 = vrot.slane %v3968_v43, 2  ;;  %v3974_v56 = vrot.slane %v3968_v43, 4  ;;  %v3977_v41 = vrot.slane %v3968_v43, 6 }
0x2952   :  { %v3966_v57 = vpop.permute.xlu0 %3965 }
0x2953   :  { %v3973_v22 = vadd.f32 %v3971_v12, %v3968_v43  ;;  %v3969_v51 = vmul.f32 %v3966_v57, %v7925_v30 }
0x2955   :  { %v3976_v23 = vadd.f32 %v3974_v56, %v3973_v22  ;;  %v3982_v16 = vrot.slane %v3969_v51, 2  ;;  %v3985_v47 = vrot.slane %v3969_v51, 4  ;;  %v3988_v10 = vrot.slane %v3969_v51, 6 }
0x2957   :  { %v3979_v18 = vadd.f32 %v3977_v41, %v3976_v23 }
0x2959   :  { %v3980_v59 = vadd.f32 %v3979_v18, %v3969_v51 }
0x295b   :  { %v3984_v63 = vadd.f32 %v3982_v16, %v3980_v59 }
0x295d   :  { %v3987_v7 = vadd.f32 %v3985_v47, %v3984_v63 }
0x295e   :  { %v3994_v60 = vpop.permute.xlu1 %3993 }
0x295f   :  { %7329 = vrcp.f32 %v3994_v60  ;;  %v3990_v19 = vadd.f32 %v3988_v10, %v3987_v7 }
0x2969   :  { %v7330_v44 = vpop.eup %7329 }
0x296a   :  { %v3997_v33 = vmul.f32 %v7330_v44, %v3990_v19 }
0x296c   :  { %4000 = vrot.lane.b32.xlu1 %v3997_v33, %s7394_s26 }
0x29a1   :  { %v4282_v20 = vpop.permute.xlu1 %4281 }
0x29a2   :  { %v4284_v14 = vmul.f32 %v8500_v25, %v4282_v20  ;;  %v4659_v26 = vpop.permute.xlu0 %4658 }
0x29a3   :  { %v4661_v36 = vmul.f32 %v8502_v42, %v4659_v26 }
0x29a4   :  { %4286 = vrot.lane.b32.xlu0 %v4284_v14, %s7395_s27  ;;  %v4666_v35 = vrot.slane %v4284_v14, 6 }
0x29a5   :  { %4663 = vrot.lane.b32.xlu1 %v4661_v36, %s7395_s27  ;;  %v5043_v58 = vrot.slane %v4661_v36, 2 }
0x29a8   :  { %4667 = vrot.lane.b32.xlu0 %v4666_v35, %s7394_s26 }
0x29a9   :  { %5044 = vrot.lane.b32.xlu1 %v5043_v58, %s7395_s27 }
0x29de   :  { %v4001_v24 = vpop.permute.xlu1 %4000 }
0x29df   :  { %v4003_v61 = vsel %vm164_vm2, %v8434_v39, %v4001_v24 }
0x29e0   :  { %6473 = vmatmul.mubr.msk.f32.vlgmr.msra.gmra.mrb[34].mxu0 %vm283_vm3, %v4003_v61 }
0x29e1   :  { %6979 = vmatpush3.bf16.msra.mxu0 %v8074_v62  ;;  %6513 = vmatprep.mubr.msk.f32.mxu0 %vm7392_vm1, %v7393_v4 }
0x29e2   :  { %6980 = vmatprep.subr.bf16.mxu0 %v7391_v0 }
0x29e5   :  { %6982 = vmatpush3.bf16.msra.mxu0 %v8080_v1 }
0x29e6   :  { %6983 = vmatprep.subr.bf16.mxu0 %v7391_v0 }
0x2a16   :  { %v8542_v25 = vpop.permute.xlu0 %4286 }
0x2a17   :  { %6514 = vmatmul.mubr.msk.f32.vlgmr.msra.gmra.mrb[36].mxu0 %vm164_vm2, %v8542_v25  ;;  %v4664_v39 = vpop.permute.xlu1 %4663 }
0x2a18   :  { %6985 = vmatpush3.bf16.msra.mxu0 %v8185_v37  ;;  %6532 = vmatprep.mubr.msk.f32.mxu0 %vm7392_vm1, %v7393_v4 }
0x2a19   :  { %6986 = vmatprep.subr.bf16.mxu0 %v7391_v0 }
0x2a1a   :  { %v4668_v42 = vpop.permute.xlu0 %4667 }
0x2a1b   :  { %v4670_v27 = vsel %vm164_vm2, %v4664_v39, %v4668_v42  ;;  %v5045_v3 = vpop.permute.xlu1 %5044 }
0x2a1c   :  { %v4672_v54 = vrot.slane %v4670_v27, 2  ;;  %6988 = vmatpush3.bf16.msra.mxu0 %v8191_v8 }
0x2a1d   :  { %6989 = vmatprep.subr.bf16.mxu0 %v7391_v0 }
0x2a1e   :  { %6563 = vmatmul.mubr.msk.f32.vlgmr.msra.gmra.mrb[40].mxu1 %vm283_vm3, %v4672_v54 }
0x2a1f   :  { %7033 = vmatpush3.bf16.msra.mxu1 %v7943_v38  ;;  %6603 = vmatprep.mubr.msk.f32.mxu1 %vm7392_vm1, %v7393_v4 }
0x2a20   :  { %7034 = vmatprep.subr.bf16.mxu1 %v7391_v0  ;;  %6991 = vmatpush3.bf16.msra.mxu0 %v8203_v46 }
0x2a21   :  { %6992 = vmatprep.subr.bf16.mxu0 %v7391_v0 }
0x2a23   :  { %7036 = vmatpush3.bf16.msra.mxu1 %v7954_v40 }
0x2a24   :  { %6994 = vmatpush3.bf16.msra.mxu0 %v8213_v53  ;;  %7037 = vmatprep.subr.bf16.mxu1 %v7391_v0 }
0x2a25   :  { %7013 = vmatprep.subr.bf16.mxu0 %v7391_v0 }
0x2a26   :  { %6604 = vmatmul.mubr.msk.f32.vlgmr.msra.gmra.mrb[42].mxu1 %vm164_vm2, %v5045_v3 }
0x2a27   :  { %7039 = vmatpush3.bf16.msra.mxu1 %v7991_v5  ;;  %6622 = vmatprep.mubr.msk.f32.mxu1 %vm7392_vm1, %v7393_v4 }
0x2a28   :  { %7040 = vmatprep.subr.bf16.mxu1 %v7391_v0 }
0x2a2b   :  { %7042 = vmatpush3.bf16.msra.mxu1 %v7997_v6 }
0x2a2c   :  { %7043 = vmatprep.subr.bf16.mxu1 %v7391_v0 }
0x2a2f   :  { %7045 = vmatpush3.bf16.msra.mxu1 %v8007_v9 }
0x2a30   :  { %7046 = vmatprep.subr.bf16.mxu1 %v7391_v0 }
0x2a33   :  { %7048 = vmatpush3.bf16.msra.mxu1 %v8018_v48 }
0x2ab3   :  { %v8574_v38 = vpop.f32.mrb[34].mxu0 }
0x2ab4   :  { %v6474_v40 = vpop.f32.mrb[35].mxu0 }
0x2aea   :  { %v4356_v13 = vpop.f32.mrb[36].mxu0 }
0x2aeb   :  { %v4357_v5 = vadd.f32 %v8476_v28, %v4356_v13  ;;  %v6515_v34 = vpop.f32.mrb[37].mxu0 }
0x2aed   :  { %v4361_v11 = vrot.slane %v4357_v5, 6  ;;  %v4363_v15 = vrot.slane %v4357_v5, 4  ;;  %v4365_v17 = vrot.slane %v4357_v5, 2 }
0x2aef   :  { %v4367_v6 = vsel %vm1881_vm4, %v4357_v5, %v4361_v11 }
0x2af0   :  { %v4368_v29 = vsel %vm1883_vm5, %v4367_v6, %v4363_v15 }
0x2af1   :  { %v4369_v9 = vsel %vm1885_vm6, %v4368_v29, %v4365_v17  ;;  %v4741_v43 = vpop.f32.mrb[40].mxu1 }
0x2af2   :  { %v4370_v12 = vadd.f32 %v4369_v9, %v8132_v32  ;;  %v4371_v48 = vadd.f32 %v4369_v9, %v8129_v31  ;;  %v6564_v22 = vpop.f32.mrb[41].mxu1  ;;  %v4742_v47 = vadd.f32 %v8387_v55, %v4741_v43 }
0x2af4   :  { %7331 = vtanh.f32 %v4370_v12  ;;  %v5639_v19 = vmul.f32 -1.442695, %v4742_v47 }
0x2af5   :  { %7333 = vtanh.f32 %v4371_v48 }
0x2af9   :  { %v5114_v56 = vpop.f32.mrb[42].mxu1 }
0x2afa   :  { %v6605_v23 = vpop.f32.mrb[43].mxu1  ;;  %v5119_v59 = vrot.slane %v5114_v56, 4 }
0x2afc   :  { %v5121_v63 = vadd.f32 %v5119_v59, %v7971_v45 }
0x2afe   :  { %v7332_v41 = vpop.eup %7331  ;;  %7335 = vtanh.f32 %v5121_v63  ;;  %v5643_v44 = vmul.f32 -1.442695, %v5121_v63 }
0x2aff   :  { %v7334_v57 = vpop.eup %7333  ;;  %v4374_v18 = vmul.f32 %v8487_v52, %v7332_v41  ;;  %7337 = vtanh.f32 %v4742_v47 }
0x2b00   :  { %v4375_v51 = vmul.f32 %v8487_v52, %v7334_v57  ;;  %7339 = vpow2.f32 %v5639_v19 }
0x2b01   :  { %v4376_v16 = vsel %vm164_vm2, %v4374_v18, 0.0  ;;  %7341 = vpow2.f32 %v5643_v44 }
0x2b02   :  { %v4379_v60 = vsel %vm164_vm2, %v4375_v51, 0.0  ;;  %4377 = vadd.xlane.f32.xlu0 %v4376_v16 }
0x2b03   :  { %4380 = vadd.xlane.f32.xlu1 %v4379_v60 }
0x2b08   :  { %v7336_v7 = vpop.eup %7335 }
0x2b09   :  { %v7338_v10 = vpop.eup %7337 }
0x2b0a   :  { %v7340_v33 = vpop.eup %7339 }
0x2b0b   :  { %v7342_v20 = vpop.eup %7341  ;;  %v4748_v14 = vadd.f32 1.0, %v7340_v33 }
0x2b0c   :  { %v5125_v26 = vadd.f32 1.0, %v7342_v20 }
0x2b0d   :  { %7343 = vrcp.f32 %v4748_v14 }
0x2b0e   :  { %7345 = vrcp.f32 %v5125_v26 }
0x2b14   :  { %5134 = vrot.lane.b32.xlu1 %v7336_v7, %s7394_s26 }
0x2b17   :  { %v8591_v58 = vpop.eup %7343 }
0x2b18   :  { %4754 = vrot.lane.b32.xlu0 %v7338_v10, %s7394_s26  ;;  %v8593_v61 = vpop.eup %7345 }
0x2b8f   :  { %v4378_v45 = vpop.xlane.xlu0 %4377 }
0x2b90   :  { %v4381_v55 = vpop.xlane.xlu1 %4380  ;;  %v4382_v36 = vadd.f32 %v8497_v2, %v4378_v45 }
0x2b91   :  { %v4383_v40 = vadd.f32 %v8497_v2, %v4381_v55 }
0x2b92   :  { %v4385_v35 = vrot.slane %v4382_v36, 2  ;;  %v4388_v42 = vrot.slane %v4382_v36, 4  ;;  %v4391_v5 = vrot.slane %v4382_v36, 6 }
0x2b93   :  { %v4755_v24 = vpop.permute.xlu0 %4754  ;;  %v4396_v11 = vrot.slane %v4383_v40, 2  ;;  %v4399_v17 = vrot.slane %v4383_v40, 4  ;;  %v4402_v29 = vrot.slane %v4383_v40, 6 }
0x2b94   :  { %v4387_v39 = vmax.f32 %v4382_v36, %v4385_v35  ;;  %v5135_v27 = vpop.permute.xlu1 %5134  ;;  %v4757_v54 = vmul.f32 %v8591_v58, %v4755_v24  ;;  %v5130_v35 = vrot.slane %v8518_v49, 6  ;;  %v4752_v24 = vmul.f32 %v8591_v58, %v8516_v21 }
0x2b95   :  { %v5137_v3 = vmul.f32 %v8593_v61, %v5135_v27 }
0x2b96   :  { %v4390_v13 = vmax.f32 %v4387_v39, %v4388_v42  ;;  %4759 = vrot.lane.b32.xlu0 %v4757_v54, %s7395_s27  ;;  %v5132_v39 = vmul.f32 %v8593_v61, %v5130_v35 }
0x2b97   :  { %5139 = vrot.lane.b32.xlu1 %v5137_v3, %s7395_s27 }
0x2b98   :  { %v4393_v34 = vmax.f32 %v4390_v13, %v4391_v5 }
0x2b9a   :  { %v4394_v15 = vmax.f32 %v4393_v34, %v4383_v40 }
0x2b9c   :  { %v4398_v6 = vmax.f32 %v4394_v15, %v4396_v11 }
0x2b9e   :  { %v4401_v9 = vmax.f32 %v4398_v6, %v4399_v17 }
0x2ba0   :  { %v4404_v43 = vmax.f32 %v4401_v9, %v4402_v29 }
0x2ba2   :  { %v4406_v12 = vrot.slane %v4404_v43, 6  ;;  %v4408_v48 = vrot.slane %v4404_v43, 4  ;;  %v4410_v22 = vrot.slane %v4404_v43, 2 }
0x2ba4   :  { %v4412_v56 = vsel %vm1881_vm4, %v4404_v43, %v4406_v12 }
0x2ba5   :  { %v4413_v23 = vsel %vm1883_vm5, %v4412_v56, %v4408_v48 }
0x2ba6   :  { %v4414_v41 = vsel %vm1885_vm6, %v4413_v23, %v4410_v22 }
0x2ba7   :  { %v4415_v57 = vsub.f32 %v4382_v36, %v4414_v41  ;;  %v4416_v18 = vsub.f32 %v4383_v40, %v4414_v41 }
0x2ba9   :  { %v4417_v51 = vmul.f32 1.442695, %v4415_v57  ;;  %v4419_v59 = vmul.f32 1.442695, %v4416_v18 }
0x2bab   :  { %7347 = vpow2.f32 %v4417_v51 }
0x2bac   :  { %7349 = vpow2.f32 %v4419_v59 }
0x2bb5   :  { %v7348_v16 = vpop.eup %7347 }
0x2bb6   :  { %4443 = vperm.xlu0 %7073, %v7348_v16   ;;  %v4422_v60 = vrot.slane %v7348_v16, 2  ;;  %v4425_v47 = vrot.slane %v7348_v16, 4  ;;  %v7350_v7 = vpop.eup %7349  ;;  %v4428_v19 = vrot.slane %v7348_v16, 6 }
0x2bb7   :  { %v4433_v20 = vrot.slane %v7350_v7, 2  ;;  %v4436_v26 = vrot.slane %v7350_v7, 4  ;;  %v4439_v55 = vrot.slane %v7350_v7, 6 }
0x2bb8   :  { %v4424_v63 = vadd.f32 %v7348_v16, %v4422_v60 }
0x2bba   :  { %4447 = vperm.xlu0 %7073, %v7350_v7   ;;  %v4427_v10 = vadd.f32 %v4425_v47, %v4424_v63 }
0x2bbc   :  { %v4430_v44 = vadd.f32 %v4428_v19, %v4427_v10 }
0x2bbe   :  { %v4431_v33 = vadd.f32 %v7350_v7, %v4430_v44 }
0x2bc0   :  { %v4435_v14 = vadd.f32 %v4433_v20, %v4431_v33  ;;  %v8648_v20 = vld [vmem:[%s8760_s19] ss:$0 sm:$0xff] }
0x2bc2   :  { %v4438_v45 = vadd.f32 %v4436_v26, %v4435_v14 }
0x2bc4   :  { %v4441_v36 = vadd.f32 %v4439_v55, %v4438_v45  ;;  %v4074_v45 = vadd.f32 %v8648_v20, %v8574_v38 }
0x2bc6   :  { %4475 = vperm.xlu1 %7074, %v4441_v36  }
0x2c08   :  { %v4760_v42 = vpop.permute.xlu0 %4759 }
0x2c09   :  { %v5140_v27 = vpop.permute.xlu1 %5139  ;;  %v8607_v54 = vadd.f32 %v4760_v42, %v4752_v24 }
0x2c0a   :  { %v5142_v3 = vadd.f32 %v5140_v27, %v5132_v39 }
0x2c0b   :  { %7351 = vtanh.f32 %v8607_v54 }
0x2c0c   :  { %7353 = vtanh.f32 %v5142_v3 }
0x2c15   :  { %v7352_v40 = vpop.eup %7351 }
0x2c16   :  { %v7354_v13 = vpop.eup %7353  ;;  %4765 = vrot.lane.b32.xlu1 %v7352_v40, %s7394_s26 }
0x2c17   :  { %5145 = vrot.lane.b32.xlu0 %v7354_v13, %s7394_s26 }
0x2c35   :  { %v4444_v49 = vpop.permute.xlu0 %4443 }
0x2c36   :  { %v4450_v5 = vmul.f32 %v4444_v49, %v7773_v50 }
0x2c38   :  { %v4453_v21 = vrot.slane %v4450_v5, 2  ;;  %v4456_v11 = vrot.slane %v4450_v5, 4  ;;  %v4459_v17 = vrot.slane %v4450_v5, 6 }
0x2c39   :  { %v4448_v6 = vpop.permute.xlu0 %4447 }
0x2c3a   :  { %v4455_v34 = vadd.f32 %v4453_v21, %v4450_v5  ;;  %v4451_v9 = vmul.f32 %v4448_v6, %v7925_v30 }
0x2c3c   :  { %v4458_v15 = vadd.f32 %v4456_v11, %v4455_v34  ;;  %v4464_v12 = vrot.slane %v4451_v9, 2  ;;  %v4467_v56 = vrot.slane %v4451_v9, 4  ;;  %v4470_v41 = vrot.slane %v4451_v9, 6 }
0x2c3e   :  { %v4461_v29 = vadd.f32 %v4459_v17, %v4458_v15 }
0x2c40   :  { %v4462_v43 = vadd.f32 %v4461_v29, %v4451_v9 }
0x2c42   :  { %v4466_v22 = vadd.f32 %v4464_v12, %v4462_v43  ;;  %v7390_v43 = vld [vmem:[%s8753_s11] ss:$0 sm:$0xff] }
0x2c44   :  { %v4469_v23 = vadd.f32 %v4467_v56, %v4466_v22 }
0x2c45   :  { %v4476_v48 = vpop.permute.xlu1 %4475 }
0x2c46   :  { %7355 = vrcp.f32 %v4476_v48  ;;  %v4472_v57 = vadd.f32 %v4470_v41, %v4469_v23 }
0x2c50   :  { %v7356_v18 = vpop.eup %7355 }
0x2c51   :  { %v4479_v51 = vmul.f32 %v7356_v18, %v4472_v57 }
0x2c53   :  { %4482 = vrot.lane.b32.xlu1 %v4479_v51, %s7394_s26 }
0x2c88   :  { %v4766_v59 = vpop.permute.xlu1 %4765 }
0x2c89   :  { %v4768_v16 = vmul.f32 %v8591_v58, %v4766_v59  ;;  %v5146_v60 = vpop.permute.xlu0 %5145 }
0x2c8a   :  { %v5148_v63 = vmul.f32 %v8593_v61, %v5146_v60 }
0x2c8b   :  { %4770 = vrot.lane.b32.xlu0 %v4768_v16, %s7395_s27  ;;  %v5153_v47 = vrot.slane %v4768_v16, 4 }
0x2c8c   :  { %5150 = vrot.lane.b32.xlu1 %v5148_v63, %s7395_s27 }
0x2c8f   :  { %5154 = vrot.lane.b32.xlu0 %v5153_v47, %s7394_s26 }
0x2cc5   :  { %v4483_v7 = vpop.permute.xlu1 %4482 }
0x2cc6   :  { %v4485_v10 = vsel %vm164_vm2, %v8542_v25, %v4483_v7 }
0x2cc7   :  { %6533 = vmatmul.mubr.msk.f32.vlgmr.msra.gmra.mrb[38].mxu0 %vm283_vm3, %v4485_v10 }
0x2cc8   :  { %7015 = vmatpush3.bf16.msra.mxu0 %v8074_v62  ;;  %6573 = vmatprep.mubr.msk.f32.mxu0 %vm7392_vm1, %v7393_v4 }
0x2cc9   :  { %7016 = vmatprep.subr.bf16.mxu0 %v7391_v0 }
0x2ccc   :  { %7018 = vmatpush3.bf16.msra.mxu0 %v8080_v1 }
0x2ccd   :  { %7019 = vmatprep.subr.bf16.mxu0 %v7391_v0 }
0x2cfd   :  { %v8629_v58 = vpop.permute.xlu0 %4770 }
0x2cfe   :  { %6574 = vmatmul.mubr.msk.f32.vlgmr.msra.gmra.mrb[40].mxu0 %vm164_vm2, %v8629_v58  ;;  %v5151_v25 = vpop.permute.xlu1 %5150 }
0x2cff   :  { %7021 = vmatpush3.bf16.msra.mxu0 %v8185_v37  ;;  %6592 = vmatprep.mubr.msk.f32.mxu0 %vm7392_vm1, %v7393_v4 }
0x2d00   :  { %7022 = vmatprep.subr.bf16.mxu0 %v7391_v0 }
0x2d01   :  { %v5155_v61 = vpop.permute.xlu0 %5154 }
0x2d02   :  { %v5157_v19 = vsel %vm164_vm2, %v5151_v25, %v5155_v61 }
0x2d03   :  { %v5159_v44 = vrot.slane %v5157_v19, 4  ;;  %7024 = vmatpush3.bf16.msra.mxu0 %v8191_v8 }
0x2d04   :  { %7025 = vmatprep.subr.bf16.mxu0 %v7391_v0 }
0x2d05   :  { %6623 = vmatmul.mubr.msk.f32.vlgmr.msra.gmra.mrb[44].mxu1 %vm283_vm3, %v5159_v44 }
0x2d07   :  { %7027 = vmatpush3.bf16.msra.mxu0 %v8203_v46 }
0x2d08   :  { %7028 = vmatprep.subr.bf16.mxu0 %v7391_v0 }
0x2d0b   :  { %7030 = vmatpush3.bf16.msra.mxu0 %v8213_v53 }
0x2d0c   :  { %7049 = vmatprep.subr.bf16.mxu0 %v7391_v0 }
0x2d9a   :  { %v4555_v33 = vpop.f32.mrb[38].mxu0 }
0x2d9b   :  { %v4556_v14 = vadd.f32 %v8648_v20, %v4555_v33  ;;  %v6534_v26 = vpop.f32.mrb[39].mxu0 }
0x2d9d   :  { %v5540_v55 = vrot.slane %v4556_v14, 6 }
0x2d9f   :  { %v8654_v36 = vsel %vm1881_vm4, %v4074_v45, %v5540_v55 }
0x2dd1   :  { %v4840_v35 = vpop.f32.mrb[40].mxu0 }
0x2dd2   :  { %v4841_v24 = vadd.f32 %v8476_v28, %v4840_v35  ;;  %v6575_v39 = vpop.f32.mrb[41].mxu0 }
0x2dd4   :  { %v4845_v42 = vrot.slane %v4841_v24, 6  ;;  %v4847_v27 = vrot.slane %v4841_v24, 4  ;;  %v4849_v3 = vrot.slane %v4841_v24, 2 }
0x2dd6   :  { %v4851_v40 = vsel %vm1881_vm4, %v4841_v24, %v4845_v42 }
0x2dd7   :  { %v4852_v13 = vsel %vm1883_vm5, %v4851_v40, %v4847_v27 }
0x2dd8   :  { %v4853_v49 = vsel %vm1885_vm6, %v4852_v13, %v4849_v3  ;;  %v5228_v5 = vpop.f32.mrb[44].mxu1 }
0x2dd9   :  { %v4854_v38 = vadd.f32 %v4853_v49, %v8132_v32  ;;  %v4855_v21 = vadd.f32 %v4853_v49, %v8129_v31  ;;  %v6624_v34 = vpop.f32.mrb[45].mxu1  ;;  %v5229_v12 = vadd.f32 %v7390_v43, %v5228_v5 }
0x2ddb   :  { %7357 = vtanh.f32 %v4854_v38  ;;  %v5645_v22 = vmul.f32 -1.442695, %v5229_v12 }
0x2ddc   :  { %7359 = vtanh.f32 %v4855_v21 }
0x2ddd   :  { %7361 = vtanh.f32 %v5229_v12 }
0x2dde   :  { %7363 = vpow2.f32 %v5645_v22 }
0x2de5   :  { %v7358_v11 = vpop.eup %7357 }
0x2de6   :  { %v7360_v15 = vpop.eup %7359  ;;  %v4858_v17 = vmul.f32 %v8487_v52, %v7358_v11 }
0x2de7   :  { %v4859_v6 = vmul.f32 %v8487_v52, %v7360_v15  ;;  %v7362_v48 = vpop.eup %7361 }
0x2de8   :  { %v4860_v29 = vsel %vm164_vm2, %v4858_v17, 0.0  ;;  %v7364_v56 = vpop.eup %7363 }
0x2de9   :  { %v4863_v9 = vsel %vm164_vm2, %v4859_v6, 0.0  ;;  %4861 = vadd.xlane.f32.xlu1 %v4860_v29  ;;  %v5235_v23 = vadd.f32 1.0, %v7364_v56 }
0x2dea   :  { %4864 = vadd.xlane.f32.xlu0 %v4863_v9 }
0x2deb   :  { %7365 = vrcp.f32 %v5235_v23 }
0x2df5   :  { %v8671_v59 = vpop.eup %7365 }
0x2e00   :  { %5241 = vrot.lane.b32.xlu0 %v7362_v48, %s7394_s26 }
0x2e76   :  { %v4862_v41 = vpop.xlane.xlu1 %4861 }
0x2e77   :  { %v4866_v57 = vadd.f32 %v8497_v2, %v4862_v41  ;;  %v4865_v18 = vpop.xlane.xlu0 %4864  ;;  %v5239_v41 = vmul.f32 %v8671_v59, %v8607_v54 }
0x2e78   :  { %v4867_v25 = vadd.f32 %v8497_v2, %v4865_v18 }
0x2e79   :  { %v4869_v51 = vrot.slane %v4866_v57, 2  ;;  %v4872_v60 = vrot.slane %v4866_v57, 4  ;;  %v4875_v10 = vrot.slane %v4866_v57, 6 }
0x2e7a   :  { %v4880_v44 = vrot.slane %v4867_v25, 2  ;;  %v4883_v14 = vrot.slane %v4867_v25, 4  ;;  %v4886_v45 = vrot.slane %v4867_v25, 6 }
0x2e7b   :  { %v4871_v16 = vmax.f32 %v4866_v57, %v4869_v51  ;;  %v5242_v63 = vpop.permute.xlu0 %5241 }
0x2e7c   :  { %v5244_v47 = vmul.f32 %v8671_v59, %v5242_v63 }
0x2e7d   :  { %v4874_v7 = vmax.f32 %v4871_v16, %v4872_v60 }
0x2e7e   :  { %5246 = vrot.lane.b32.xlu1 %v5244_v47, %s7395_s27 }
0x2e7f   :  { %v4877_v61 = vmax.f32 %v4874_v7, %v4875_v10 }
0x2e81   :  { %v4878_v19 = vmax.f32 %v4877_v61, %v4867_v25 }
0x2e83   :  { %v4882_v33 = vmax.f32 %v4878_v19, %v4880_v44 }
0x2e85   :  { %v4885_v26 = vmax.f32 %v4882_v33, %v4883_v14 }
0x2e87   :  { %v4888_v55 = vmax.f32 %v4885_v26, %v4886_v45 }
0x2e89   :  { %v4890_v35 = vrot.slane %v4888_v55, 6  ;;  %v4892_v24 = vrot.slane %v4888_v55, 4  ;;  %v4894_v39 = vrot.slane %v4888_v55, 2 }
0x2e8b   :  { %v4896_v42 = vsel %vm1881_vm4, %v4888_v55, %v4890_v35 }
0x2e8c   :  { %v4897_v27 = vsel %vm1883_vm5, %v4896_v42, %v4892_v24 }
0x2e8d   :  { %v4898_v3 = vsel %vm1885_vm6, %v4897_v27, %v4894_v39 }
0x2e8e   :  { %v4899_v40 = vsub.f32 %v4866_v57, %v4898_v3  ;;  %v4900_v13 = vsub.f32 %v4867_v25, %v4898_v3 }
0x2e90   :  { %v4901_v49 = vmul.f32 1.442695, %v4899_v40  ;;  %v4903_v5 = vmul.f32 1.442695, %v4900_v13 }
0x2e92   :  { %7367 = vpow2.f32 %v4901_v49 }
0x2e93   :  { %7369 = vpow2.f32 %v4903_v5 }
0x2e9c   :  { %v7368_v38 = vpop.eup %7367 }
0x2e9d   :  { %4927 = vperm.xlu1 %7074, %v7368_v38   ;;  %v4906_v21 = vrot.slane %v7368_v38, 2  ;;  %v4909_v11 = vrot.slane %v7368_v38, 4  ;;  %v7370_v15 = vpop.eup %7369  ;;  %v4912_v6 = vrot.slane %v7368_v38, 6 }
0x2e9e   :  { %v4917_v43 = vrot.slane %v7370_v15, 2  ;;  %v4920_v48 = vrot.slane %v7370_v15, 4  ;;  %v4923_v56 = vrot.slane %v7370_v15, 6 }
0x2e9f   :  { %v4908_v34 = vadd.f32 %v7368_v38, %v4906_v21 }
0x2ea1   :  { %4931 = vperm.xlu1 %7074, %v7370_v15   ;;  %v4911_v17 = vadd.f32 %v4909_v11, %v4908_v34 }
0x2ea3   :  { %v4914_v29 = vadd.f32 %v4912_v6, %v4911_v17 }
0x2ea5   :  { %v4915_v9 = vadd.f32 %v7370_v15, %v4914_v29 }
0x2ea7   :  { %v4919_v12 = vadd.f32 %v4917_v43, %v4915_v9 }
0x2ea9   :  { %v4922_v22 = vadd.f32 %v4920_v48, %v4919_v12 }
0x2eab   :  { %v4925_v23 = vadd.f32 %v4923_v56, %v4922_v22 }
0x2ead   :  { %4959 = vperm.xlu0 %7073, %v4925_v23  }
0x2ef0   :  { %v5247_v57 = vpop.permute.xlu1 %5246 }
0x2ef1   :  { %v5249_v18 = vadd.f32 %v5247_v57, %v5239_v41 }
0x2ef3   :  { %7371 = vtanh.f32 %v5249_v18 }
0x2efd   :  { %v7372_v51 = vpop.eup %7371 }
0x2efe   :  { %5252 = vrot.lane.b32.xlu0 %v7372_v51, %s7394_s26 }
0x2f1c   :  { %v4928_v16 = vpop.permute.xlu1 %4927 }
0x2f1d   :  { %v4934_v60 = vmul.f32 %v4928_v16, %v7773_v50 }
0x2f1f   :  { %v4937_v63 = vrot.slane %v4934_v60, 2  ;;  %v4940_v7 = vrot.slane %v4934_v60, 4  ;;  %v4943_v25 = vrot.slane %v4934_v60, 6 }
0x2f20   :  { %v4932_v61 = vpop.permute.xlu1 %4931 }
0x2f21   :  { %v4939_v47 = vadd.f32 %v4937_v63, %v4934_v60  ;;  %v4935_v44 = vmul.f32 %v4932_v61, %v7925_v30 }
0x2f23   :  { %v4942_v10 = vadd.f32 %v4940_v7, %v4939_v47  ;;  %v4948_v54 = vrot.slane %v4935_v44, 2  ;;  %v4951_v45 = vrot.slane %v4935_v44, 4  ;;  %v4954_v35 = vrot.slane %v4935_v44, 6 }
0x2f25   :  { %v4945_v19 = vadd.f32 %v4943_v25, %v4942_v10 }
0x2f27   :  { %v4946_v33 = vadd.f32 %v4945_v19, %v4935_v44 }
0x2f29   :  { %v4950_v26 = vadd.f32 %v4948_v54, %v4946_v33 }
0x2f2b   :  { %v4953_v55 = vadd.f32 %v4951_v45, %v4950_v26 }
0x2f2c   :  { %v4960_v14 = vpop.permute.xlu0 %4959 }
0x2f2d   :  { %7373 = vrcp.f32 %v4960_v14  ;;  %v4956_v24 = vadd.f32 %v4954_v35, %v4953_v55 }
0x2f37   :  { %v7374_v39 = vpop.eup %7373 }
0x2f38   :  { %v4963_v42 = vmul.f32 %v7374_v39, %v4956_v24 }
0x2f3a   :  { %4966 = vrot.lane.b32.xlu1 %v4963_v42, %s7394_s26 }
0x2f70   :  { %v5253_v27 = vpop.permute.xlu0 %5252 }
0x2f71   :  { %v5255_v3 = vmul.f32 %v8671_v59, %v5253_v27 }
0x2f73   :  { %5257 = vrot.lane.b32.xlu0 %v5255_v3, %s7395_s27 }
0x2fac   :  { %v4967_v40 = vpop.permute.xlu1 %4966 }
0x2fad   :  { %v4969_v13 = vsel %vm164_vm2, %v8629_v58, %v4967_v40 }
0x2fae   :  { %6593 = vmatmul.mubr.msk.f32.vlgmr.msra.gmra.mrb[42].mxu0 %vm283_vm3, %v4969_v13 }
0x2faf   :  { %7051 = vmatpush3.bf16.msra.mxu0 %v8074_v62  ;;  %6633 = vmatprep.mubr.msk.f32.mxu0 %vm7392_vm1, %v7393_v4 }
0x2fb0   :  { %7052 = vmatprep.subr.bf16.mxu0 %v7391_v0 }
0x2fb3   :  { %7054 = vmatpush3.bf16.msra.mxu0 %v8080_v1 }
0x2fb4   :  { %7055 = vmatprep.subr.bf16.mxu0 %v7391_v0 }
0x2fe5   :  { %v8696_v59 = vpop.permute.xlu0 %5257 }
0x2fe6   :  { %6634 = vmatmul.mubr.msk.f32.vlgmr.msra.gmra.mrb[44].mxu0 %vm164_vm2, %v8696_v59 }
0x2fe7   :  { %7057 = vmatpush3.bf16.msra.mxu0 %v8185_v37  ;;  %6652 = vmatprep.mubr.msk.f32.mxu0 %vm7392_vm1, %v7393_v4 }
0x2fe8   :  { %7058 = vmatprep.subr.bf16.mxu0 %v7391_v0 }
0x2feb   :  { %7060 = vmatpush3.bf16.msra.mxu0 %v8191_v8 }
0x2fec   :  { %7061 = vmatprep.subr.bf16.mxu0 %v7391_v0 }
0x2fef   :  { %7063 = vmatpush3.bf16.msra.mxu0 %v8203_v46 }
0x2ff0   :  { %7064 = vmatprep.subr.bf16.mxu0 %v7391_v0 }
0x2ff3   :  { %7066 = vmatpush3.bf16.msra.mxu0 %v8213_v53 }
0x3081   :  { %v5039_v62 = vpop.f32.mrb[42].mxu0 }
0x3082   :  { %v5040_v1 = vadd.f32 %v8648_v20, %v5039_v62  ;;  %v6594_v58 = vpop.f32.mrb[43].mxu0 }
0x3084   :  { %v5543_v37 = vrot.slane %v5040_v1, 4 }
0x3086   :  { %v8712_v4 = vsel %vm1883_vm5, %v8654_v36, %v5543_v37 }
0x30b9   :  { %v5327_v49 = vpop.f32.mrb[44].mxu0 }
0x30ba   :  { %v5328_v8 = vadd.f32 %v8476_v28, %v5327_v49  ;;  %v6635_v5 = vpop.f32.mrb[45].mxu0 }
0x30bc   :  { %v5332_v38 = vrot.slane %v5328_v8, 6  ;;  %v5334_v21 = vrot.slane %v5328_v8, 4  ;;  %v5336_v46 = vrot.slane %v5328_v8, 2 }
0x30be   :  { %v5338_v0 = vsel %vm1881_vm4, %v5328_v8, %v5332_v38 }
0x30bf   :  { %v5339_v53 = vsel %vm1883_vm5, %v5338_v0, %v5334_v21 }
0x30c0   :  { %v5340_v34 = vsel %vm1885_vm6, %v5339_v53, %v5336_v46 }
0x30c1   :  { %v5341_v11 = vadd.f32 %v5340_v34, %v8132_v32  ;;  %v5342_v15 = vadd.f32 %v5340_v34, %v8129_v31 }
0x30c3   :  { %7375 = vtanh.f32 %v5341_v11 }
0x30c4   :  { %7377 = vtanh.f32 %v5342_v15 }
0x30cd   :  { %v7376_v36 = vpop.eup %7375 }
0x30ce   :  { %v7378_v17 = vpop.eup %7377  ;;  %v5345_v28 = vmul.f32 %v8487_v52, %v7376_v36 }
0x30cf   :  { %v5346_v6 = vmul.f32 %v8487_v52, %v7378_v17 }
0x30d0   :  { %v5347_v29 = vsel %vm164_vm2, %v5345_v28, 0.0 }
0x30d1   :  { %v5350_v9 = vsel %vm164_vm2, %v5346_v6, 0.0  ;;  %5348 = vadd.xlane.f32.xlu1 %v5347_v29 }
0x30d2   :  { %5351 = vadd.xlane.f32.xlu0 %v5350_v9 }
0x315e   :  { %v5349_v43 = vpop.xlane.xlu1 %5348 }
0x315f   :  { %v5353_v12 = vadd.f32 %v8497_v2, %v5349_v43  ;;  %v5352_v48 = vpop.xlane.xlu0 %5351 }
0x3160   :  { %v5354_v56 = vadd.f32 %v8497_v2, %v5352_v48 }
0x3161   :  { %v5356_v32 = vrot.slane %v5353_v12, 2  ;;  %v5359_v22 = vrot.slane %v5353_v12, 4  ;;  %v5362_v41 = vrot.slane %v5353_v12, 6 }
0x3162   :  { %v5367_v18 = vrot.slane %v5354_v56, 2  ;;  %v5370_v51 = vrot.slane %v5354_v56, 4  ;;  %v5373_v60 = vrot.slane %v5354_v56, 6 }
0x3163   :  { %v5358_v31 = vmax.f32 %v5353_v12, %v5356_v32 }
0x3165   :  { %v5361_v23 = vmax.f32 %v5358_v31, %v5359_v22 }
0x3167   :  { %v5364_v57 = vmax.f32 %v5361_v23, %v5362_v41 }
0x3169   :  { %v5365_v52 = vmax.f32 %v5364_v57, %v5354_v56 }
0x316b   :  { %v5369_v16 = vmax.f32 %v5365_v52, %v5367_v18 }
0x316d   :  { %v5372_v63 = vmax.f32 %v5369_v16, %v5370_v51 }
0x316f   :  { %v5375_v47 = vmax.f32 %v5372_v63, %v5373_v60 }
0x3171   :  { %v5377_v7 = vrot.slane %v5375_v47, 6  ;;  %v5379_v10 = vrot.slane %v5375_v47, 4  ;;  %v5381_v25 = vrot.slane %v5375_v47, 2 }
0x3173   :  { %v5383_v61 = vsel %vm1881_vm4, %v5375_v47, %v5377_v7 }
0x3174   :  { %v5384_v19 = vsel %vm1883_vm5, %v5383_v61, %v5379_v10 }
0x3175   :  { %v5385_v44 = vsel %vm1885_vm6, %v5384_v19, %v5381_v25 }
0x3176   :  { %v5386_v2 = vsub.f32 %v5353_v12, %v5385_v44  ;;  %v5387_v33 = vsub.f32 %v5354_v56, %v5385_v44 }
0x3178   :  { %v5388_v54 = vmul.f32 1.442695, %v5386_v2  ;;  %v5390_v14 = vmul.f32 1.442695, %v5387_v33 }
0x317a   :  { %7379 = vpow2.f32 %v5388_v54 }
0x317b   :  { %7381 = vpow2.f32 %v5390_v14 }
0x3184   :  { %v7380_v26 = vpop.eup %7379 }
0x3185   :  { %5414 = vperm.xlu0 %7073, %v7380_v26   ;;  %v5393_v45 = vrot.slane %v7380_v26, 2  ;;  %v5396_v35 = vrot.slane %v7380_v26, 4  ;;  %v5399_v39 = vrot.slane %v7380_v26, 6  ;;  %v7382_v42 = vpop.eup %7381 }
0x3186   :  { %v5404_v40 = vrot.slane %v7382_v42, 2  ;;  %v5407_v62 = vrot.slane %v7382_v42, 4  ;;  %v5410_v58 = vrot.slane %v7382_v42, 6 }
0x3187   :  { %v5395_v55 = vadd.f32 %v7380_v26, %v5393_v45 }
0x3189   :  { %v5398_v24 = vadd.f32 %v5396_v35, %v5395_v55 }
0x318b   :  { %v5401_v27 = vadd.f32 %v5399_v39, %v5398_v24 }
0x318d   :  { %v5402_v3 = vadd.f32 %v7382_v42, %v5401_v27 }
0x318f   :  { %v5406_v13 = vadd.f32 %v5404_v40, %v5402_v3 }
0x3191   :  { %v5409_v1 = vadd.f32 %v5407_v62, %v5406_v13 }
0x3193   :  { %v5412_v37 = vadd.f32 %v5410_v58, %v5409_v1 }
0x3195   :  { %5446 = vperm.xlu1 %7074, %v5412_v37  }
0x3199   :  { %5418 = vperm.xlu1 %7074, %v7382_v42  }
0x3204   :  { %v5415_v49 = vpop.permute.xlu0 %5414 }
0x3205   :  { %v5421_v8 = vmul.f32 %v5415_v49, %v7773_v50 }
0x3207   :  { %v5424_v5 = vrot.slane %v5421_v8, 2  ;;  %v5427_v21 = vrot.slane %v5421_v8, 4  ;;  %v5430_v53 = vrot.slane %v5421_v8, 6 }
0x3209   :  { %v5426_v38 = vadd.f32 %v5424_v5, %v5421_v8 }
0x320b   :  { %v5429_v0 = vadd.f32 %v5427_v21, %v5426_v38 }
0x320d   :  { %v5432_v11 = vadd.f32 %v5430_v53, %v5429_v0 }
0x3214   :  { %v5447_v46 = vpop.permute.xlu1 %5446 }
0x3215   :  { %7383 = vrcp.f32 %v5447_v46 }
0x3218   :  { %v5419_v34 = vpop.permute.xlu1 %5418 }
0x3219   :  { %v5422_v15 = vmul.f32 %v5419_v34, %v7925_v30 }
0x321b   :  { %v5433_v36 = vadd.f32 %v5432_v11, %v5422_v15  ;;  %v5435_v17 = vrot.slane %v5422_v15, 2  ;;  %v5438_v6 = vrot.slane %v5422_v15, 4  ;;  %v5441_v9 = vrot.slane %v5422_v15, 6 }
0x321d   :  { %v5437_v28 = vadd.f32 %v5435_v17, %v5433_v36 }
0x321f   :  { %v5440_v29 = vadd.f32 %v5438_v6, %v5437_v28  ;;  %v7384_v12 = vpop.eup %7383 }
0x3221   :  { %v5443_v43 = vadd.f32 %v5441_v9, %v5440_v29 }
0x3223   :  { %v5450_v50 = vmul.f32 %v7384_v12, %v5443_v43 }
0x3225   :  { %5453 = vrot.lane.b32.xlu0 %v5450_v50, %s7394_s26 }
0x3297   :  { %v5454_v32 = vpop.permute.xlu0 %5453 }
0x3298   :  { %v5456_v48 = vsel %vm164_vm2, %v8696_v59, %v5454_v32 }
0x3299   :  { %6653 = vmatmul.mubr.msk.f32.vlgmr.msra.gmra.mrb[46].mxu0 %vm283_vm3, %v5456_v48 }
0x336c   :  { %v5526_v31 = vpop.f32.mrb[46].mxu0 }
0x336d   :  { %v5527_v30 = vadd.f32 %v8648_v20, %v5526_v31  ;;  %v6654_v22 = vpop.f32.mrb[47].mxu0 }
0x336f   :  { %v5546_v56 = vrot.slane %v5527_v30, 2 }
0x3371   :  { %v5553_v23 = vsel %vm1885_vm6, %v8712_v4, %v5546_v56 }
0x3372   :  { %5555 = vst [vmem:[%s8761_s20 + $0x8] sm:$0xff] %v5553_v23 }

</bundles_post_ra>
